<compile_context>
chip_gen: v6e
topology: v6e:2x2x1
jax: 0.10.0
libtpu: 0.0.40
codegen_flags: <defaults>
</compile_context>

<pallas_src>
import math

import jax
import jax.numpy as jnp
from jax.experimental import pallas as pl
from jax.experimental.pallas import tpu as pltpu

# ----------------- synthetic "tiny" config -----------------
B = 2
C_OUT = 4                  # pretrained_vae.latent_channels
T_LAT, HW_LAT = 2, 4       # temporal_size, spatial_size (post-VAE latent grid)
TP, SP = 1, 2              # vit_enc_temporal/spatial_patch_size
WIDTH = 256                # 'tiny'
N_LAYERS = 4
N_HEADS = 4
HEAD_DIM = WIDTH // N_HEADS
TG, HG = T_LAT // TP, HW_LAT // SP
GRID = TG * HG * HG        # 8 video patches
N_LATENT = 8               # num_latent_tokens
TOKEN_SIZE = 16
SEQ = GRID + N_LATENT      # 16
MLP = 4 * WIDTH
MLP_CHUNK = WIDTH          # 256-wide hidden chunks
N_CHUNKS = MLP // MLP_CHUNK
EPS = 1e-5
OUT_K = C_OUT * TP * SP * SP   # 16 real flattened ConvTranspose3d patch cols
OUT_PAD = WIDTH                # lane-dense padded output width
BS = B * SEQ                   # 32
BG = B * GRID                  # 16

# ---- packed non-per-layer f32 params: rows of a (N_STATIC, WIDTH) array ----
_R_DEC_B = 0
_R_MASK = 1
_R_LNPRE_G, _R_LNPRE_B = 2, 3
_R_LNPOST_G, _R_LNPOST_B = 4, 5
_R_OUT_B = 6
_R_POS = 8                          # GRID rows   (8-aligned)
_R_LPOS = _R_POS + GRID             # N_LATENT rows (8-aligned)
N_STATIC = _R_LPOS + N_LATENT       # 24

# ---- packed per-layer f32 params: rows of a (N_LAYERS, N_PERLAYER, WIDTH) ----
_L_LN1_G, _L_LN1_B = 0, 1
_L_LN2_G, _L_LN2_B = 2, 3
_L_BQ, _L_BK, _L_BV = 4, 5, 6        # b_q pre-scaled by 1/sqrt(head_dim)
_L_BO = 7
_L_BFC = 8                            # N_CHUNKS rows (bfc split per MLP chunk)
_L_BPR = _L_BFC + N_CHUNKS            # 12
N_PERLAYER = 16                       # padded to a multiple of 8 sublanes


# ----------------- layer-pipelined Pallas kernel -----------------
def _decoder_kernel(z_ref, dec_w_ref, st_ref, lp_ref,
                    wqkv_ref, wo_ref, wfc_ref, wpr_ref, out_w_ref,
                    o_ref, x_ref):
    f32, bf16 = jnp.float32, jnp.bfloat16
    l = pl.program_id(0)

    def ln(v, g, b):                        # f32 LayerNorm over last dim
        mu = jnp.mean(v, axis=-1, keepdims=True)
        var = jnp.mean(jnp.square(v - mu), axis=-1, keepdims=True)
        return (v - mu) * jax.lax.rsqrt(var + EPS) * g + b

    # ---------- prologue (layer 0): decoder_embed + concat + ln_pre ----------
    @pl.when(l == 0)
    def _():
        z = z_ref[...].reshape(B * N_LATENT, TOKEN_SIZE)
        lat = (jnp.dot(z.astype(bf16), dec_w_ref[...],
                       preferred_element_type=f32)
               + st_ref[_R_DEC_B:_R_DEC_B + 1, :])
        lat = lat.reshape(B, N_LATENT, WIDTH) \
            + st_ref[_R_LPOS:_R_LPOS + N_LATENT, :][None]
        grid_tok = st_ref[_R_MASK:_R_MASK + 1, :] + st_ref[_R_POS:_R_POS + GRID, :]
        grid_tok = jnp.broadcast_to(grid_tok[None], (B, GRID, WIDTH))
        xx = jnp.concatenate([grid_tok, lat], axis=1).reshape(BS, WIDTH)
        x_ref[...] = ln(xx,
                        st_ref[_R_LNPRE_G:_R_LNPRE_G + 1, :],
                        st_ref[_R_LNPRE_B:_R_LNPRE_B + 1, :])

    x = x_ref[...]

    # ---------------- multi-head self-attention (pre-LN) ----------------
    h = ln(x, lp_ref[_L_LN1_G:_L_LN1_G + 1, :], lp_ref[_L_LN1_B:_L_LN1_B + 1, :])
    qkv = jnp.dot(h.astype(bf16), wqkv_ref[...], preferred_element_type=f32)
    # 1/sqrt(head_dim) is folded into the q columns of wqkv and into b_q.
    q_all = qkv[:, :WIDTH] + lp_ref[_L_BQ:_L_BQ + 1, :]
    k_all = qkv[:, WIDTH:2 * WIDTH] + lp_ref[_L_BK:_L_BK + 1, :]
    v_all = qkv[:, 2 * WIDTH:] + lp_ref[_L_BV:_L_BV + 1, :]

    ctxs = []
    for hi in range(N_HEADS):                      # static unroll, batched over B
        lo = hi * HEAD_DIM
        q = q_all[:, lo:lo + HEAD_DIM].reshape(B, SEQ, HEAD_DIM).astype(bf16)
        k = k_all[:, lo:lo + HEAD_DIM].reshape(B, SEQ, HEAD_DIM).astype(bf16)
        v = v_all[:, lo:lo + HEAD_DIM].reshape(B, SEQ, HEAD_DIM).astype(bf16)
        s = jnp.einsum('bqd,bkd->bqk', q, k, preferred_element_type=f32)
        s = s - jnp.max(s, axis=-1, keepdims=True)
        e = jnp.exp(s)
        p = e * pl.reciprocal(jnp.sum(e, axis=-1, keepdims=True), approx=True)
        ctx = jnp.einsum('bqk,bkd->bqd', p.astype(bf16), v,
                         preferred_element_type=f32)
        ctxs.append(ctx.reshape(BS, HEAD_DIM))
    ctx_all = jnp.concatenate(ctxs, axis=-1)                   # (BS, WIDTH)
    proj = jnp.dot(ctx_all.astype(bf16), wo_ref[...],
                   preferred_element_type=f32)                 # one K=256 matmul
    x = x + proj + lp_ref[_L_BO:_L_BO + 1, :]

    # ---------------------------- MLP (pre-LN) ----------------------------
    h2 = ln(x, lp_ref[_L_LN2_G:_L_LN2_G + 1, :], lp_ref[_L_LN2_B:_L_LN2_B + 1, :])
    h2b = h2.astype(bf16)
    mlp_acc = None
    for c in range(N_CHUNKS):                      # chunked hidden dim (no spills)
        cs = c * MLP_CHUNK
        m = (jnp.dot(h2b, wfc_ref[:, cs:cs + MLP_CHUNK],
                     preferred_element_type=f32)
             + lp_ref[_L_BFC + c:_L_BFC + c + 1, :])
        m = jax.nn.gelu(m, approximate=True)       # f32 GELU (v5e-safe)
        part = jnp.dot(m.astype(bf16), wpr_ref[cs:cs + MLP_CHUNK, :],
                       preferred_element_type=f32)
        mlp_acc = part if mlp_acc is None else mlp_acc + part
    x = x + mlp_acc + lp_ref[_L_BPR:_L_BPR + 1, :]

    x_ref[...] = x

    # ---------- epilogue (last layer): ln_post + conv_out patch matmul -------
    @pl.when(l == N_LAYERS - 1)
    def _():
        xg = x.reshape(B, SEQ, WIDTH)[:, :GRID].reshape(BG, WIDTH)
        xg = ln(xg,
                st_ref[_R_LNPOST_G:_R_LNPOST_G + 1, :],
                st_ref[_R_LNPOST_B:_R_LNPOST_B + 1, :])
        o_ref[...] = (jnp.dot(xg.astype(bf16), out_w_ref[...],
                              preferred_element_type=f32)
                      + st_ref[_R_OUT_B:_R_OUT_B + 1, :]).astype(o_ref.dtype)


# ----------------- wrapper -----------------
def titok_decoder_forward(z_quantized, params):
    grid_spec = pltpu.PrefetchScalarGridSpec(
        num_scalar_prefetch=0,
        grid=(N_LAYERS,),
        in_specs=[
            pl.BlockSpec((B, N_LATENT, TOKEN_SIZE), lambda l: (0, 0, 0)),   # z
            pl.BlockSpec((TOKEN_SIZE, WIDTH), lambda l: (0, 0)),            # dec_w
            pl.BlockSpec((N_STATIC, WIDTH), lambda l: (0, 0)),              # statics
            pl.BlockSpec((None, N_PERLAYER, WIDTH), lambda l: (l, 0, 0)),   # per-layer misc
            pl.BlockSpec((None, WIDTH, 3 * WIDTH), lambda l: (l, 0, 0)),    # wqkv
            pl.BlockSpec((None, WIDTH, WIDTH), lambda l: (l, 0, 0)),        # wo
            pl.BlockSpec((None, WIDTH, MLP), lambda l: (l, 0, 0)),          # wfc
            pl.BlockSpec((None, MLP, WIDTH), lambda l: (l, 0, 0)),          # wpr
            pl.BlockSpec((WIDTH, OUT_PAD), lambda l: (0, 0)),               # out_w
        ],
        out_specs=pl.BlockSpec((BG, OUT_PAD), lambda l: (0, 0)),
        scratch_shapes=[pltpu.VMEM((BS, WIDTH), jnp.float32)],              # persistent x
    )
    patch = pl.pallas_call(
        _decoder_kernel,
        out_shape=jax.ShapeDtypeStruct((BG, OUT_PAD), jnp.float32),
        grid_spec=grid_spec,
        compiler_params=pltpu.CompilerParams(
            dimension_semantics=("arbitrary",)),
    )(z_quantized, params["dec_w"], params["statics"], params["perlayer"],
      params["wqkv"], params["wo"], params["wfc"], params["wpr"],
      params["out_w"])

    # ConvTranspose3d(kernel==stride) fold back to NCDHW: pure layout glue.
    p = patch[:, :OUT_K].reshape(B, TG, HG, HG, C_OUT, TP, SP, SP)
    p = p.transpose(0, 4, 1, 5, 2, 6, 3, 7)
    return p.reshape(B, C_OUT, TG * TP, HG * SP, HG * SP)


# ----------------- deterministic synthetic params -----------------
def init_params(key):
    scale = WIDTH ** -0.5
    attn_scale = 1.0 / math.sqrt(HEAD_DIM)
    keys = iter(jax.random.split(key, 64))

    def rnd(shape, s=0.02):
        return (s * jax.random.normal(next(keys), shape)).astype(jnp.float32)

    # ---- packed non-per-layer small f32 params ----
    statics = jnp.zeros((N_STATIC, WIDTH), jnp.float32)
    statics = statics.at[_R_DEC_B].set(rnd((WIDTH,)))
    statics = statics.at[_R_MASK].set(scale * jax.random.normal(next(keys), (WIDTH,)))
    statics = statics.at[_R_POS:_R_POS + GRID].set(
        scale * jax.random.normal(next(keys), (GRID, WIDTH)))
    statics = statics.at[_R_LPOS:_R_LPOS + N_LATENT].set(
        scale * jax.random.normal(next(keys), (N_LATENT, WIDTH)))
    statics = statics.at[_R_LNPRE_G].set(jnp.ones((WIDTH,)))
    statics = statics.at[_R_LNPOST_G].set(jnp.ones((WIDTH,)))
    # ln_pre_b / ln_post_b remain zero.

    # ConvTranspose3d weight flattened to (WIDTH, C_OUT*TP*SP*SP), lane-padded.
    conv_w = rnd((WIDTH, OUT_K))
    conv_b = rnd((C_OUT,))
    out_w = jnp.zeros((WIDTH, OUT_PAD), jnp.float32).at[:, :OUT_K].set(conv_w)
    statics = statics.at[_R_OUT_B, :OUT_K].set(jnp.repeat(conv_b, TP * SP * SP))

    # ---- packed per-layer small f32 params ----
    lp = jnp.zeros((N_LAYERS, N_PERLAYER, WIDTH), jnp.float32)
    lp = lp.at[:, _L_LN1_G].set(jnp.ones((N_LAYERS, WIDTH)))
    lp = lp.at[:, _L_LN2_G].set(jnp.ones((N_LAYERS, WIDTH)))
    bqkv = rnd((N_LAYERS, 3, WIDTH))
    bqkv = bqkv.at[:, 0].multiply(attn_scale)       # fold softmax scale into b_q
    lp = lp.at[:, _L_BQ:_L_BV + 1].set(bqkv)
    lp = lp.at[:, _L_BO].set(rnd((N_LAYERS, WIDTH)))
    lp = lp.at[:, _L_BFC:_L_BFC + N_CHUNKS].set(rnd((N_LAYERS, N_CHUNKS, WIDTH)))
    lp = lp.at[:, _L_BPR].set(rnd((N_LAYERS, WIDTH)))

    # ---- layer-stacked MXU weights (bf16); softmax scale folded into W_q ----
    wqkv = rnd((N_LAYERS, WIDTH, 3 * WIDTH))
    wqkv = wqkv.at[:, :, :WIDTH].multiply(attn_scale)

    return {
        "dec_w": rnd((TOKEN_SIZE, WIDTH)).astype(jnp.bfloat16),
        "statics": statics,
        "perlayer": lp,
        "wqkv": wqkv.astype(jnp.bfloat16),
        "wo": rnd((N_LAYERS, WIDTH, WIDTH)).astype(jnp.bfloat16),
        "wfc": rnd((N_LAYERS, WIDTH, MLP)).astype(jnp.bfloat16),
        "wpr": rnd((N_LAYERS, MLP, WIDTH)).astype(jnp.bfloat16),
        "out_w": out_w.astype(jnp.bfloat16),
    }


if __name__ == "__main__":
    key = jax.random.PRNGKey(0)
    kp, kz = jax.random.split(key)
    params = init_params(kp)
    z_quantized = jax.random.normal(kz, (B, N_LATENT, TOKEN_SIZE), jnp.float32)

    out = jax.jit(titok_decoder_forward)(z_quantized, params)
    out = jax.block_until_ready(out)
    assert out.shape == (B, C_OUT, T_LAT, HW_LAT, HW_LAT), out.shape
    assert bool(jnp.all(jnp.isfinite(out)))
    print("KERNEL_OK")
</pallas_src>

<mosaic_0001>
module attributes {stable_mosaic.version = 11 : i64} {
  func.func @_decoder_kernel(%arg0: i32, %arg1: memref<2x8x16xf32, #tpu.memory_space<vmem>>, %arg2: memref<16x256xbf16, #tpu.memory_space<vmem>>, %arg3: memref<24x256xf32, #tpu.memory_space<vmem>>, %arg4: memref<1x16x256xf32, #tpu.memory_space<vmem>>, %arg5: memref<1x256x768xbf16, #tpu.memory_space<vmem>>, %arg6: memref<1x256x256xbf16, #tpu.memory_space<vmem>>, %arg7: memref<1x256x1024xbf16, #tpu.memory_space<vmem>>, %arg8: memref<1x1024x256xbf16, #tpu.memory_space<vmem>>, %arg9: memref<256x256xbf16, #tpu.memory_space<vmem>>, %arg10: memref<16x256xf32, #tpu.memory_space<vmem>>, %arg11: memref<32x256xf32, #tpu.memory_space<vmem>>) attributes {dimension_semantics = [#tpu.dimension_semantics<arbitrary>], iteration_bounds = array<i64: 4>, scalar_prefetch = 0 : i64, scratch_operands = 1 : i64, tpu.core_type = #tpu.core_type<tc>, window_params = [{pipeline_mode = #tpu.pipeline_mode<synchronous>, transform_indices = @transform_0, window_bounds = array<i64: 2, 8, 16>}, {pipeline_mode = #tpu.pipeline_mode<synchronous>, transform_indices = @transform_1, window_bounds = array<i64: 16, 256>}, {pipeline_mode = #tpu.pipeline_mode<synchronous>, transform_indices = @transform_2, window_bounds = array<i64: 24, 256>}, {transform_indices = @transform_3, window_bounds = array<i64: 1, 16, 256>}, {transform_indices = @transform_4, window_bounds = array<i64: 1, 256, 768>}, {transform_indices = @transform_5, window_bounds = array<i64: 1, 256, 256>}, {transform_indices = @transform_6, window_bounds = array<i64: 1, 256, 1024>}, {transform_indices = @transform_7, window_bounds = array<i64: 1, 1024, 256>}, {pipeline_mode = #tpu.pipeline_mode<synchronous>, transform_indices = @transform_8, window_bounds = array<i64: 256, 256>}, {pipeline_mode = #tpu.pipeline_mode<synchronous>, transform_indices = @transform_9, window_bounds = array<i64: 16, 256>}]} {
    %c0_i32 = arith.constant 0 : i32
    %0 = arith.cmpi eq, %arg0, %c0_i32 : i32
    %1 = arith.extui %0 : i1 to i32
    %c0_i32_0 = arith.constant 0 : i32
    %2 = arith.cmpi ne, %1, %c0_i32_0 : i32
    scf.if %2 {
      %c0_110 = arith.constant 0 : index
      %c0_111 = arith.constant 0 : index
      %c0_112 = arith.constant 0 : index
      %286 = vector.load %arg1[%c0_110, %c0_111, %c0_112] : memref<2x8x16xf32, #tpu.memory_space<vmem>>, vector<2x8x16xf32>
      %287 = vector.shape_cast %286 : vector<2x8x16xf32> to vector<16x16xf32>
      %288 = arith.truncf %287 : vector<16x16xf32> to vector<16x16xbf16>
      %c0_113 = arith.constant 0 : index
      %c0_114 = arith.constant 0 : index
      %289 = vector.load %arg2[%c0_113, %c0_114] : memref<16x256xbf16, #tpu.memory_space<vmem>>, vector<16x256xbf16>
      %cst_115 = arith.constant dense<0.000000e+00> : vector<16x256xf32>
      %290 = tpu.matmul %288, %289, %cst_115 {dimension_numbers = #tpu.dot_dimension_numbers<[1], [0], [0], [1], [0, 0, 1, 1], [], []>} : vector<16x16xbf16>, vector<16x256xbf16>, vector<16x256xf32> -> vector<16x256xf32>
      %c0_116 = arith.constant 0 : index
      %c0_117 = arith.constant 0 : index
      %291 = vector.load %arg3[%c0_116, %c0_117] : memref<24x256xf32, #tpu.memory_space<vmem>>, vector<1x256xf32>
      %292 = vector.broadcast %291 : vector<1x256xf32> to vector<16x256xf32>
      %293 = arith.addf %290, %292 : vector<16x256xf32>
      %294 = vector.shape_cast %293 : vector<16x256xf32> to vector<2x8x256xf32>
      %c16 = arith.constant 16 : index
      %c0_118 = arith.constant 0 : index
      %295 = vector.load %arg3[%c16, %c0_118] : memref<24x256xf32, #tpu.memory_space<vmem>>, vector<8x256xf32>
      %296 = vector.shape_cast %295 : vector<8x256xf32> to vector<1x8x256xf32>
      %297 = vector.broadcast %296 : vector<1x8x256xf32> to vector<2x8x256xf32>
      %298 = arith.addf %294, %297 : vector<2x8x256xf32>
      %c1_119 = arith.constant 1 : index
      %c0_120 = arith.constant 0 : index
      %299 = vector.load %arg3[%c1_119, %c0_120] : memref<24x256xf32, #tpu.memory_space<vmem>>, vector<1x256xf32>
      %c8_121 = arith.constant 8 : index
      %c0_122 = arith.constant 0 : index
      %300 = vector.load %arg3[%c8_121, %c0_122] : memref<24x256xf32, #tpu.memory_space<vmem>>, vector<8x256xf32>
      %301 = vector.broadcast %299 : vector<1x256xf32> to vector<8x256xf32>
      %302 = arith.addf %301, %300 : vector<8x256xf32>
      %303 = vector.shape_cast %302 : vector<8x256xf32> to vector<1x8x256xf32>
      %304 = vector.shape_cast %303 : vector<1x8x256xf32> to vector<1x8x256xf32>
      %305 = vector.broadcast %304 : vector<1x8x256xf32> to vector<2x8x256xf32>
      %306 = tpu.concatenate %305, %298 in 1 : vector<2x8x256xf32>, vector<2x8x256xf32> -> vector<2x16x256xf32>
      %307 = vector.shape_cast %306 : vector<2x16x256xf32> to vector<32x256xf32>
      %c2_123 = arith.constant 2 : index
      %c0_124 = arith.constant 0 : index
      %308 = vector.load %arg3[%c2_123, %c0_124] : memref<24x256xf32, #tpu.memory_space<vmem>>, vector<1x256xf32>
      %c3_125 = arith.constant 3 : index
      %c0_126 = arith.constant 0 : index
      %309 = vector.load %arg3[%c3_125, %c0_126] : memref<24x256xf32, #tpu.memory_space<vmem>>, vector<1x256xf32>
      %cst_127 = arith.constant dense<0.000000e+00> : vector<32xf32>
      %310 = vector.multi_reduction <add>, %307, %cst_127 [1] : vector<32x256xf32> to vector<32xf32>
      %311 = vector.shape_cast %310 : vector<32xf32> to vector<32x1xf32>
      %cst_128 = arith.constant 2.560000e+02 : f32
      %312 = vector.broadcast %cst_128 : f32 to vector<32x1xf32>
      %313 = arith.divf %311, %312 : vector<32x1xf32>
      %314 = vector.broadcast %313 : vector<32x1xf32> to vector<32x256xf32>
      %315 = arith.subf %307, %314 : vector<32x256xf32>
      %316 = arith.mulf %315, %315 : vector<32x256xf32>
      %cst_129 = arith.constant dense<0.000000e+00> : vector<32xf32>
      %317 = vector.multi_reduction <add>, %316, %cst_129 [1] : vector<32x256xf32> to vector<32xf32>
      %318 = vector.shape_cast %317 : vector<32xf32> to vector<32x1xf32>
      %cst_130 = arith.constant 2.560000e+02 : f32
      %319 = vector.broadcast %cst_130 : f32 to vector<32x1xf32>
      %320 = arith.divf %318, %319 : vector<32x1xf32>
      %321 = vector.broadcast %313 : vector<32x1xf32> to vector<32x256xf32>
      %322 = arith.subf %307, %321 : vector<32x256xf32>
      %cst_131 = arith.constant 9.99999974E-6 : f32
      %323 = vector.broadcast %cst_131 : f32 to vector<32x1xf32>
      %324 = arith.addf %320, %323 : vector<32x1xf32>
      %325 = math.rsqrt %324 : vector<32x1xf32>
      %326 = vector.broadcast %325 : vector<32x1xf32> to vector<32x256xf32>
      %327 = arith.mulf %322, %326 : vector<32x256xf32>
      %328 = vector.broadcast %308 : vector<1x256xf32> to vector<32x256xf32>
      %329 = arith.mulf %327, %328 : vector<32x256xf32>
      %330 = vector.broadcast %309 : vector<1x256xf32> to vector<32x256xf32>
      %331 = arith.addf %329, %330 : vector<32x256xf32>
      %c0_132 = arith.constant 0 : index
      %c0_133 = arith.constant 0 : index
      %332 = vector.load %arg11[%c0_132, %c0_133] : memref<32x256xf32, #tpu.memory_space<vmem>>, vector<32x256xf32>
      tpu.vector_store %arg11[%c0_132, %c0_133], %331 {strides = array<i32>} : memref<32x256xf32, #tpu.memory_space<vmem>>, vector<32x256xf32>,
    } else {
    }
    %c0 = arith.constant 0 : index
    %c0_1 = arith.constant 0 : index
    %3 = vector.load %arg11[%c0, %c0_1] : memref<32x256xf32, #tpu.memory_space<vmem>>, vector<32x256xf32>
    %c0_2 = arith.constant 0 : index
    %c0_3 = arith.constant 0 : index
    %c0_4 = arith.constant 0 : index
    %4 = vector.load %arg4[%c0_2, %c0_3, %c0_4] : memref<1x16x256xf32, #tpu.memory_space<vmem>>, vector<1x1x256xf32>
    %5 = vector.shape_cast %4 : vector<1x1x256xf32> to vector<1x256xf32>
    %c0_5 = arith.constant 0 : index
    %c1 = arith.constant 1 : index
    %c0_6 = arith.constant 0 : index
    %6 = vector.load %arg4[%c0_5, %c1, %c0_6] : memref<1x16x256xf32, #tpu.memory_space<vmem>>, vector<1x1x256xf32>
    %7 = vector.shape_cast %6 : vector<1x1x256xf32> to vector<1x256xf32>
    %cst = arith.constant dense<0.000000e+00> : vector<32xf32>
    %8 = vector.multi_reduction <add>, %3, %cst [1] : vector<32x256xf32> to vector<32xf32>
    %9 = vector.shape_cast %8 : vector<32xf32> to vector<32x1xf32>
    %cst_7 = arith.constant 2.560000e+02 : f32
    %10 = vector.broadcast %cst_7 : f32 to vector<32x1xf32>
    %11 = arith.divf %9, %10 : vector<32x1xf32>
    %12 = vector.broadcast %11 : vector<32x1xf32> to vector<32x256xf32>
    %13 = arith.subf %3, %12 : vector<32x256xf32>
    %14 = arith.mulf %13, %13 : vector<32x256xf32>
    %cst_8 = arith.constant dense<0.000000e+00> : vector<32xf32>
    %15 = vector.multi_reduction <add>, %14, %cst_8 [1] : vector<32x256xf32> to vector<32xf32>
    %16 = vector.shape_cast %15 : vector<32xf32> to vector<32x1xf32>
    %cst_9 = arith.constant 2.560000e+02 : f32
    %17 = vector.broadcast %cst_9 : f32 to vector<32x1xf32>
    %18 = arith.divf %16, %17 : vector<32x1xf32>
    %19 = vector.broadcast %11 : vector<32x1xf32> to vector<32x256xf32>
    %20 = arith.subf %3, %19 : vector<32x256xf32>
    %cst_10 = arith.constant 9.99999974E-6 : f32
    %21 = vector.broadcast %cst_10 : f32 to vector<32x1xf32>
    %22 = arith.addf %18, %21 : vector<32x1xf32>
    %23 = math.rsqrt %22 : vector<32x1xf32>
    %24 = vector.broadcast %23 : vector<32x1xf32> to vector<32x256xf32>
    %25 = arith.mulf %20, %24 : vector<32x256xf32>
    %26 = vector.broadcast %5 : vector<1x256xf32> to vector<32x256xf32>
    %27 = arith.mulf %25, %26 : vector<32x256xf32>
    %28 = vector.broadcast %7 : vector<1x256xf32> to vector<32x256xf32>
    %29 = arith.addf %27, %28 : vector<32x256xf32>
    %30 = arith.truncf %29 : vector<32x256xf32> to vector<32x256xbf16>
    %c0_11 = arith.constant 0 : index
    %c0_12 = arith.constant 0 : index
    %c0_13 = arith.constant 0 : index
    %31 = vector.load %arg5[%c0_11, %c0_12, %c0_13] : memref<1x256x768xbf16, #tpu.memory_space<vmem>>, vector<1x256x768xbf16>
    %32 = vector.shape_cast %31 : vector<1x256x768xbf16> to vector<256x768xbf16>
    %cst_14 = arith.constant dense<0.000000e+00> : vector<32x768xf32>
    %33 = tpu.matmul %30, %32, %cst_14 {dimension_numbers = #tpu.dot_dimension_numbers<[1], [0], [0], [1], [0, 0, 1, 1], [], []>} : vector<32x256xbf16>, vector<256x768xbf16>, vector<32x768xf32> -> vector<32x768xf32>
    %34 = vector.extract_strided_slice %33 {offsets = [0, 0], sizes = [32, 256], strides = [1, 1]} : vector<32x768xf32> to vector<32x256xf32>
    %c0_15 = arith.constant 0 : index
    %c4 = arith.constant 4 : index
    %c0_16 = arith.constant 0 : index
    %35 = vector.load %arg4[%c0_15, %c4, %c0_16] : memref<1x16x256xf32, #tpu.memory_space<vmem>>, vector<1x1x256xf32>
    %36 = vector.shape_cast %35 : vector<1x1x256xf32> to vector<1x256xf32>
    %37 = vector.broadcast %36 : vector<1x256xf32> to vector<32x256xf32>
    %38 = arith.addf %34, %37 : vector<32x256xf32>
    %39 = vector.extract_strided_slice %33 {offsets = [0, 256], sizes = [32, 256], strides = [1, 1]} : vector<32x768xf32> to vector<32x256xf32>
    %c0_17 = arith.constant 0 : index
    %c5 = arith.constant 5 : index
    %c0_18 = arith.constant 0 : index
    %40 = vector.load %arg4[%c0_17, %c5, %c0_18] : memref<1x16x256xf32, #tpu.memory_space<vmem>>, vector<1x1x256xf32>
    %41 = vector.shape_cast %40 : vector<1x1x256xf32> to vector<1x256xf32>
    %42 = vector.broadcast %41 : vector<1x256xf32> to vector<32x256xf32>
    %43 = arith.addf %39, %42 : vector<32x256xf32>
    %44 = vector.extract_strided_slice %33 {offsets = [0, 512], sizes = [32, 256], strides = [1, 1]} : vector<32x768xf32> to vector<32x256xf32>
    %c0_19 = arith.constant 0 : index
    %c6 = arith.constant 6 : index
    %c0_20 = arith.constant 0 : index
    %45 = vector.load %arg4[%c0_19, %c6, %c0_20] : memref<1x16x256xf32, #tpu.memory_space<vmem>>, vector<1x1x256xf32>
    %46 = vector.shape_cast %45 : vector<1x1x256xf32> to vector<1x256xf32>
    %47 = vector.broadcast %46 : vector<1x256xf32> to vector<32x256xf32>
    %48 = arith.addf %44, %47 : vector<32x256xf32>
    %49 = vector.extract_strided_slice %38 {offsets = [0, 0], sizes = [32, 64], strides = [1, 1]} : vector<32x256xf32> to vector<32x64xf32>
    %50 = vector.shape_cast %49 : vector<32x64xf32> to vector<2x16x64xf32>
    %51 = arith.truncf %50 : vector<2x16x64xf32> to vector<2x16x64xbf16>
    %52 = vector.extract_strided_slice %43 {offsets = [0, 0], sizes = [32, 64], strides = [1, 1]} : vector<32x256xf32> to vector<32x64xf32>
    %53 = vector.shape_cast %52 : vector<32x64xf32> to vector<2x16x64xf32>
    %54 = arith.truncf %53 : vector<2x16x64xf32> to vector<2x16x64xbf16>
    %55 = vector.extract_strided_slice %48 {offsets = [0, 0], sizes = [32, 64], strides = [1, 1]} : vector<32x256xf32> to vector<32x64xf32>
    %56 = vector.shape_cast %55 : vector<32x64xf32> to vector<2x16x64xf32>
    %57 = arith.truncf %56 : vector<2x16x64xf32> to vector<2x16x64xbf16>
    "tpu.trace_start"() <{level = 10 : i32, message = "bqd,bkd->bqk"}> : () -> ()
    %cst_21 = arith.constant dense<0.000000e+00> : vector<2x16x16xf32>
    %58 = tpu.matmul %51, %54, %cst_21 {dimension_numbers = #tpu.dot_dimension_numbers<[2], [2], [1], [1], [0, 0, 0, 1, 1, 1], [0], [0]>} : vector<2x16x64xbf16>, vector<2x16x64xbf16>, vector<2x16x16xf32> -> vector<2x16x16xf32>
    "tpu.trace_stop"() : () -> ()
    %cst_22 = arith.constant dense<0xFF800000> : vector<2x16xf32>
    %59 = vector.multi_reduction <maximumf>, %58, %cst_22 [2] : vector<2x16x16xf32> to vector<2x16xf32>
    %60 = vector.shape_cast %59 : vector<2x16xf32> to vector<2x16x1xf32>
    %61 = vector.broadcast %60 : vector<2x16x1xf32> to vector<2x16x16xf32>
    %62 = arith.subf %58, %61 : vector<2x16x16xf32>
    %63 = math.exp %62 : vector<2x16x16xf32>
    %cst_23 = arith.constant dense<0.000000e+00> : vector<2x16xf32>
    %64 = vector.multi_reduction <add>, %63, %cst_23 [2] : vector<2x16x16xf32> to vector<2x16xf32>
    %65 = vector.shape_cast %64 : vector<2x16xf32> to vector<2x16x1xf32>
    %66 = tpu.reciprocal %65 {approx = true} : vector<2x16x1xf32> -> vector<2x16x1xf32>
    %67 = vector.broadcast %66 : vector<2x16x1xf32> to vector<2x16x16xf32>
    %68 = arith.mulf %63, %67 : vector<2x16x16xf32>
    %69 = arith.truncf %68 : vector<2x16x16xf32> to vector<2x16x16xbf16>
    "tpu.trace_start"() <{level = 10 : i32, message = "bqk,bkd->bqd"}> : () -> ()
    %cst_24 = arith.constant dense<0.000000e+00> : vector<2x16x64xf32>
    %70 = tpu.matmul %69, %57, %cst_24 {dimension_numbers = #tpu.dot_dimension_numbers<[2], [1], [1], [2], [0, 0, 0, 1, 1, 2], [0], [0]>} : vector<2x16x16xbf16>, vector<2x16x64xbf16>, vector<2x16x64xf32> -> vector<2x16x64xf32>
    "tpu.trace_stop"() : () -> ()
    %71 = vector.shape_cast %70 : vector<2x16x64xf32> to vector<32x64xf32>
    %72 = vector.extract_strided_slice %38 {offsets = [0, 64], sizes = [32, 64], strides = [1, 1]} : vector<32x256xf32> to vector<32x64xf32>
    %73 = vector.shape_cast %72 : vector<32x64xf32> to vector<2x16x64xf32>
    %74 = arith.truncf %73 : vector<2x16x64xf32> to vector<2x16x64xbf16>
    %75 = vector.extract_strided_slice %43 {offsets = [0, 64], sizes = [32, 64], strides = [1, 1]} : vector<32x256xf32> to vector<32x64xf32>
    %76 = vector.shape_cast %75 : vector<32x64xf32> to vector<2x16x64xf32>
    %77 = arith.truncf %76 : vector<2x16x64xf32> to vector<2x16x64xbf16>
    %78 = vector.extract_strided_slice %48 {offsets = [0, 64], sizes = [32, 64], strides = [1, 1]} : vector<32x256xf32> to vector<32x64xf32>
    %79 = vector.shape_cast %78 : vector<32x64xf32> to vector<2x16x64xf32>
    %80 = arith.truncf %79 : vector<2x16x64xf32> to vector<2x16x64xbf16>
    "tpu.trace_start"() <{level = 10 : i32, message = "bqd,bkd->bqk"}> : () -> ()
    %cst_25 = arith.constant dense<0.000000e+00> : vector<2x16x16xf32>
    %81 = tpu.matmul %74, %77, %cst_25 {dimension_numbers = #tpu.dot_dimension_numbers<[2], [2], [1], [1], [0, 0, 0, 1, 1, 1], [0], [0]>} : vector<2x16x64xbf16>, vector<2x16x64xbf16>, vector<2x16x16xf32> -> vector<2x16x16xf32>
    "tpu.trace_stop"() : () -> ()
    %cst_26 = arith.constant dense<0xFF800000> : vector<2x16xf32>
    %82 = vector.multi_reduction <maximumf>, %81, %cst_26 [2] : vector<2x16x16xf32> to vector<2x16xf32>
    %83 = vector.shape_cast %82 : vector<2x16xf32> to vector<2x16x1xf32>
    %84 = vector.broadcast %83 : vector<2x16x1xf32> to vector<2x16x16xf32>
    %85 = arith.subf %81, %84 : vector<2x16x16xf32>
    %86 = math.exp %85 : vector<2x16x16xf32>
    %cst_27 = arith.constant dense<0.000000e+00> : vector<2x16xf32>
    %87 = vector.multi_reduction <add>, %86, %cst_27 [2] : vector<2x16x16xf32> to vector<2x16xf32>
    %88 = vector.shape_cast %87 : vector<2x16xf32> to vector<2x16x1xf32>
    %89 = tpu.reciprocal %88 {approx = true} : vector<2x16x1xf32> -> vector<2x16x1xf32>
    %90 = vector.broadcast %89 : vector<2x16x1xf32> to vector<2x16x16xf32>
    %91 = arith.mulf %86, %90 : vector<2x16x16xf32>
    %92 = arith.truncf %91 : vector<2x16x16xf32> to vector<2x16x16xbf16>
    "tpu.trace_start"() <{level = 10 : i32, message = "bqk,bkd->bqd"}> : () -> ()
    %cst_28 = arith.constant dense<0.000000e+00> : vector<2x16x64xf32>
    %93 = tpu.matmul %92, %80, %cst_28 {dimension_numbers = #tpu.dot_dimension_numbers<[2], [1], [1], [2], [0, 0, 0, 1, 1, 2], [0], [0]>} : vector<2x16x16xbf16>, vector<2x16x64xbf16>, vector<2x16x64xf32> -> vector<2x16x64xf32>
    "tpu.trace_stop"() : () -> ()
    %94 = vector.shape_cast %93 : vector<2x16x64xf32> to vector<32x64xf32>
    %95 = vector.extract_strided_slice %38 {offsets = [0, 128], sizes = [32, 64], strides = [1, 1]} : vector<32x256xf32> to vector<32x64xf32>
    %96 = vector.shape_cast %95 : vector<32x64xf32> to vector<2x16x64xf32>
    %97 = arith.truncf %96 : vector<2x16x64xf32> to vector<2x16x64xbf16>
    %98 = vector.extract_strided_slice %43 {offsets = [0, 128], sizes = [32, 64], strides = [1, 1]} : vector<32x256xf32> to vector<32x64xf32>
    %99 = vector.shape_cast %98 : vector<32x64xf32> to vector<2x16x64xf32>
    %100 = arith.truncf %99 : vector<2x16x64xf32> to vector<2x16x64xbf16>
    %101 = vector.extract_strided_slice %48 {offsets = [0, 128], sizes = [32, 64], strides = [1, 1]} : vector<32x256xf32> to vector<32x64xf32>
    %102 = vector.shape_cast %101 : vector<32x64xf32> to vector<2x16x64xf32>
    %103 = arith.truncf %102 : vector<2x16x64xf32> to vector<2x16x64xbf16>
    "tpu.trace_start"() <{level = 10 : i32, message = "bqd,bkd->bqk"}> : () -> ()
    %cst_29 = arith.constant dense<0.000000e+00> : vector<2x16x16xf32>
    %104 = tpu.matmul %97, %100, %cst_29 {dimension_numbers = #tpu.dot_dimension_numbers<[2], [2], [1], [1], [0, 0, 0, 1, 1, 1], [0], [0]>} : vector<2x16x64xbf16>, vector<2x16x64xbf16>, vector<2x16x16xf32> -> vector<2x16x16xf32>
    "tpu.trace_stop"() : () -> ()
    %cst_30 = arith.constant dense<0xFF800000> : vector<2x16xf32>
    %105 = vector.multi_reduction <maximumf>, %104, %cst_30 [2] : vector<2x16x16xf32> to vector<2x16xf32>
    %106 = vector.shape_cast %105 : vector<2x16xf32> to vector<2x16x1xf32>
    %107 = vector.broadcast %106 : vector<2x16x1xf32> to vector<2x16x16xf32>
    %108 = arith.subf %104, %107 : vector<2x16x16xf32>
    %109 = math.exp %108 : vector<2x16x16xf32>
    %cst_31 = arith.constant dense<0.000000e+00> : vector<2x16xf32>
    %110 = vector.multi_reduction <add>, %109, %cst_31 [2] : vector<2x16x16xf32> to vector<2x16xf32>
    %111 = vector.shape_cast %110 : vector<2x16xf32> to vector<2x16x1xf32>
    %112 = tpu.reciprocal %111 {approx = true} : vector<2x16x1xf32> -> vector<2x16x1xf32>
    %113 = vector.broadcast %112 : vector<2x16x1xf32> to vector<2x16x16xf32>
    %114 = arith.mulf %109, %113 : vector<2x16x16xf32>
    %115 = arith.truncf %114 : vector<2x16x16xf32> to vector<2x16x16xbf16>
    "tpu.trace_start"() <{level = 10 : i32, message = "bqk,bkd->bqd"}> : () -> ()
    %cst_32 = arith.constant dense<0.000000e+00> : vector<2x16x64xf32>
    %116 = tpu.matmul %115, %103, %cst_32 {dimension_numbers = #tpu.dot_dimension_numbers<[2], [1], [1], [2], [0, 0, 0, 1, 1, 2], [0], [0]>} : vector<2x16x16xbf16>, vector<2x16x64xbf16>, vector<2x16x64xf32> -> vector<2x16x64xf32>
    "tpu.trace_stop"() : () -> ()
    %117 = vector.shape_cast %116 : vector<2x16x64xf32> to vector<32x64xf32>
    %118 = vector.extract_strided_slice %38 {offsets = [0, 192], sizes = [32, 64], strides = [1, 1]} : vector<32x256xf32> to vector<32x64xf32>
    %119 = vector.shape_cast %118 : vector<32x64xf32> to vector<2x16x64xf32>
    %120 = arith.truncf %119 : vector<2x16x64xf32> to vector<2x16x64xbf16>
    %121 = vector.extract_strided_slice %43 {offsets = [0, 192], sizes = [32, 64], strides = [1, 1]} : vector<32x256xf32> to vector<32x64xf32>
    %122 = vector.shape_cast %121 : vector<32x64xf32> to vector<2x16x64xf32>
    %123 = arith.truncf %122 : vector<2x16x64xf32> to vector<2x16x64xbf16>
    %124 = vector.extract_strided_slice %48 {offsets = [0, 192], sizes = [32, 64], strides = [1, 1]} : vector<32x256xf32> to vector<32x64xf32>
    %125 = vector.shape_cast %124 : vector<32x64xf32> to vector<2x16x64xf32>
    %126 = arith.truncf %125 : vector<2x16x64xf32> to vector<2x16x64xbf16>
    "tpu.trace_start"() <{level = 10 : i32, message = "bqd,bkd->bqk"}> : () -> ()
    %cst_33 = arith.constant dense<0.000000e+00> : vector<2x16x16xf32>
    %127 = tpu.matmul %120, %123, %cst_33 {dimension_numbers = #tpu.dot_dimension_numbers<[2], [2], [1], [1], [0, 0, 0, 1, 1, 1], [0], [0]>} : vector<2x16x64xbf16>, vector<2x16x64xbf16>, vector<2x16x16xf32> -> vector<2x16x16xf32>
    "tpu.trace_stop"() : () -> ()
    %cst_34 = arith.constant dense<0xFF800000> : vector<2x16xf32>
    %128 = vector.multi_reduction <maximumf>, %127, %cst_34 [2] : vector<2x16x16xf32> to vector<2x16xf32>
    %129 = vector.shape_cast %128 : vector<2x16xf32> to vector<2x16x1xf32>
    %130 = vector.broadcast %129 : vector<2x16x1xf32> to vector<2x16x16xf32>
    %131 = arith.subf %127, %130 : vector<2x16x16xf32>
    %132 = math.exp %131 : vector<2x16x16xf32>
    %cst_35 = arith.constant dense<0.000000e+00> : vector<2x16xf32>
    %133 = vector.multi_reduction <add>, %132, %cst_35 [2] : vector<2x16x16xf32> to vector<2x16xf32>
    %134 = vector.shape_cast %133 : vector<2x16xf32> to vector<2x16x1xf32>
    %135 = tpu.reciprocal %134 {approx = true} : vector<2x16x1xf32> -> vector<2x16x1xf32>
    %136 = vector.broadcast %135 : vector<2x16x1xf32> to vector<2x16x16xf32>
    %137 = arith.mulf %132, %136 : vector<2x16x16xf32>
    %138 = arith.truncf %137 : vector<2x16x16xf32> to vector<2x16x16xbf16>
    "tpu.trace_start"() <{level = 10 : i32, message = "bqk,bkd->bqd"}> : () -> ()
    %cst_36 = arith.constant dense<0.000000e+00> : vector<2x16x64xf32>
    %139 = tpu.matmul %138, %126, %cst_36 {dimension_numbers = #tpu.dot_dimension_numbers<[2], [1], [1], [2], [0, 0, 0, 1, 1, 2], [0], [0]>} : vector<2x16x16xbf16>, vector<2x16x64xbf16>, vector<2x16x64xf32> -> vector<2x16x64xf32>
    "tpu.trace_stop"() : () -> ()
    %140 = vector.shape_cast %139 : vector<2x16x64xf32> to vector<32x64xf32>
    %141 = tpu.concatenate %71, %94, %117, %140 in 1 : vector<32x64xf32>, vector<32x64xf32>, vector<32x64xf32>, vector<32x64xf32> -> vector<32x256xf32>
    %142 = arith.truncf %141 : vector<32x256xf32> to vector<32x256xbf16>
    %c0_37 = arith.constant 0 : index
    %c0_38 = arith.constant 0 : index
    %c0_39 = arith.constant 0 : index
    %143 = vector.load %arg6[%c0_37, %c0_38, %c0_39] : memref<1x256x256xbf16, #tpu.memory_space<vmem>>, vector<1x256x256xbf16>
    %144 = vector.shape_cast %143 : vector<1x256x256xbf16> to vector<256x256xbf16>
    %cst_40 = arith.constant dense<0.000000e+00> : vector<32x256xf32>
    %145 = tpu.matmul %142, %144, %cst_40 {dimension_numbers = #tpu.dot_dimension_numbers<[1], [0], [0], [1], [0, 0, 1, 1], [], []>} : vector<32x256xbf16>, vector<256x256xbf16>, vector<32x256xf32> -> vector<32x256xf32>
    %146 = arith.addf %3, %145 : vector<32x256xf32>
    %c0_41 = arith.constant 0 : index
    %c7 = arith.constant 7 : index
    %c0_42 = arith.constant 0 : index
    %147 = vector.load %arg4[%c0_41, %c7, %c0_42] : memref<1x16x256xf32, #tpu.memory_space<vmem>>, vector<1x1x256xf32>
    %148 = vector.shape_cast %147 : vector<1x1x256xf32> to vector<1x256xf32>
    %149 = vector.broadcast %148 : vector<1x256xf32> to vector<32x256xf32>
    %150 = arith.addf %146, %149 : vector<32x256xf32>
    %c0_43 = arith.constant 0 : index
    %c2 = arith.constant 2 : index
    %c0_44 = arith.constant 0 : index
    %151 = vector.load %arg4[%c0_43, %c2, %c0_44] : memref<1x16x256xf32, #tpu.memory_space<vmem>>, vector<1x1x256xf32>
    %152 = vector.shape_cast %151 : vector<1x1x256xf32> to vector<1x256xf32>
    %c0_45 = arith.constant 0 : index
    %c3 = arith.constant 3 : index
    %c0_46 = arith.constant 0 : index
    %153 = vector.load %arg4[%c0_45, %c3, %c0_46] : memref<1x16x256xf32, #tpu.memory_space<vmem>>, vector<1x1x256xf32>
    %154 = vector.shape_cast %153 : vector<1x1x256xf32> to vector<1x256xf32>
    %cst_47 = arith.constant dense<0.000000e+00> : vector<32xf32>
    %155 = vector.multi_reduction <add>, %150, %cst_47 [1] : vector<32x256xf32> to vector<32xf32>
    %156 = vector.shape_cast %155 : vector<32xf32> to vector<32x1xf32>
    %cst_48 = arith.constant 2.560000e+02 : f32
    %157 = vector.broadcast %cst_48 : f32 to vector<32x1xf32>
    %158 = arith.divf %156, %157 : vector<32x1xf32>
    %159 = vector.broadcast %158 : vector<32x1xf32> to vector<32x256xf32>
    %160 = arith.subf %150, %159 : vector<32x256xf32>
    %161 = arith.mulf %160, %160 : vector<32x256xf32>
    %cst_49 = arith.constant dense<0.000000e+00> : vector<32xf32>
    %162 = vector.multi_reduction <add>, %161, %cst_49 [1] : vector<32x256xf32> to vector<32xf32>
    %163 = vector.shape_cast %162 : vector<32xf32> to vector<32x1xf32>
    %cst_50 = arith.constant 2.560000e+02 : f32
    %164 = vector.broadcast %cst_50 : f32 to vector<32x1xf32>
    %165 = arith.divf %163, %164 : vector<32x1xf32>
    %166 = vector.broadcast %158 : vector<32x1xf32> to vector<32x256xf32>
    %167 = arith.subf %150, %166 : vector<32x256xf32>
    %cst_51 = arith.constant 9.99999974E-6 : f32
    %168 = vector.broadcast %cst_51 : f32 to vector<32x1xf32>
    %169 = arith.addf %165, %168 : vector<32x1xf32>
    %170 = math.rsqrt %169 : vector<32x1xf32>
    %171 = vector.broadcast %170 : vector<32x1xf32> to vector<32x256xf32>
    %172 = arith.mulf %167, %171 : vector<32x256xf32>
    %173 = vector.broadcast %152 : vector<1x256xf32> to vector<32x256xf32>
    %174 = arith.mulf %172, %173 : vector<32x256xf32>
    %175 = vector.broadcast %154 : vector<1x256xf32> to vector<32x256xf32>
    %176 = arith.addf %174, %175 : vector<32x256xf32>
    %177 = arith.truncf %176 : vector<32x256xf32> to vector<32x256xbf16>
    %c0_52 = arith.constant 0 : index
    %c0_53 = arith.constant 0 : index
    %c0_54 = arith.constant 0 : index
    %178 = vector.load %arg7[%c0_52, %c0_53, %c0_54] : memref<1x256x1024xbf16, #tpu.memory_space<vmem>>, vector<1x256x256xbf16>
    %179 = vector.shape_cast %178 : vector<1x256x256xbf16> to vector<256x256xbf16>
    %cst_55 = arith.constant dense<0.000000e+00> : vector<32x256xf32>
    %180 = tpu.matmul %177, %179, %cst_55 {dimension_numbers = #tpu.dot_dimension_numbers<[1], [0], [0], [1], [0, 0, 1, 1], [], []>} : vector<32x256xbf16>, vector<256x256xbf16>, vector<32x256xf32> -> vector<32x256xf32>
    %c0_56 = arith.constant 0 : index
    %c8 = arith.constant 8 : index
    %c0_57 = arith.constant 0 : index
    %181 = vector.load %arg4[%c0_56, %c8, %c0_57] : memref<1x16x256xf32, #tpu.memory_space<vmem>>, vector<1x1x256xf32>
    %182 = vector.shape_cast %181 : vector<1x1x256xf32> to vector<1x256xf32>
    %183 = vector.broadcast %182 : vector<1x256xf32> to vector<32x256xf32>
    %184 = arith.addf %180, %183 : vector<32x256xf32>
    %185 = arith.mulf %184, %184 : vector<32x256xf32>
    %186 = arith.mulf %184, %185 : vector<32x256xf32>
    %cst_58 = arith.constant 4.471500e-02 : f32
    %187 = vector.broadcast %cst_58 : f32 to vector<32x256xf32>
    %188 = arith.mulf %187, %186 : vector<32x256xf32>
    %189 = arith.addf %184, %188 : vector<32x256xf32>
    %cst_59 = arith.constant 0.797884583 : f32
    %190 = vector.broadcast %cst_59 : f32 to vector<32x256xf32>
    %191 = arith.mulf %190, %189 : vector<32x256xf32>
    %192 = math.tanh %191 : vector<32x256xf32>
    %cst_60 = arith.constant 1.000000e+00 : f32
    %193 = vector.broadcast %cst_60 : f32 to vector<32x256xf32>
    %194 = arith.addf %193, %192 : vector<32x256xf32>
    %cst_61 = arith.constant 5.000000e-01 : f32
    %195 = vector.broadcast %cst_61 : f32 to vector<32x256xf32>
    %196 = arith.mulf %195, %194 : vector<32x256xf32>
    %197 = arith.mulf %184, %196 : vector<32x256xf32>
    %198 = arith.truncf %197 : vector<32x256xf32> to vector<32x256xbf16>
    %c0_62 = arith.constant 0 : index
    %c0_63 = arith.constant 0 : index
    %c0_64 = arith.constant 0 : index
    %199 = vector.load %arg8[%c0_62, %c0_63, %c0_64] : memref<1x1024x256xbf16, #tpu.memory_space<vmem>>, vector<1x256x256xbf16>
    %200 = vector.shape_cast %199 : vector<1x256x256xbf16> to vector<256x256xbf16>
    %cst_65 = arith.constant dense<0.000000e+00> : vector<32x256xf32>
    %201 = tpu.matmul %198, %200, %cst_65 {dimension_numbers = #tpu.dot_dimension_numbers<[1], [0], [0], [1], [0, 0, 1, 1], [], []>} : vector<32x256xbf16>, vector<256x256xbf16>, vector<32x256xf32> -> vector<32x256xf32>
    %c0_66 = arith.constant 0 : index
    %c0_67 = arith.constant 0 : index
    %c256 = arith.constant 256 : index
    %202 = vector.load %arg7[%c0_66, %c0_67, %c256] : memref<1x256x1024xbf16, #tpu.memory_space<vmem>>, vector<1x256x256xbf16>
    %203 = vector.shape_cast %202 : vector<1x256x256xbf16> to vector<256x256xbf16>
    %cst_68 = arith.constant dense<0.000000e+00> : vector<32x256xf32>
    %204 = tpu.matmul %177, %203, %cst_68 {dimension_numbers = #tpu.dot_dimension_numbers<[1], [0], [0], [1], [0, 0, 1, 1], [], []>} : vector<32x256xbf16>, vector<256x256xbf16>, vector<32x256xf32> -> vector<32x256xf32>
    %c0_69 = arith.constant 0 : index
    %c9 = arith.constant 9 : index
    %c0_70 = arith.constant 0 : index
    %205 = vector.load %arg4[%c0_69, %c9, %c0_70] : memref<1x16x256xf32, #tpu.memory_space<vmem>>, vector<1x1x256xf32>
    %206 = vector.shape_cast %205 : vector<1x1x256xf32> to vector<1x256xf32>
    %207 = vector.broadcast %206 : vector<1x256xf32> to vector<32x256xf32>
    %208 = arith.addf %204, %207 : vector<32x256xf32>
    %209 = arith.mulf %208, %208 : vector<32x256xf32>
    %210 = arith.mulf %208, %209 : vector<32x256xf32>
    %cst_71 = arith.constant 4.471500e-02 : f32
    %211 = vector.broadcast %cst_71 : f32 to vector<32x256xf32>
    %212 = arith.mulf %211, %210 : vector<32x256xf32>
    %213 = arith.addf %208, %212 : vector<32x256xf32>
    %cst_72 = arith.constant 0.797884583 : f32
    %214 = vector.broadcast %cst_72 : f32 to vector<32x256xf32>
    %215 = arith.mulf %214, %213 : vector<32x256xf32>
    %216 = math.tanh %215 : vector<32x256xf32>
    %cst_73 = arith.constant 1.000000e+00 : f32
    %217 = vector.broadcast %cst_73 : f32 to vector<32x256xf32>
    %218 = arith.addf %217, %216 : vector<32x256xf32>
    %cst_74 = arith.constant 5.000000e-01 : f32
    %219 = vector.broadcast %cst_74 : f32 to vector<32x256xf32>
    %220 = arith.mulf %219, %218 : vector<32x256xf32>
    %221 = arith.mulf %208, %220 : vector<32x256xf32>
    %222 = arith.truncf %221 : vector<32x256xf32> to vector<32x256xbf16>
    %c0_75 = arith.constant 0 : index
    %c256_76 = arith.constant 256 : index
    %c0_77 = arith.constant 0 : index
    %223 = vector.load %arg8[%c0_75, %c256_76, %c0_77] : memref<1x1024x256xbf16, #tpu.memory_space<vmem>>, vector<1x256x256xbf16>
    %224 = vector.shape_cast %223 : vector<1x256x256xbf16> to vector<256x256xbf16>
    %cst_78 = arith.constant dense<0.000000e+00> : vector<32x256xf32>
    %225 = tpu.matmul %222, %224, %cst_78 {dimension_numbers = #tpu.dot_dimension_numbers<[1], [0], [0], [1], [0, 0, 1, 1], [], []>} : vector<32x256xbf16>, vector<256x256xbf16>, vector<32x256xf32> -> vector<32x256xf32>
    %226 = arith.addf %201, %225 : vector<32x256xf32>
    %c0_79 = arith.constant 0 : index
    %c0_80 = arith.constant 0 : index
    %c512 = arith.constant 512 : index
    %227 = vector.load %arg7[%c0_79, %c0_80, %c512] : memref<1x256x1024xbf16, #tpu.memory_space<vmem>>, vector<1x256x256xbf16>
    %228 = vector.shape_cast %227 : vector<1x256x256xbf16> to vector<256x256xbf16>
    %cst_81 = arith.constant dense<0.000000e+00> : vector<32x256xf32>
    %229 = tpu.matmul %177, %228, %cst_81 {dimension_numbers = #tpu.dot_dimension_numbers<[1], [0], [0], [1], [0, 0, 1, 1], [], []>} : vector<32x256xbf16>, vector<256x256xbf16>, vector<32x256xf32> -> vector<32x256xf32>
    %c0_82 = arith.constant 0 : index
    %c10 = arith.constant 10 : index
    %c0_83 = arith.constant 0 : index
    %230 = vector.load %arg4[%c0_82, %c10, %c0_83] : memref<1x16x256xf32, #tpu.memory_space<vmem>>, vector<1x1x256xf32>
    %231 = vector.shape_cast %230 : vector<1x1x256xf32> to vector<1x256xf32>
    %232 = vector.broadcast %231 : vector<1x256xf32> to vector<32x256xf32>
    %233 = arith.addf %229, %232 : vector<32x256xf32>
    %234 = arith.mulf %233, %233 : vector<32x256xf32>
    %235 = arith.mulf %233, %234 : vector<32x256xf32>
    %cst_84 = arith.constant 4.471500e-02 : f32
    %236 = vector.broadcast %cst_84 : f32 to vector<32x256xf32>
    %237 = arith.mulf %236, %235 : vector<32x256xf32>
    %238 = arith.addf %233, %237 : vector<32x256xf32>
    %cst_85 = arith.constant 0.797884583 : f32
    %239 = vector.broadcast %cst_85 : f32 to vector<32x256xf32>
    %240 = arith.mulf %239, %238 : vector<32x256xf32>
    %241 = math.tanh %240 : vector<32x256xf32>
    %cst_86 = arith.constant 1.000000e+00 : f32
    %242 = vector.broadcast %cst_86 : f32 to vector<32x256xf32>
    %243 = arith.addf %242, %241 : vector<32x256xf32>
    %cst_87 = arith.constant 5.000000e-01 : f32
    %244 = vector.broadcast %cst_87 : f32 to vector<32x256xf32>
    %245 = arith.mulf %244, %243 : vector<32x256xf32>
    %246 = arith.mulf %233, %245 : vector<32x256xf32>
    %247 = arith.truncf %246 : vector<32x256xf32> to vector<32x256xbf16>
    %c0_88 = arith.constant 0 : index
    %c512_89 = arith.constant 512 : index
    %c0_90 = arith.constant 0 : index
    %248 = vector.load %arg8[%c0_88, %c512_89, %c0_90] : memref<1x1024x256xbf16, #tpu.memory_space<vmem>>, vector<1x256x256xbf16>
    %249 = vector.shape_cast %248 : vector<1x256x256xbf16> to vector<256x256xbf16>
    %cst_91 = arith.constant dense<0.000000e+00> : vector<32x256xf32>
    %250 = tpu.matmul %247, %249, %cst_91 {dimension_numbers = #tpu.dot_dimension_numbers<[1], [0], [0], [1], [0, 0, 1, 1], [], []>} : vector<32x256xbf16>, vector<256x256xbf16>, vector<32x256xf32> -> vector<32x256xf32>
    %251 = arith.addf %226, %250 : vector<32x256xf32>
    %c0_92 = arith.constant 0 : index
    %c0_93 = arith.constant 0 : index
    %c768 = arith.constant 768 : index
    %252 = vector.load %arg7[%c0_92, %c0_93, %c768] : memref<1x256x1024xbf16, #tpu.memory_space<vmem>>, vector<1x256x256xbf16>
    %253 = vector.shape_cast %252 : vector<1x256x256xbf16> to vector<256x256xbf16>
    %cst_94 = arith.constant dense<0.000000e+00> : vector<32x256xf32>
    %254 = tpu.matmul %177, %253, %cst_94 {dimension_numbers = #tpu.dot_dimension_numbers<[1], [0], [0], [1], [0, 0, 1, 1], [], []>} : vector<32x256xbf16>, vector<256x256xbf16>, vector<32x256xf32> -> vector<32x256xf32>
    %c0_95 = arith.constant 0 : index
    %c11 = arith.constant 11 : index
    %c0_96 = arith.constant 0 : index
    %255 = vector.load %arg4[%c0_95, %c11, %c0_96] : memref<1x16x256xf32, #tpu.memory_space<vmem>>, vector<1x1x256xf32>
    %256 = vector.shape_cast %255 : vector<1x1x256xf32> to vector<1x256xf32>
    %257 = vector.broadcast %256 : vector<1x256xf32> to vector<32x256xf32>
    %258 = arith.addf %254, %257 : vector<32x256xf32>
    %259 = arith.mulf %258, %258 : vector<32x256xf32>
    %260 = arith.mulf %258, %259 : vector<32x256xf32>
    %cst_97 = arith.constant 4.471500e-02 : f32
    %261 = vector.broadcast %cst_97 : f32 to vector<32x256xf32>
    %262 = arith.mulf %261, %260 : vector<32x256xf32>
    %263 = arith.addf %258, %262 : vector<32x256xf32>
    %cst_98 = arith.constant 0.797884583 : f32
    %264 = vector.broadcast %cst_98 : f32 to vector<32x256xf32>
    %265 = arith.mulf %264, %263 : vector<32x256xf32>
    %266 = math.tanh %265 : vector<32x256xf32>
    %cst_99 = arith.constant 1.000000e+00 : f32
    %267 = vector.broadcast %cst_99 : f32 to vector<32x256xf32>
    %268 = arith.addf %267, %266 : vector<32x256xf32>
    %cst_100 = arith.constant 5.000000e-01 : f32
    %269 = vector.broadcast %cst_100 : f32 to vector<32x256xf32>
    %270 = arith.mulf %269, %268 : vector<32x256xf32>
    %271 = arith.mulf %258, %270 : vector<32x256xf32>
    %272 = arith.truncf %271 : vector<32x256xf32> to vector<32x256xbf16>
    %c0_101 = arith.constant 0 : index
    %c768_102 = arith.constant 768 : index
    %c0_103 = arith.constant 0 : index
    %273 = vector.load %arg8[%c0_101, %c768_102, %c0_103] : memref<1x1024x256xbf16, #tpu.memory_space<vmem>>, vector<1x256x256xbf16>
    %274 = vector.shape_cast %273 : vector<1x256x256xbf16> to vector<256x256xbf16>
    %cst_104 = arith.constant dense<0.000000e+00> : vector<32x256xf32>
    %275 = tpu.matmul %272, %274, %cst_104 {dimension_numbers = #tpu.dot_dimension_numbers<[1], [0], [0], [1], [0, 0, 1, 1], [], []>} : vector<32x256xbf16>, vector<256x256xbf16>, vector<32x256xf32> -> vector<32x256xf32>
    %276 = arith.addf %251, %275 : vector<32x256xf32>
    %277 = arith.addf %150, %276 : vector<32x256xf32>
    %c0_105 = arith.constant 0 : index
    %c12 = arith.constant 12 : index
    %c0_106 = arith.constant 0 : index
    %278 = vector.load %arg4[%c0_105, %c12, %c0_106] : memref<1x16x256xf32, #tpu.memory_space<vmem>>, vector<1x1x256xf32>
    %279 = vector.shape_cast %278 : vector<1x1x256xf32> to vector<1x256xf32>
    %280 = vector.broadcast %279 : vector<1x256xf32> to vector<32x256xf32>
    %281 = arith.addf %277, %280 : vector<32x256xf32>
    %c0_107 = arith.constant 0 : index
    %c0_108 = arith.constant 0 : index
    %282 = vector.load %arg11[%c0_107, %c0_108] : memref<32x256xf32, #tpu.memory_space<vmem>>, vector<32x256xf32>
    tpu.vector_store %arg11[%c0_107, %c0_108], %281 {strides = array<i32>} : memref<32x256xf32, #tpu.memory_space<vmem>>, vector<32x256xf32>,
    %c3_i32 = arith.constant 3 : i32
    %283 = arith.cmpi eq, %arg0, %c3_i32 : i32
    %284 = arith.extui %283 : i1 to i32
    %c0_i32_109 = arith.constant 0 : i32
    %285 = arith.cmpi ne, %284, %c0_i32_109 : i32
    scf.if %285 {
      %286 = vector.shape_cast %281 : vector<32x256xf32> to vector<2x16x256xf32>
      %287 = vector.extract_strided_slice %286 {offsets = [0, 0, 0], sizes = [2, 8, 256], strides = [1, 1, 1]} : vector<2x16x256xf32> to vector<2x8x256xf32>
      %288 = vector.shape_cast %287 : vector<2x8x256xf32> to vector<16x256xf32>
      %c4_110 = arith.constant 4 : index
      %c0_111 = arith.constant 0 : index
      %289 = vector.load %arg3[%c4_110, %c0_111] : memref<24x256xf32, #tpu.memory_space<vmem>>, vector<1x256xf32>
      %c5_112 = arith.constant 5 : index
      %c0_113 = arith.constant 0 : index
      %290 = vector.load %arg3[%c5_112, %c0_113] : memref<24x256xf32, #tpu.memory_space<vmem>>, vector<1x256xf32>
      %cst_114 = arith.constant dense<0.000000e+00> : vector<16xf32>
      %291 = vector.multi_reduction <add>, %288, %cst_114 [1] : vector<16x256xf32> to vector<16xf32>
      %292 = vector.shape_cast %291 : vector<16xf32> to vector<16x1xf32>
      %cst_115 = arith.constant 2.560000e+02 : f32
      %293 = vector.broadcast %cst_115 : f32 to vector<16x1xf32>
      %294 = arith.divf %292, %293 : vector<16x1xf32>
      %295 = vector.broadcast %294 : vector<16x1xf32> to vector<16x256xf32>
      %296 = arith.subf %288, %295 : vector<16x256xf32>
      %297 = arith.mulf %296, %296 : vector<16x256xf32>
      %cst_116 = arith.constant dense<0.000000e+00> : vector<16xf32>
      %298 = vector.multi_reduction <add>, %297, %cst_116 [1] : vector<16x256xf32> to vector<16xf32>
      %299 = vector.shape_cast %298 : vector<16xf32> to vector<16x1xf32>
      %cst_117 = arith.constant 2.560000e+02 : f32
      %300 = vector.broadcast %cst_117 : f32 to vector<16x1xf32>
      %301 = arith.divf %299, %300 : vector<16x1xf32>
      %302 = vector.broadcast %294 : vector<16x1xf32> to vector<16x256xf32>
      %303 = arith.subf %288, %302 : vector<16x256xf32>
      %cst_118 = arith.constant 9.99999974E-6 : f32
      %304 = vector.broadcast %cst_118 : f32 to vector<16x1xf32>
      %305 = arith.addf %301, %304 : vector<16x1xf32>
      %306 = math.rsqrt %305 : vector<16x1xf32>
      %307 = vector.broadcast %306 : vector<16x1xf32> to vector<16x256xf32>
      %308 = arith.mulf %303, %307 : vector<16x256xf32>
      %309 = vector.broadcast %289 : vector<1x256xf32> to vector<16x256xf32>
      %310 = arith.mulf %308, %309 : vector<16x256xf32>
      %311 = vector.broadcast %290 : vector<1x256xf32> to vector<16x256xf32>
      %312 = arith.addf %310, %311 : vector<16x256xf32>
      %313 = arith.truncf %312 : vector<16x256xf32> to vector<16x256xbf16>
      %c0_119 = arith.constant 0 : index
      %c0_120 = arith.constant 0 : index
      %314 = vector.load %arg9[%c0_119, %c0_120] : memref<256x256xbf16, #tpu.memory_space<vmem>>, vector<256x256xbf16>
      %cst_121 = arith.constant dense<0.000000e+00> : vector<16x256xf32>
      %315 = tpu.matmul %313, %314, %cst_121 {dimension_numbers = #tpu.dot_dimension_numbers<[1], [0], [0], [1], [0, 0, 1, 1], [], []>} : vector<16x256xbf16>, vector<256x256xbf16>, vector<16x256xf32> -> vector<16x256xf32>
      %c6_122 = arith.constant 6 : index
      %c0_123 = arith.constant 0 : index
      %316 = vector.load %arg3[%c6_122, %c0_123] : memref<24x256xf32, #tpu.memory_space<vmem>>, vector<1x256xf32>
      %317 = vector.broadcast %316 : vector<1x256xf32> to vector<16x256xf32>
      %318 = arith.addf %315, %317 : vector<16x256xf32>
      %c0_124 = arith.constant 0 : index
      %c0_125 = arith.constant 0 : index
      %319 = vector.load %arg10[%c0_124, %c0_125] : memref<16x256xf32, #tpu.memory_space<vmem>>, vector<16x256xf32>
      tpu.vector_store %arg10[%c0_124, %c0_125], %318 {strides = array<i32>} : memref<16x256xf32, #tpu.memory_space<vmem>>, vector<16x256xf32>,
    } else {
    }
    return
  }
  func.func @transform_0(%arg0: i32) -> (i32, i32, i32) {
    %c0_i32 = arith.constant 0 : i32
    %c0_i32_0 = arith.constant 0 : i32
    %c0_i32_1 = arith.constant 0 : i32
    %c0_i32_2 = arith.constant 0 : i32
    return %c0_i32, %c0_i32_0, %c0_i32_1 : i32, i32, i32
  }
  func.func @transform_1(%arg0: i32) -> (i32, i32) {
    %c0_i32 = arith.constant 0 : i32
    %c0_i32_0 = arith.constant 0 : i32
    %c0_i32_1 = arith.constant 0 : i32
    return %c0_i32, %c0_i32_0 : i32, i32
  }
  func.func @transform_2(%arg0: i32) -> (i32, i32) {
    %c0_i32 = arith.constant 0 : i32
    %c0_i32_0 = arith.constant 0 : i32
    %c0_i32_1 = arith.constant 0 : i32
    return %c0_i32, %c0_i32_0 : i32, i32
  }
  func.func @transform_3(%arg0: i32) -> (i32, i32, i32) {
    %c0_i32 = arith.constant 0 : i32
    %c0_i32_0 = arith.constant 0 : i32
    %c0_i32_1 = arith.constant 0 : i32
    return %arg0, %c0_i32, %c0_i32_0 : i32, i32, i32
  }
  func.func @transform_4(%arg0: i32) -> (i32, i32, i32) {
    %c0_i32 = arith.constant 0 : i32
    %c0_i32_0 = arith.constant 0 : i32
    %c0_i32_1 = arith.constant 0 : i32
    return %arg0, %c0_i32, %c0_i32_0 : i32, i32, i32
  }
  func.func @transform_5(%arg0: i32) -> (i32, i32, i32) {
    %c0_i32 = arith.constant 0 : i32
    %c0_i32_0 = arith.constant 0 : i32
    %c0_i32_1 = arith.constant 0 : i32
    return %arg0, %c0_i32, %c0_i32_0 : i32, i32, i32
  }
  func.func @transform_6(%arg0: i32) -> (i32, i32, i32) {
    %c0_i32 = arith.constant 0 : i32
    %c0_i32_0 = arith.constant 0 : i32
    %c0_i32_1 = arith.constant 0 : i32
    return %arg0, %c0_i32, %c0_i32_0 : i32, i32, i32
  }
  func.func @transform_7(%arg0: i32) -> (i32, i32, i32) {
    %c0_i32 = arith.constant 0 : i32
    %c0_i32_0 = arith.constant 0 : i32
    %c0_i32_1 = arith.constant 0 : i32
    return %arg0, %c0_i32, %c0_i32_0 : i32, i32, i32
  }
  func.func @transform_8(%arg0: i32) -> (i32, i32) {
    %c0_i32 = arith.constant 0 : i32
    %c0_i32_0 = arith.constant 0 : i32
    %c0_i32_1 = arith.constant 0 : i32
    return %c0_i32, %c0_i32_0 : i32, i32
  }
  func.func @transform_9(%arg0: i32) -> (i32, i32) {
    %c0_i32 = arith.constant 0 : i32
    %c0_i32_0 = arith.constant 0 : i32
    %c0_i32_1 = arith.constant 0 : i32
    return %c0_i32, %c0_i32_0 : i32, i32
  }
}

</mosaic_0001>

<bundles_post_ra>
// kernel: titok_decoder_forward.1
= control target key start
LH: loop header
LB: loop body
LE: loop exit
PB: predicated region body
PF: predicated region fallthrough
CT: control target
= control target key end

     0   :  { %s9225_s0 = inlined_call_operand.hbm [shape: f32[2,8,16], index: 0, kind: input, shape index: {}]   ;;  %s9226_s1 = inlined_call_operand.hbm [shape: bf16[16,256], index: 1, kind: input, shape index: {}]   ;;  %s9227_s2 = inlined_call_operand.hbm [shape: f32[24,256], index: 2, kind: input, shape index: {}]   ;;  %s9228_s3 = inlined_call_operand.hbm [shape: f32[4,16,256], index: 3, kind: input, shape index: {}]   ;;  %s9229_s4 = inlined_call_operand.hbm [shape: bf16[4,256,768], index: 4, kind: input, shape index: {}]   ;;  %s9230_s5 = inlined_call_operand.hbm [shape: bf16[4,256,256], index: 5, kind: input, shape index: {}]   ;;  %s9231_s6 = inlined_call_operand.hbm [shape: bf16[4,256,1024], index: 6, kind: input, shape index: {}]   ;;  %s9232_s7 = inlined_call_operand.hbm [shape: bf16[4,1024,256], index: 7, kind: input, shape index: {}]   ;;  %s9233_s8 = inlined_call_operand.hbm [shape: bf16[256,256], index: 8, kind: input, shape index: {}]   ;;  %s9234_s9 = inlined_call_operand.vmem [shape: f32[16,256], index: 9, kind: output, shape index: {}]  }
   0x1   :  { %9249 = sst [smem:[#allocation26_spill]] %s9225_s0 }
   0x2   :  { %9250 = sst [smem:[#allocation27_spill]] %s9226_s1 }
   0x3   :  { %9251 = sst [smem:[#allocation28_spill]] %s9228_s3 }
   0x4   :  { %9252 = sst [smem:[#allocation29_spill]] %s9233_s8 }
   0x5   :  { %14 = vsyncpa [#allocation4], 0 }
   0x6   :  { %15 = vsyncpa [#allocation6], 0 }
   0x7   :  { %16 = vsyncpa [#allocation9], 0 }
   0x8   :  { %18 = vsyncpa [#allocation9 + $0x1], 0 }
   0x9   :  { %19 = vsyncpa [#allocation12], 0 }
   0xa   :  { %21 = vsyncpa [#allocation12 + $0x1], 0 }
   0xb   :  { %22 = vsyncpa [#allocation15], 0 }
   0xc   :  { %24 = vsyncpa [#allocation15 + $0x1], 0  ;;  %s7662_s30 = smov 0   ;;  %s7664_s10 = smov 0  }
   0xd   :  { %s7666_s11 = smov 0   ;;  %s7668_s12 = smov 0  }
   0xe LB: > { %9253 = sst [smem:[#allocation23_spill]] %s7585_s11  ;;  %s7681_s13 = sadd.s32 4294967295, %s7589_s12   ;;  %s7589_s12 = sphi %s7668_s12, %s9283_s12   ;;  %s7585_s11 = sphi %s7666_s11, %s9285_s11   ;;  %s7581_s10 = sphi %s7664_s10, %s9287_s10   ;;  %s7577_s30 = sphi %s7662_s30, %s9286_s30  }
   0xf   : > { %p113_p0 = scmp.ne.s32.totalorder %s7581_s10, %s7577_s30  ;;  %p9239_p1 = scmp.eq.s32.totalorder %s7681_s13, 0 }
  0x10   : > { %p5916_p2 = scmp.ge.s32.totalorder %s7589_s12, 1  ;;  %p270_p3 = scmp.lt.s32.totalorder %s7589_s12, 5 }
  0x11   : > { %p7690_p5 = por %p9239_p1, %p113_p0  ;;  %s7591_s16 = smov [#allocation5]  }
  0x12   : > { %p7694_p6 = pnand %p5916_p2, %p270_p3  ;;  %s295_s17 = sshll.u32 %s7591_s16, 4  ;;  %s296_s17 = int_to_ptr.vmem [resolvable:$true] %s295_s17 }
  0x13   : > { %s9254_s14 = scalar_select %p7690_p5, 1, 0 }
  0x14   : > { %s9255_s15 = scalar_select %p7694_p6, 1, 0 }
  0x15   : > { %p6588_p7 = pneg %p7694_p6  ;;  %s7592_s19 = smov [#allocation16]  }
  0x16   : > { %s321_s20 = sshll.u32 %s7592_s19, 4  ;;  %s7302_s21 = scalar_lea.vmem %s296_s17, 256  ;;  %s322_s20 = int_to_ptr.vmem [resolvable:$true] %s321_s20 }
  0x17   : > { %p7702_p8 = pnand %p6588_p7, %p9239_p1  ;;  %p7303_p10 = scmp.ne.s32.totalorder %s296_s17, %s7302_s21 }
  0x18   : > { %p7310_p13 = scmp.lt.s32.totalorder %s296_s17, %s296_s17  ;;  %p7311_p0 = scmp.lt.s32.totalorder %s7302_s21, %s7302_s21 }
  0x19   : > { %s9256_s18 = scalar_select %p7702_p8, 1, 0 }
  0x1a   : > { %p9240_p9 = pneg %p7702_p8  ;;  %p7312_p2 = por %p7311_p0, %p7310_p13 }
  0x1c   : > { %p7305_p11 = pnand %p7303_p10, %p9240_p9 }
  0x1e   : > { %p7306_p12 = pneg %p7305_p11 }
  0x20   : > { %p7313_p3 = pnand %p7312_p2, %p7306_p12 }
  0x22   : > { %7316 = shalt.err (!%p7313_p3)
}
  0x23   : > { %s9235_s22 = smov 128   ;;  %s9237_s23 = smov 8  }
  0x24   : > { %s9257_s1 = sld [smem:[#allocation27_spill]]  ;;  %s7328_s26 = scalar_lea.vmem %s322_s20, 4096 }
  0x25   : > { %p7329_p7 = scmp.ne.s32.totalorder %s322_s20, %s7328_s26  ;;  %p7336_p12 = scmp.lt.s32.totalorder %s322_s20, %s322_s20 }
  0x26   : > { %p7337_p13 = scmp.lt.s32.totalorder %s7328_s26, %s7328_s26 }
  0x27   : > { %p7331_p10 = pnand %p7329_p7, %p9240_p9 }
  0x28   : > { %p7338_p0 = por %p7337_p13, %p7336_p12 }
  0x29   : > { %p7332_p11 = pneg %p7331_p10 }
  0x2a   : > { %6594 = dma.hbm_to_vmem [thread:$0]  (!%p7702_p8), %s9257_s1, 256, %s296_s17, [#allocation6], %s9235_s22, %s9235_s22, %s9237_s23  }
  0x2b   : > { %p7339_p2 = pnand %p7338_p0, %p7332_p11 }
  0x2d   : > { %7342 = shalt.err (!%p7339_p2)
}
  0x2e   : > { %s9258_s8 = sld [smem:[#allocation29_spill]]  ;;  %s7731_s29 = sadd.s32 1, %s7589_s12  }
  0x2f   : > { %9259 = sst [smem:[#allocation24_spill]] %s7731_s29  ;;  %s100_s30 = sadd.s32 1, %s7585_s11 }
  0x30   : > { %s97_s16 = ssub.s32 %s7589_s12, %s7731_s29  ;;  %p107_p3 = scmp.ne.s32.totalorder %s7585_s11, %s7581_s10 }
  0x31   : > { %p98_p7 = scmp.eq.s32.totalorder %s97_s16, 0  ;;  %p108_p10 = scmp.eq.s32.totalorder %s7589_s12, 0 }
  0x32   : > { %p6621_p12 = scmp.lt.s32.totalorder %s7589_s12, 4  ;;  %s7744_s19 = sand.u32 1, %s7589_s12  }
  0x33   : > { %s7740_s17 = scalar_select %p98_p7, %s7585_s11, %s100_s30  }
  0x34   : > { %6600 = dma.hbm_to_vmem [thread:$0]  (!%p7702_p8), %s9258_s8, 4096, %s322_s20, [#allocation15], %s9235_s22, %s9235_s22, %s9237_s23  }
  0x35   : > { %9260 = sst [smem:[#allocation25_spill]] %s7740_s17  ;;  %p109_p11 = por %p108_p10, %p107_p3 }
  0x36   : > { %s7747_s21 = sand.u32 1, %s7585_s11   ;;  %s6395_s24 = sshll.u32 %s7589_s12, 9 }
  0x37   : > { %s5922_s20 = sshll.u32 %s7747_s21, 5  ;;  %s9261_s3 = sld [smem:[#allocation28_spill]] }
  0x38   : > { %s339_s28 = scalar_lea.vmem [#allocation8], %s5922_s20  ;;  %p7758_p13 = pnand %p6621_p12, %p109_p11 }
  0x39   : > { %s346_s30 = sshll.u32 %s339_s28, 4  ;;  %s7756_s30 = int_to_ptr.vmem [resolvable:$true] %s346_s30 }
  0x3a   : > { %p7768_p2 = pneg %p7758_p13 }
  0x3d   : > { %s7754_s27 = scalar_lea.hbm %s9261_s3, %s6395_s24  ;;  %s7348_s26 = scalar_lea.hbm %s9261_s3, 2048 }
  0x3e   : > { %s7343_s1 = scalar_lea.hbm %s7754_s27, 512  ;;  %p7349_p10 = scmp.lt.s32.totalorder %s7754_s27, %s9261_s3 }
  0x3f   : > { %p7344_p0 = scmp.ne.s32.totalorder %s7754_s27, %s7343_s1  ;;  %p7350_p11 = scmp.lt.s32.totalorder %s7348_s26, %s7343_s1 }
  0x41   : > { %p7346_p3 = pnand %p7768_p2, %p7344_p0  ;;  %p7351_p12 = por %p7350_p11, %p7349_p10 }
  0x43   : > { %p7347_p7 = pneg %p7346_p3 }
  0x45   : > { %p7352_p4 = pnand %p7351_p12, %p7347_p7 }
  0x47   : > { %7355 = shalt.err (!%p7352_p4)
}
  0x48   : > { %s7356_s22 = scalar_lea.vmem %s7756_s30, 512  ;;  %s7595_s23 = smov [#allocation8]  }
  0x49   : > { %p7357_p1 = scmp.ne.s32.totalorder %s7756_s30, %s7356_s22  ;;  %s7361_s20 = sshll.u32 %s7595_s23, 4  ;;  %s7362_s20 = int_to_ptr.vmem [resolvable:$false] %s7361_s20 }
  0x4a   : > { %s7363_s25 = scalar_lea.vmem %s7362_s20, 1024  ;;  %p7364_p9 = scmp.lt.s32.totalorder %s7756_s30, %s7362_s20 }
  0x4b   : > { %p7359_p0 = pnand %p7357_p1, %p7768_p2  ;;  %p7365_p5 = scmp.lt.s32.totalorder %s7363_s25, %s7356_s22 }
  0x4d   : > { %p7360_p3 = pneg %p7359_p0  ;;  %p7366_p6 = por %p7365_p5, %p7364_p9 }
  0x4f   : > { %p7367_p8 = pnand %p7366_p6, %p7360_p3 }
  0x51   : > { %7370 = shalt.err (!%p7367_p8)
}
  0x52   : > { %s7596_s1 = smov 256   ;;  %s7597_s8 = smov 16  }
  0x53   : > { %s9264_s23 = scalar_lea.sflag [#allocation9], %s7744_s19  ;;  %s6396_s22 = sshll.u32 %s7589_s12, 12 }
  0x54   : > { %6604 = dma.hbm_to_vmem [thread:$0]  (!%p7758_p13), %s7754_s27, 512, %s7756_s30, %s9264_s23, %s7596_s1, %s7596_s1, %s7597_s8  }
  0x55   : > { %s9265_s26 = sshll.u32 %s7747_s21, 8  ;;  %s7801_s17 = scalar_lea.hbm %s9230_s5, %s6396_s22 }
  0x56   : > { %s381_s28 = scalar_lea.vmem [#allocation11], %s9265_s26  ;;  %s9248_s11 = scalar_lea.sflag [#allocation12], %s7744_s19 }
  0x57   : > { %s388_s20 = sshll.u32 %s381_s28, 4  ;;  %s7371_s29 = scalar_lea.hbm %s7801_s17, 4096  ;;  %s7803_s20 = int_to_ptr.vmem [resolvable:$true] %s388_s20 }
  0x58   : > { %p7372_p1 = scmp.ne.s32.totalorder %s7801_s17, %s7371_s29  ;;  %s7376_s23 = scalar_lea.hbm %s9230_s5, 16384 }
  0x59   : > { %p7377_p6 = scmp.lt.s32.totalorder %s7801_s17, %s9230_s5  ;;  %p7378_p8 = scmp.lt.s32.totalorder %s7376_s23, %s7371_s29 }
  0x5a   : > { %p7374_p4 = pnand %p7372_p1, %p7768_p2 }
  0x5b   : > { %p7379_p9 = por %p7378_p8, %p7377_p6 }
  0x5c   : > { %p7375_p5 = pneg %p7374_p4 }
  0x5e   : > { %p7380_p7 = pnand %p7379_p9, %p7375_p5 }
  0x60   : > { %7383 = shalt.err (!%p7380_p7)
}
  0x61   : > { %s7384_s3 = scalar_lea.vmem %s7803_s20, 4096  ;;  %s7598_s22 = smov [#allocation11]  }
  0x62   : > { %p7385_p10 = scmp.ne.s32.totalorder %s7803_s20, %s7384_s3  ;;  %s7389_s25 = sshll.u32 %s7598_s22, 4  ;;  %s7390_s25 = int_to_ptr.vmem [resolvable:$false] %s7389_s25 }
  0x63   : > { %s7391_s27 = scalar_lea.vmem %s7390_s25, 8192  ;;  %p7392_p0 = scmp.lt.s32.totalorder %s7803_s20, %s7390_s25 }
  0x64   : > { %p7387_p11 = pnand %p7385_p10, %p7768_p2  ;;  %p7393_p3 = scmp.lt.s32.totalorder %s7391_s27, %s7384_s3 }
  0x66   : > { %p7388_p12 = pneg %p7387_p11  ;;  %p7394_p1 = por %p7393_p3, %p7392_p0 }
  0x68   : > { %p7395_p4 = pnand %p7394_p1, %p7388_p12 }
  0x6a   : > { %7398 = shalt.err (!%p7395_p4)
}
  0x6b   : > { %s9266_s29 = smov 8   ;;  %s9267_s30 = smov 128  }
  0x6c   : > { %6610 = dma.hbm_to_vmem [thread:$0]  (!%p7758_p13), %s7801_s17, 4096, %s7803_s20, %s9248_s11, %s9267_s30, %s9267_s30, %s9266_s29  }
  0x6d   : > { %s7599_s23 = smov [#allocation3]   ;;  %s7600_s28 = smov [#allocation7]  }
  0x6e   : > { %s282_s26 = sshll.u32 %s7599_s23, 4  ;;  %s308_s22 = sshll.u32 %s7600_s28, 4  ;;  %s283_s26 = int_to_ptr.vmem [resolvable:$true] %s282_s26  ;;  %s309_s22 = int_to_ptr.vmem [resolvable:$true] %s308_s22 }
  0x6f   : > { %s7410_s3 = scalar_lea.vmem %s283_s26, 256  ;;  %p9268_p6 = scmp.ne.s32.totalorder %s9256_s18, 0 }
  0x70   : > { %p7411_p5 = scmp.ne.s32.totalorder %s283_s26, %s7410_s3  ;;  %p7418_p10 = scmp.lt.s32.totalorder %s283_s26, %s283_s26 }
  0x71   : > { %p9269_p8 = pneg %p9268_p6  ;;  %p7419_p11 = scmp.lt.s32.totalorder %s7410_s3, %s7410_s3 }
  0x73   : > { %p7413_p9 = pnand %p7411_p5, %p9269_p8  ;;  %p7420_p12 = por %p7419_p11, %p7418_p10 }
  0x75   : > { %p7414_p7 = pneg %p7413_p9 }
  0x77   : > { %p7421_p0 = pnand %p7420_p12, %p7414_p7 }
  0x79   : > { %7424 = shalt.err (!%p7421_p0)
}
  0x7a   : > { %s9270_s0 = sld [smem:[#allocation26_spill]]  ;;  %s7436_s25 = scalar_lea.vmem %s309_s22, 768 }
  0x7b   : > { %p7437_p3 = scmp.ne.s32.totalorder %s309_s22, %s7436_s25  ;;  %p9271_p1 = pmov %p9269_p8 }
  0x7c   : > { %p7444_p8 = scmp.lt.s32.totalorder %s309_s22, %s309_s22  ;;  %p7445_p9 = scmp.lt.s32.totalorder %s7436_s25, %s7436_s25 }
  0x7d   : > { %p7439_p4 = pnand %p7437_p3, %p9271_p1 }
  0x7e   : > { %p7446_p7 = por %p7445_p9, %p7444_p8 }
  0x7f   : > { %p7440_p5 = pneg %p7439_p4 }
  0x80   : > { %6591 = dma.hbm_to_vmem [thread:$0]  (!%p9268_p6), %s9270_s0, 256, %s283_s26, [#allocation4], %s9267_s30, %s9267_s30, %s9266_s29  }
  0x81   : > { %p7447_p10 = pnand %p7446_p7, %p7440_p5 }
  0x83   : > { %7450 = shalt.err (!%p7447_p10)
}
  0x84   : > { %6597 = dma.hbm_to_vmem [thread:$0]  (!%p9268_p6), %s9227_s2, 768, %s309_s22, [#allocation6], %s7596_s1, %s7596_s1, %s7597_s8  }
  0x85   : > { %s6559_s26 = smul.u32 768, %s7747_s21  ;;  %s5929_s3 = sshll.u32 %s7747_s21, 10 }
  0x86   : > { %s6560_s28 = smul.u32 12288, %s7589_s12  ;;  %s7456_s22 = scalar_lea.hbm %s9229_s4, 49152 }
  0x87   : > { %s360_s18 = scalar_lea.vmem [#allocation10], %s6559_s26 }
  0x88   : > { %s7859_s25 = scalar_lea.hbm %s9229_s4, %s6560_s28  ;;  %s367_s11 = sshll.u32 %s360_s18, 4  ;;  %s7861_s11 = int_to_ptr.vmem [resolvable:$true] %s367_s11 }
  0x89   : > { %s7451_s27 = scalar_lea.hbm %s7859_s25, 12288  ;;  %p7457_p0 = scmp.lt.s32.totalorder %s7859_s25, %s9229_s4 }
  0x8a   : > { %p7452_p11 = scmp.ne.s32.totalorder %s7859_s25, %s7451_s27  ;;  %p7458_p3 = scmp.lt.s32.totalorder %s7456_s22, %s7451_s27 }
  0x8c   : > { %p7454_p12 = pnand %p7452_p11, %p7768_p2  ;;  %p7459_p1 = por %p7458_p3, %p7457_p0 }
  0x8e   : > { %p7455_p6 = pneg %p7454_p12 }
  0x90   : > { %p7460_p4 = pnand %p7459_p1, %p7455_p6 }
  0x92   : > { %7463 = shalt.err (!%p7460_p4)
}
  0x93   : > { %s7464_s26 = scalar_lea.vmem %s7861_s11, 12288  ;;  %s7601_s28 = smov [#allocation10]  }
  0x94   : > { %p7465_p5 = scmp.ne.s32.totalorder %s7861_s11, %s7464_s26  ;;  %s7469_s20 = sshll.u32 %s7601_s28, 4  ;;  %s7470_s20 = int_to_ptr.vmem [resolvable:$false] %s7469_s20 }
  0x95   : > { %s7471_s18 = scalar_lea.vmem %s7470_s20, 24576  ;;  %p7472_p7 = scmp.lt.s32.totalorder %s7861_s11, %s7470_s20 }
  0x96   : > { %p7467_p8 = pnand %p7465_p5, %p7768_p2  ;;  %p7473_p10 = scmp.lt.s32.totalorder %s7471_s18, %s7464_s26 }
  0x98   : > { %p7468_p9 = pneg %p7467_p8  ;;  %p7474_p11 = por %p7473_p10, %p7472_p7 }
  0x9a   : > { %p7475_p12 = pnand %p7474_p11, %p7468_p9 }
  0x9c   : > { %7478 = shalt.err (!%p7475_p12)
}
  0x9d   : > { %s7602_s27 = smov 384   ;;  %s7603_s1 = smov 24  }
  0x9e   : > { %s9272_s8 = scalar_lea.sflag [#allocation9], %s7744_s19  ;;  %s6397_s22 = sshll.u32 %s7589_s12, 14 }
  0x9f   : > { %6607 = dma.hbm_to_vmem [thread:$0]  (!%p7758_p13), %s7859_s25, 12288, %s7861_s11, %s9272_s8, %s7602_s27, %s7602_s27, %s7603_s1  }
  0xa0   : > { %s402_s23 = scalar_lea.vmem [#allocation13], %s5929_s3  ;;  %s7893_s20 = scalar_lea.hbm %s9231_s6, %s6397_s22 }
  0xa1   : > { %s409_s17 = sshll.u32 %s402_s23, 4  ;;  %s7479_s18 = scalar_lea.hbm %s7893_s20, 16384  ;;  %s7895_s17 = int_to_ptr.vmem [resolvable:$true] %s409_s17 }
  0xa2   : > { %p7480_p6 = scmp.ne.s32.totalorder %s7893_s20, %s7479_s18  ;;  %s7484_s27 = scalar_lea.hbm %s9231_s6, 65536 }
  0xa3   : > { %p7485_p1 = scmp.lt.s32.totalorder %s7893_s20, %s9231_s6  ;;  %p7486_p4 = scmp.lt.s32.totalorder %s7484_s27, %s7479_s18 }
  0xa4   : > { %p7482_p0 = pnand %p7480_p6, %p7768_p2 }
  0xa5   : > { %p7487_p5 = por %p7486_p4, %p7485_p1 }
  0xa6   : > { %p7483_p3 = pneg %p7482_p0 }
  0xa8   : > { %p7488_p8 = pnand %p7487_p5, %p7483_p3 }
  0xaa   : > { %7491 = shalt.err (!%p7488_p8)
}
  0xab   : > { %s7492_s23 = scalar_lea.vmem %s7895_s17, 16384  ;;  %s7604_s26 = smov [#allocation13]  }
  0xac   : > { %p7493_p9 = scmp.ne.s32.totalorder %s7895_s17, %s7492_s23  ;;  %s7497_s28 = sshll.u32 %s7604_s26, 4  ;;  %s7498_s28 = int_to_ptr.vmem [resolvable:$false] %s7497_s28 }
  0xad   : > { %s7499_s11 = scalar_lea.vmem %s7498_s28, 32768  ;;  %p7500_p11 = scmp.lt.s32.totalorder %s7895_s17, %s7498_s28 }
  0xae   : > { %p7495_p7 = pnand %p7493_p9, %p7768_p2  ;;  %p7501_p12 = scmp.lt.s32.totalorder %s7499_s11, %s7492_s23 }
  0xb0   : > { %p7496_p10 = pneg %p7495_p7  ;;  %p7502_p6 = por %p7501_p12, %p7500_p11 }
  0xb2   : > { %p7503_p0 = pnand %p7502_p6, %p7496_p10 }
  0xb4   : > { %7506 = shalt.err (!%p7503_p0)
}
  0xb5   : > { %s7605_s18 = smov 512   ;;  %s7606_s25 = smov 32  }
  0xb6   : > { %s9273_s27 = scalar_lea.sflag [#allocation12], %s7744_s19  ;;  %s7924_s23 = scalar_lea.hbm %s9232_s7, %s6397_s22 }
  0xb7   : > { %6613 = dma.hbm_to_vmem [thread:$0]  (!%p7758_p13), %s7893_s20, 16384, %s7895_s17, %s9273_s27, %s7605_s18, %s7605_s18, %s7606_s25  }
  0xb8   : > { %s423_s26 = scalar_lea.vmem [#allocation14], %s5929_s3  ;;  %s420_s11 = scalar_lea.sflag [#allocation15], %s7744_s19 }
  0xb9   : > { %s430_s28 = sshll.u32 %s423_s26, 4  ;;  %s7507_s0 = scalar_lea.hbm %s7924_s23, 16384  ;;  %s7928_s28 = int_to_ptr.vmem [resolvable:$true] %s430_s28 }
  0xba   : > { %p7508_p3 = scmp.ne.s32.totalorder %s7924_s23, %s7507_s0  ;;  %s7512_s20 = scalar_lea.hbm %s9232_s7, 65536 }
  0xbb   : > { %p7513_p5 = scmp.lt.s32.totalorder %s7924_s23, %s9232_s7  ;;  %p7514_p8 = scmp.lt.s32.totalorder %s7512_s20, %s7507_s0 }
  0xbc   : > { %p7510_p1 = pnand %p7508_p3, %p7768_p2 }
  0xbd   : > { %p7515_p9 = por %p7514_p8, %p7513_p5 }
  0xbe   : > { %p7511_p4 = pneg %p7510_p1 }
  0xc0   : > { %p7516_p7 = pnand %p7515_p9, %p7511_p4 }
  0xc2   : > { %7519 = shalt.err (!%p7516_p7)
}
  0xc3   : > { %s7520_s19 = scalar_lea.vmem %s7928_s28, 16384  ;;  %s7607_s21 = smov [#allocation14]  }
  0xc4   : > { %p7521_p10 = scmp.ne.s32.totalorder %s7928_s28, %s7520_s19  ;;  %s7525_s3 = sshll.u32 %s7607_s21, 4  ;;  %s7526_s3 = int_to_ptr.vmem [resolvable:$false] %s7525_s3 }
  0xc5   : > { %s7527_s25 = scalar_lea.vmem %s7526_s3, 32768  ;;  %p7528_p6 = scmp.lt.s32.totalorder %s7928_s28, %s7526_s3 }
  0xc6   : > { %p7523_p11 = pnand %p7521_p10, %p7768_p2  ;;  %p7529_p0 = scmp.lt.s32.totalorder %s7527_s25, %s7520_s19 }
  0xc8   : > { %p7524_p12 = pneg %p7523_p11  ;;  %p7530_p3 = por %p7529_p0, %p7528_p6 }
  0xca   : > { %p7531_p1 = pnand %p7530_p3, %p7524_p12 }
  0xcc   : > { %7534 = shalt.err (!%p7531_p1)
}
  0xcd   : > { %6616 = dma.hbm_to_vmem [thread:$0]  (!%p7758_p13), %s7924_s23, 16384, %s7928_s28, %s420_s11, %s9267_s30, %s9267_s30, %s9266_s29  }
  0xce   : > { %p9274_p2 = scmp.ne.s32.totalorder %s9255_s15, 0 }
  0xcf   : > { %p9275_p4 = scmp.eq.s32.totalorder (!%p9274_p2), %s7681_s13, 0 }
  0xd0   : > { %442 = sbr.rel (%p9274_p2) target bundleno = 5480 (0x1568), region = 56 }
  0xd5   : > { %7552 = dma.done.wait (%p9275_p4), [#allocation4], 256   ;;  %p9276_p5 = pmov %p9275_p4 }
  0xd6   : > { %p9277_p8 = pmov %p9275_p4 }
  0xd7   : > { %7554 = vsyncadd (%p9276_p5), [#allocation4], 4294967040 }
  0xd8   : > { %7556 = dma.done.wait (%p9277_p8), [#allocation6], 1024   ;;  %p9278_p9 = pmov %p9275_p4 }
  0xd9   : > { %s456_s0 = sand.u32 1, %s7681_s13   ;;  %s458_s16 = sand.u32 1, %s7581_s10  }
  0xda   : > { %7558 = vsyncadd (%p9278_p9), [#allocation6], 4294966272  ;;  %s5939_s24 = sshll.u32 %s458_s16, 5  ;;  %s457_s15 = scalar_lea.sflag [#allocation9], %s456_s0 }
  0xdb   : > { %s7966_s29 = scalar_lea.vmem [#allocation8], %s5939_s24  ;;  %p9279_p13 = scmp.ne.s32.totalorder %s9254_s14, 0 }
  0xdd   : > { %7560 = dma.done.wait (%p9279_p13), %s457_s15, 12800  }
  0xde   : > { %7562 = vsyncadd (%p9279_p13), %s457_s15, 4294954496  ;;  %s6561_s30 = smul.u32 768, %s458_s16  ;;  %s5940_s27 = sshll.u32 %s458_s16, 8 }
  0xdf   : > { %s475_s8 = scalar_lea.sflag [#allocation12], %s456_s0  ;;  %s7974_s23 = scalar_lea.vmem [#allocation11], %s5940_s27 }
  0xe0   : > { %s7972_s1 = scalar_lea.vmem [#allocation10], %s6561_s30 }
  0xe1   : > { %7564 = dma.done.wait (%p9279_p13), %s475_s8, 20480  }
  0xe2   : > { %7566 = vsyncadd (%p9279_p13), %s475_s8, 4294946816  ;;  %s5941_s26 = sshll.u32 %s458_s16, 10  ;;  %s493_s11 = scalar_lea.sflag [#allocation15], %s456_s0 }
  0xe3   : > { %s7980_s28 = scalar_lea.vmem [#allocation13], %s5941_s26  ;;  %s7982_s12 = scalar_lea.vmem [#allocation14], %s5941_s26 }
  0xe4   : > { %7568 = dma.done.wait (%p9279_p13), %s493_s11, 16384  }
  0xe5   : > { %7570 = vsyncadd (%p9279_p13), %s493_s11, 4294950912  ;;  %p9280_p7 = pmov %p9275_p4 }
  0xe6   : > { %p9281_p10 = pmov %p9275_p4 }
  0xe7   : > { %7572 = dma.done.wait (%p9280_p7), [#allocation15], 4096  }
  0xe8   : > { %7574 = vsyncadd (%p9281_p10), [#allocation15], 4294963200  ;;  %p9282_p11 = scmp.ne.s32.totalorder %s7681_s13, 0 }
  0xea   : > { %554 = sbr.rel (%p9282_p11) target bundleno = 758 (0x2f6), region = 96 }
  0xef   : > { %v6674_v0 = vld [vmem:[#allocation5 + $0x4] ss:$8 sps:$4 sm:$0xff]   ;;  %v562_v1 = vlaneseq  ;;  %v6676_v2 = vld [vmem:[#allocation5] ss:$8 sps:$4 sm:$0xff]   ;;  %v7608_v3 = vmov 0   ;;  %v555_v4 = vld [vmem:[#allocation3] sm:$0xff] }
  0xf0   : > { %618 = vmatprep.mubr.bf16.mxu0 %v7608_v3  ;;  %v556_v5 = vld [vmem:[#allocation3 + $0x8] sm:$0xff]  ;;  %600 = vmatprep.subr.bf16.mxu0 %v6674_v0  ;;  %vm582_vm0 = vcmask 130048   ;;  %v637_v11 = vld [vmem:[#allocation7 + $0x10] sm:$0xff]  ;;  %v638_v12 = vld [vmem:[#allocation7 + $0x18] sm:$0xff] }
  0xf1   : > { %v557_v6 = vpack.c.bf16 %v556_v5, %v555_v4  ;;  %v563_v7 = vshrl.u32 %v562_v1, 7  ;;  %601 = vmatpush1.bf16.msra.mxu0 %v6676_v2  ;;  %v636_v8 = vld [vmem:[#allocation7 + $0x1] ss:$8 sm:$0x3] }
  0xf2   : > { %v560_v18 = vld [vmem:[#allocation7] ss:$8 sm:$0x3]  ;;  %v653_v61 = vld [vmem:[#allocation7 + $0x2] ss:$8 sm:$0x3] }
  0xf3   : > { %v7994_v9 = vsub.s32 0, %v563_v7  ;;  %v7996_v10 = vsub.s32 1, %v563_v7  ;;  %v629_v25 = vld [vmem:[#allocation7 + $0x20] sm:$0xff]  ;;  %v630_v27 = vld [vmem:[#allocation7 + $0x28] sm:$0xff] }
  0xf4   : > { %5947 = vmatmul.mubr.msk.bf16.vlgmr.msra.gmra.mxu0 %vm582_vm0, %v557_v6  ;;  %v655_v62 = vld [vmem:[#allocation7 + $0x3] ss:$8 sm:$0x3] }
  0xf5   : > { %v643_v13 = vrot.slane %v636_v8, %v7994_v9  ;;  %v647_v14 = vrot.slane %v636_v8, %v7996_v10  ;;  %v565_v19 = vrot.slane %v560_v18, %v7994_v9  ;;  %v569_v21 = vrot.slane %v560_v18, %v7996_v10 }
  0xf6   : > { %v709_v63 = vrot.slane %v653_v61, %v7994_v9  ;;  %v713_v0 = vrot.slane %v653_v61, %v7996_v10  ;;  %v726_v2 = vrot.slane %v655_v62, %v7994_v9  ;;  %v730_v3 = vrot.slane %v655_v62, %v7996_v10 }
  0xf7   : > { %v650_v15 = vadd.f32 %v643_v13, %v637_v11  ;;  %v651_v16 = vadd.f32 %v647_v14, %v638_v12 }
  0xf9   : > { %v656_v17 = vadd.f32 %v651_v16, %v650_v15 }
  0xfb   : > { %657 = vadd.xlane.f32.xlu0 %v656_v17 }
 0x184   : > { %v658_v20 = vpop.xlane.xlu0 %657 }
 0x185   : > { %v666_v23 = vmul.f32 0.00390625, %v658_v20 }
 0x187   : > { %v669_v30 = vsub.f32 %v650_v15, %v666_v23  ;;  %v670_v34 = vsub.f32 %v651_v16, %v666_v23 }
 0x189   : > { %v675_v40 = vmul.f32 %v669_v30, %v669_v30  ;;  %v676_v41 = vmul.f32 %v670_v34, %v670_v34 }
 0x18b   : > { %v681_v43 = vadd.f32 %v676_v41, %v675_v40 }
 0x1b4   : > { %v620_v22 = vpop.f32.mrf.mxu0 }
 0x1b5   : > { %v621_v24 = vadd.f32 %v620_v22, %v565_v19 }
 0x1b6   : > { %v622_v26 = vpop.f32.mrf.mxu0 }
 0x1b7   : > { %v623_v28 = vadd.f32 %v622_v26, %v569_v21  ;;  %v631_v31 = vadd.f32 %v629_v25, %v621_v24 }
 0x1b8   : > { %v624_v29 = vpop.f32.mrf.mxu0 }
 0x1b9   : > { %v632_v32 = vadd.f32 %v630_v27, %v623_v28  ;;  %v625_v33 = vadd.f32 %v624_v29, %v565_v19 }
 0x1ba   : > { %v626_v35 = vpop.f32.mrf.mxu0 }
 0x1bb   : > { %v627_v36 = vadd.f32 %v626_v35, %v569_v21  ;;  %v659_v37 = vadd.f32 %v632_v32, %v631_v31  ;;  %v633_v38 = vadd.f32 %v629_v25, %v625_v33 }
 0x1bd   : > { %660 = vadd.xlane.f32.xlu0 %v659_v37  ;;  %v634_v39 = vadd.f32 %v630_v27, %v627_v36 }
 0x1bf   : > { %v662_v42 = vadd.f32 %v634_v39, %v633_v38 }
 0x1c1   : > { %663 = vadd.xlane.f32.xlu1 %v662_v42 }
 0x1c5   : > { %682 = vadd.xlane.f32.xlu1 %v681_v43 }
 0x246   : > { %v661_v44 = vpop.xlane.xlu0 %660 }
 0x247   : > { %v667_v45 = vmul.f32 0.00390625, %v661_v44 }
 0x249   : > { %v671_v46 = vsub.f32 %v631_v31, %v667_v45  ;;  %v672_v47 = vsub.f32 %v632_v32, %v667_v45 }
 0x24a   : > { %v664_v48 = vpop.xlane.xlu1 %663 }
 0x24b   : > { %v668_v49 = vmul.f32 0.00390625, %v664_v48  ;;  %v677_v50 = vmul.f32 %v671_v46, %v671_v46  ;;  %v678_v51 = vmul.f32 %v672_v47, %v672_v47 }
 0x24d   : > { %v673_v52 = vsub.f32 %v633_v38, %v668_v49  ;;  %v674_v53 = vsub.f32 %v634_v39, %v668_v49  ;;  %v684_v54 = vadd.f32 %v678_v51, %v677_v50 }
 0x24e   : > { %v683_v55 = vpop.xlane.xlu1 %682 }
 0x24f   : > { %v690_v56 = vmul.f32 0.00390625, %v683_v55  ;;  %685 = vadd.xlane.f32.xlu0 %v684_v54  ;;  %v679_v57 = vmul.f32 %v673_v52, %v673_v52  ;;  %v680_v58 = vmul.f32 %v674_v53, %v674_v53 }
 0x251   : > { %v693_v59 = vadd.f32 1e-05, %v690_v56  ;;  %v687_v60 = vadd.f32 %v680_v58, %v679_v57 }
 0x253   : > { %6677 = vrsqrt.f32 %v693_v59  ;;  %688 = vadd.xlane.f32.xlu1 %v687_v60 }
 0x260   : > { %v6678_v1 = vpop.eup %6677 }
 0x261   : > { %v699_v4 = vmul.f32 %v6678_v1, %v669_v30  ;;  %v700_v5 = vmul.f32 %v6678_v1, %v670_v34 }
 0x263   : > { %v716_v6 = vmul.f32 %v709_v63, %v699_v4  ;;  %v717_v7 = vmul.f32 %v713_v0, %v700_v5 }
 0x265   : > { %v733_v8 = vadd.f32 %v726_v2, %v716_v6  ;;  %v734_v11 = vadd.f32 %v730_v3, %v717_v7 }
 0x267   : > { %739 = vst [vmem:[#allocation2 + $0x30] sm:$0xff] %v733_v8  ;;  %740 = vst [vmem:[#allocation2] sm:$0xff] %v734_v11 }
 0x268   : > { %743 = vst [vmem:[#allocation2 + $0x8] sm:$0xff] %v733_v8  ;;  %744 = vst [vmem:[#allocation2 + $0x20] sm:$0xff] %v734_v11 }
 0x2d8   : > { %v686_v12 = vpop.xlane.xlu0 %685 }
 0x2d9   : > { %v691_v13 = vmul.f32 0.00390625, %v686_v12 }
 0x2db   : > { %v694_v14 = vadd.f32 1e-05, %v691_v13 }
 0x2dc   : > { %v689_v15 = vpop.xlane.xlu1 %688 }
 0x2dd   : > { %6679 = vrsqrt.f32 %v694_v14  ;;  %v692_v16 = vmul.f32 0.00390625, %v689_v15 }
 0x2df   : > { %v695_v17 = vadd.f32 1e-05, %v692_v16 }
 0x2e1   : > { %6681 = vrsqrt.f32 %v695_v17 }
 0x2ea   : > { %v6680_v9 = vpop.eup %6679 }
 0x2eb   : > { %v701_v10 = vmul.f32 %v6680_v9, %v671_v46  ;;  %v702_v18 = vmul.f32 %v6680_v9, %v672_v47 }
 0x2ed   : > { %v718_v19 = vmul.f32 %v709_v63, %v701_v10  ;;  %v719_v20 = vmul.f32 %v713_v0, %v702_v18 }
 0x2ee   : > { %v6682_v21 = vpop.eup %6681 }
 0x2ef   : > { %v735_v22 = vadd.f32 %v726_v2, %v718_v19  ;;  %v736_v23 = vadd.f32 %v730_v3, %v719_v20  ;;  %v703_v24 = vmul.f32 %v6682_v21, %v673_v52  ;;  %v704_v25 = vmul.f32 %v6682_v21, %v674_v53 }
 0x2f1   : > { %741 = vst [vmem:[#allocation2 + $0x18] sm:$0xff] %v735_v22  ;;  %742 = vst [vmem:[#allocation2 + $0x10] sm:$0xff] %v736_v23  ;;  %v720_v26 = vmul.f32 %v709_v63, %v703_v24  ;;  %v721_v27 = vmul.f32 %v713_v0, %v704_v25 }
 0x2f3   : > { %v737_v28 = vadd.f32 %v726_v2, %v720_v26  ;;  %v738_v29 = vadd.f32 %v730_v3, %v721_v27 }
 0x2f5   : > { %745 = vst [vmem:[#allocation2 + $0x28] sm:$0xff] %v737_v28  ;;  %746 = vst [vmem:[#allocation2 + $0x38] sm:$0xff] %v738_v29 }
 0x2f6 PF: > { %v8006_v30 = vld [vmem:[#allocation2 + $0x30] sm:$0xff]  ;;  %v8008_v31 = vld [vmem:[#allocation2] sm:$0xff]  ;;  %v8010_v32 = vld [vmem:[#allocation2 + $0x8] sm:$0xff]  ;;  %vm7610_vm1 = vmmov 0   ;;  %vm1669_vm2 = vcmask 523264   ;;  %vm1764_vm3 = vcmask 130048  }
 0x2f7   : > { %v758_v33 = vadd.f32 %v8008_v31, %v8006_v30  ;;  %v8014_v34 = vld [vmem:[#allocation2 + $0x20] sm:$0xff]  ;;  %v6709_v46 = vld [vmem:[%s7972_s1 + $0x124] ss:$24 sps:$4 sm:$0xff]   ;;  %v6713_v48 = vld [vmem:[%s7972_s1 + $0x120] ss:$24 sps:$4 sm:$0xff]   ;;  %s7611_s14 = smov 64  }
 0x2f8   : > { %v8016_v35 = vld [vmem:[#allocation2 + $0x18] sm:$0xff]  ;;  %v8018_v36 = vld [vmem:[#allocation2 + $0x10] sm:$0xff]  ;;  %v764_v37 = vadd.f32 %v8014_v34, %v8010_v32  ;;  %v6705_v43 = vld [vmem:[%s7972_s1 + $0x15c] ss:$24 sps:$4 sm:$0xff]   ;;  %p6360_p12 = scmp.ne.s32.totalorder %s7681_s13, 3 }
 0x2f9   : > { %759 = vadd.xlane.f32.xlu0 %v758_v33  ;;  %v761_v40 = vadd.f32 %v8018_v36, %v8016_v35  ;;  %v6703_v42 = vld [vmem:[%s7972_s1 + $0x154] ss:$24 sps:$4 sm:$0xff]   ;;  %v6707_v44 = vld [vmem:[%s7972_s1 + $0x150] ss:$24 sps:$4 sm:$0xff]   ;;  %1494 = vmatprep.subr.bf16.mxu1 %v6705_v43  ;;  %v6721_v54 = vld [vmem:[%s7972_s1 + $0xc4] ss:$24 sps:$4 sm:$0xff]  }
 0x2fa   : > { %765 = vadd.xlane.f32.xlu1 %v764_v37  ;;  %v6708_v45 = vld [vmem:[%s7972_s1 + $0x158] ss:$24 sps:$4 sm:$0xff]   ;;  %v6711_v47 = vld [vmem:[%s7972_s1 + $0x12c] ss:$24 sps:$4 sm:$0xff]   ;;  %1441 = vmatprep.subr.bf16.mxu0 %v6703_v42  ;;  %v6714_v49 = vld [vmem:[%s7972_s1 + $0x128] ss:$24 sps:$4 sm:$0xff]  }
 0x2fb   : > { %1442 = vmatpush1.bf16.msra.mxu0 %v6707_v44  ;;  %1495 = vmatpush1.bf16.msra.mxu1 %v6708_v45  ;;  %v6715_v50 = vld [vmem:[%s7972_s1 + $0xf4] ss:$24 sps:$4 sm:$0xff]   ;;  %v6719_v52 = vld [vmem:[%s7972_s1 + $0xf0] ss:$24 sps:$4 sm:$0xff]   ;;  %v6725_v56 = vld [vmem:[%s7972_s1 + $0xc0] ss:$24 sps:$4 sm:$0xff]  }
 0x2fc   : > { %v8022_v38 = vld [vmem:[#allocation2 + $0x28] sm:$0xff]  ;;  %v8024_v39 = vld [vmem:[#allocation2 + $0x38] sm:$0xff]  ;;  %1443 = vmatprep.subr.bf16.mxu0 %v6709_v46  ;;  %1496 = vmatprep.subr.bf16.mxu1 %v6711_v47 }
 0x2fd   : > { %v767_v41 = vadd.f32 %v8024_v39, %v8022_v38  ;;  %762 = vadd.xlane.f32.xlu0 %v761_v40  ;;  %v6717_v51 = vld [vmem:[%s7972_s1 + $0xfc] ss:$24 sps:$4 sm:$0xff]   ;;  %v6720_v53 = vld [vmem:[%s7972_s1 + $0xf8] ss:$24 sps:$4 sm:$0xff]   ;;  %v6723_v55 = vld [vmem:[%s7972_s1 + $0xcc] ss:$24 sps:$4 sm:$0xff]  }
 0x2fe   : > { %v6726_v57 = vld [vmem:[%s7972_s1 + $0xc8] ss:$24 sps:$4 sm:$0xff]   ;;  %v6727_v58 = vld [vmem:[%s7972_s1 + $0x94] ss:$24 sps:$4 sm:$0xff]   ;;  %v6732_v61 = vld [vmem:[%s7972_s1 + $0x98] ss:$24 sps:$4 sm:$0xff]  }
 0x2ff   : > { %768 = vadd.xlane.f32.xlu1 %v767_v41  ;;  %1444 = vmatpush1.bf16.msra.mxu0 %v6713_v48  ;;  %v6729_v59 = vld [vmem:[%s7972_s1 + $0x9c] ss:$24 sps:$4 sm:$0xff]   ;;  %v6731_v60 = vld [vmem:[%s7972_s1 + $0x90] ss:$24 sps:$4 sm:$0xff]   ;;  %v6735_v63 = vld [vmem:[%s7972_s1 + $0x6c] ss:$24 sps:$4 sm:$0xff]  }
 0x300   : > { %1497 = vmatpush1.bf16.msra.mxu1 %v6714_v49  ;;  %1445 = vmatprep.subr.bf16.mxu0 %v6715_v50  ;;  %v6733_v62 = vld [vmem:[%s7972_s1 + $0x64] ss:$24 sps:$4 sm:$0xff]   ;;  %v6737_v0 = vld [vmem:[%s7972_s1 + $0x60] ss:$24 sps:$4 sm:$0xff]   ;;  %v6739_v2 = vld [vmem:[%s7972_s1 + $0x34] ss:$24 sps:$4 sm:$0xff]  }
 0x301   : > { %1498 = vmatprep.subr.bf16.mxu1 %v6717_v51  ;;  %v6738_v1 = vld [vmem:[%s7972_s1 + $0x68] ss:$24 sps:$4 sm:$0xff]   ;;  %v6741_v3 = vld [vmem:[%s7972_s1 + $0x3c] ss:$24 sps:$4 sm:$0xff]   ;;  %v6744_v5 = vld [vmem:[%s7972_s1 + $0x38] ss:$24 sps:$4 sm:$0xff]  }
 0x302   : > { %v6743_v4 = vld [vmem:[%s7972_s1 + $0x30] ss:$24 sps:$4 sm:$0xff]   ;;  %v6745_v6 = vld [vmem:[%s7972_s1 + $0x4] ss:$24 sps:$4 sm:$0xff]   ;;  %v6749_v8 = vld [vmem:[%s7972_s1] ss:$24 sps:$4 sm:$0xff]  }
 0x303   : > { %1446 = vmatpush1.bf16.msra.mxu0 %v6719_v52  ;;  %v6747_v7 = vld [vmem:[%s7972_s1 + $0xc] ss:$24 sps:$4 sm:$0xff]   ;;  %v6750_v11 = vld [vmem:[%s7972_s1 + $0x8] ss:$24 sps:$4 sm:$0xff]   ;;  %v6753_v13 = vld [vmem:[%s7972_s1 + $0x2dc] ss:$24 sps:$4 sm:$0xff]  }
 0x304   : > { %1499 = vmatpush1.bf16.msra.mxu1 %v6720_v53  ;;  %1447 = vmatprep.subr.bf16.mxu0 %v6721_v54  ;;  %v6751_v12 = vld [vmem:[%s7972_s1 + $0x2d4] ss:$24 sps:$4 sm:$0xff]   ;;  %v6755_v14 = vld [vmem:[%s7972_s1 + $0x2d0] ss:$24 sps:$4 sm:$0xff]   ;;  %v6757_v42 = vld [vmem:[%s7972_s1 + $0x2a4] ss:$24 sps:$4 sm:$0xff]  }
 0x305   : > { %1500 = vmatprep.subr.bf16.mxu1 %v6723_v55  ;;  %v6756_v15 = vld [vmem:[%s7972_s1 + $0x2d8] ss:$24 sps:$4 sm:$0xff]   ;;  %v6759_v43 = vld [vmem:[%s7972_s1 + $0x2ac] ss:$24 sps:$4 sm:$0xff]   ;;  %v6762_v45 = vld [vmem:[%s7972_s1 + $0x2a8] ss:$24 sps:$4 sm:$0xff]  }
 0x306   : > { %v6761_v44 = vld [vmem:[%s7972_s1 + $0x2a0] ss:$24 sps:$4 sm:$0xff]   ;;  %v6763_v46 = vld [vmem:[%s7972_s1 + $0x274] ss:$24 sps:$4 sm:$0xff]   ;;  %v6767_v48 = vld [vmem:[%s7972_s1 + $0x270] ss:$24 sps:$4 sm:$0xff]  }
 0x307   : > { %1448 = vmatpush1.bf16.msra.mxu0 %v6725_v56  ;;  %v6765_v47 = vld [vmem:[%s7972_s1 + $0x27c] ss:$24 sps:$4 sm:$0xff]   ;;  %v6768_v49 = vld [vmem:[%s7972_s1 + $0x278] ss:$24 sps:$4 sm:$0xff]   ;;  %v6771_v51 = vld [vmem:[%s7972_s1 + $0x24c] ss:$24 sps:$4 sm:$0xff]  }
 0x308   : > { %1501 = vmatpush1.bf16.msra.mxu1 %v6726_v57  ;;  %1449 = vmatprep.subr.bf16.mxu0 %v6727_v58  ;;  %v6769_v50 = vld [vmem:[%s7972_s1 + $0x244] ss:$24 sps:$4 sm:$0xff]   ;;  %v6773_v52 = vld [vmem:[%s7972_s1 + $0x240] ss:$24 sps:$4 sm:$0xff]   ;;  %v6775_v54 = vld [vmem:[%s7972_s1 + $0x214] ss:$24 sps:$4 sm:$0xff]  }
 0x309   : > { %1502 = vmatprep.subr.bf16.mxu1 %v6729_v59  ;;  %v6774_v53 = vld [vmem:[%s7972_s1 + $0x248] ss:$24 sps:$4 sm:$0xff]   ;;  %v6777_v55 = vld [vmem:[%s7972_s1 + $0x21c] ss:$24 sps:$4 sm:$0xff]   ;;  %v6780_v57 = vld [vmem:[%s7972_s1 + $0x218] ss:$24 sps:$4 sm:$0xff]  }
 0x30a   : > { %v6779_v56 = vld [vmem:[%s7972_s1 + $0x210] ss:$24 sps:$4 sm:$0xff]   ;;  %v6781_v58 = vld [vmem:[%s7972_s1 + $0x1e4] ss:$24 sps:$4 sm:$0xff]  }
 0x30b   : > { %1450 = vmatpush1.bf16.msra.mxu0 %v6731_v60  ;;  %v6783_v59 = vld [vmem:[%s7972_s1 + $0x1ec] ss:$24 sps:$4 sm:$0xff]   ;;  %v6785_v60 = vld [vmem:[%s7972_s1 + $0x1e0] ss:$24 sps:$4 sm:$0xff]  }
 0x30c   : > { %1503 = vmatpush1.bf16.msra.mxu1 %v6732_v61  ;;  %1451 = vmatprep.subr.bf16.mxu0 %v6733_v62  ;;  %v6786_v61 = vld [vmem:[%s7972_s1 + $0x1e8] ss:$24 sps:$4 sm:$0xff]   ;;  %v6787_v62 = vld [vmem:[%s7972_s1 + $0x1b4] ss:$24 sps:$4 sm:$0xff]  }
 0x30d   : > { %1504 = vmatprep.subr.bf16.mxu1 %v6735_v63  ;;  %v6789_v63 = vld [vmem:[%s7972_s1 + $0x1bc] ss:$24 sps:$4 sm:$0xff]  }
 0x30f   : > { %1452 = vmatpush1.bf16.msra.mxu0 %v6737_v0  ;;  %v6791_v0 = vld [vmem:[%s7972_s1 + $0x1b0] ss:$24 sps:$4 sm:$0xff]  }
 0x310   : > { %1505 = vmatpush1.bf16.msra.mxu1 %v6738_v1  ;;  %1453 = vmatprep.subr.bf16.mxu0 %v6739_v2  ;;  %v6792_v1 = vld [vmem:[%s7972_s1 + $0x1b8] ss:$24 sps:$4 sm:$0xff]   ;;  %v6793_v2 = vld [vmem:[%s7972_s1 + $0x184] ss:$24 sps:$4 sm:$0xff]  }
 0x311   : > { %1506 = vmatprep.subr.bf16.mxu1 %v6741_v3  ;;  %v6795_v3 = vld [vmem:[%s7972_s1 + $0x18c] ss:$24 sps:$4 sm:$0xff]  }
 0x313   : > { %1454 = vmatpush1.bf16.msra.mxu0 %v6743_v4  ;;  %v6797_v4 = vld [vmem:[%s7972_s1 + $0x180] ss:$24 sps:$4 sm:$0xff]  }
 0x314   : > { %1507 = vmatpush1.bf16.msra.mxu1 %v6744_v5  ;;  %1455 = vmatprep.subr.bf16.mxu0 %v6745_v6  ;;  %v6798_v5 = vld [vmem:[%s7972_s1 + $0x188] ss:$24 sps:$4 sm:$0xff]   ;;  %v6801_v6 = vld [vmem:[%s7972_s1 + $0x164] ss:$24 sps:$4 sm:$0xff]  }
 0x315   : > { %1508 = vmatprep.subr.bf16.mxu1 %v6747_v7 }
 0x317   : > { %1456 = vmatpush1.bf16.msra.mxu0 %v6749_v8 }
 0x318   : > { %1509 = vmatpush1.bf16.msra.mxu1 %v6750_v11  ;;  %1457 = vmatprep.subr.bf16.mxu0 %v6751_v12 }
 0x319   : > { %1510 = vmatprep.subr.bf16.mxu1 %v6753_v13 }
 0x31b   : > { %1458 = vmatpush2.bf16.msra.mxu0 %v6755_v14 }
 0x31c   : > { %1511 = vmatpush2.bf16.msra.mxu1 %v6756_v15  ;;  %1459 = vmatprep.subr.bf16.mxu0 %v6757_v42 }
 0x31d   : > { %1512 = vmatprep.subr.bf16.mxu1 %v6759_v43 }
 0x31f   : > { %1460 = vmatpush2.bf16.msra.mxu0 %v6761_v44 }
 0x320   : > { %1513 = vmatpush2.bf16.msra.mxu1 %v6762_v45  ;;  %1461 = vmatprep.subr.bf16.mxu0 %v6763_v46 }
 0x321   : > { %1514 = vmatprep.subr.bf16.mxu1 %v6765_v47 }
 0x323   : > { %1462 = vmatpush2.bf16.msra.mxu0 %v6767_v48 }
 0x324   : > { %1515 = vmatpush2.bf16.msra.mxu1 %v6768_v49  ;;  %1463 = vmatprep.subr.bf16.mxu0 %v6769_v50 }
 0x325   : > { %1516 = vmatprep.subr.bf16.mxu1 %v6771_v51 }
 0x327   : > { %1464 = vmatpush2.bf16.msra.mxu0 %v6773_v52 }
 0x328   : > { %1517 = vmatpush2.bf16.msra.mxu1 %v6774_v53  ;;  %1465 = vmatprep.subr.bf16.mxu0 %v6775_v54 }
 0x329   : > { %1518 = vmatprep.subr.bf16.mxu1 %v6777_v55 }
 0x32b   : > { %1466 = vmatpush2.bf16.msra.mxu0 %v6779_v56 }
 0x32c   : > { %1519 = vmatpush2.bf16.msra.mxu1 %v6780_v57  ;;  %1467 = vmatprep.subr.bf16.mxu0 %v6781_v58  ;;  %v6804_v57 = vld [vmem:[%s7972_s1 + $0x134] ss:$24 sps:$4 sm:$0xff]  }
 0x32d   : > { %1520 = vmatprep.subr.bf16.mxu1 %v6783_v59 }
 0x32f   : > { %1468 = vmatpush2.bf16.msra.mxu0 %v6785_v60 }
 0x330   : > { %1521 = vmatpush2.bf16.msra.mxu1 %v6786_v61  ;;  %1469 = vmatprep.subr.bf16.mxu0 %v6787_v62  ;;  %v6807_v61 = vld [vmem:[%s7972_s1 + $0x104] ss:$24 sps:$4 sm:$0xff]  }
 0x331   : > { %1522 = vmatprep.subr.bf16.mxu1 %v6789_v63 }
 0x333   : > { %1470 = vmatpush2.bf16.msra.mxu0 %v6791_v0  ;;  %v6805_v0 = vld [vmem:[%s7972_s1 + $0x100] ss:$24 sps:$4 sm:$0xff]  }
 0x334   : > { %1523 = vmatpush2.bf16.msra.mxu1 %v6792_v1  ;;  %1471 = vmatprep.subr.bf16.mxu0 %v6793_v2  ;;  %v6810_v2 = vld [vmem:[%s7972_s1 + $0xd4] ss:$24 sps:$4 sm:$0xff]  }
 0x335   : > { %1524 = vmatprep.subr.bf16.mxu1 %v6795_v3  ;;  %v6808_v3 = vld [vmem:[%s7972_s1 + $0xd0] ss:$24 sps:$4 sm:$0xff]  }
 0x337   : > { %1472 = vmatpush2.bf16.msra.mxu0 %v6797_v4  ;;  %v6813_v4 = vld [vmem:[%s7972_s1 + $0xa4] ss:$24 sps:$4 sm:$0xff]  }
 0x338   : > { %1525 = vmatpush2.bf16.msra.mxu1 %v6798_v5  ;;  %1547 = vmatprep.subr.bf16.mxu0 %v6801_v6  ;;  %v6811_v5 = vld [vmem:[%s7972_s1 + $0xa0] ss:$24 sps:$4 sm:$0xff]  }
 0x339   : > { %6527 = vmatprep.subr.bf16.mxu1 %v6801_v6  ;;  %v6816_v6 = vld [vmem:[%s7972_s1 + $0x74] ss:$24 sps:$4 sm:$0xff]  }
 0x382   : > { %v760_v16 = vpop.xlane.xlu0 %759 }
 0x383   : > { %v771_v17 = vmul.f32 0.00390625, %v760_v16  ;;  %v766_v9 = vpop.xlane.xlu1 %765  ;;  %v824_v16 = vlaneseq }
 0x384   : > { %v773_v10 = vmul.f32 0.00390625, %v766_v9 }
 0x385   : > { %v8067_v18 = vsub.f32 %v8006_v30, %v771_v17  ;;  %v8070_v19 = vsub.f32 %v8008_v31, %v771_v17 }
 0x386   : > { %v8073_v20 = vsub.f32 %v8010_v32, %v773_v10  ;;  %v8076_v21 = vsub.f32 %v8014_v34, %v773_v10  ;;  %v763_v22 = vpop.xlane.xlu0 %762 }
 0x387   : > { %v772_v23 = vmul.f32 0.00390625, %v763_v22  ;;  %v783_v25 = vmul.f32 %v8067_v18, %v8067_v18  ;;  %v784_v26 = vmul.f32 %v8070_v19, %v8070_v19 }
 0x388   : > { %v769_v24 = vpop.xlane.xlu1 %768  ;;  %v787_v28 = vmul.f32 %v8073_v20, %v8073_v20  ;;  %v788_v29 = vmul.f32 %v8076_v21, %v8076_v21 }
 0x389   : > { %v774_v27 = vmul.f32 0.00390625, %v769_v24  ;;  %v8087_v30 = vsub.f32 %v8016_v35, %v772_v23  ;;  %v8090_v31 = vsub.f32 %v8018_v36, %v772_v23  ;;  %v791_v32 = vadd.f32 %v784_v26, %v783_v25 }
 0x38a   : > { %v797_v37 = vadd.f32 %v788_v29, %v787_v28  ;;  %v825_v23 = vshrl.u32 %v824_v16, 7  ;;  %v6828_v16 = vld [vmem:[%s7972_s1 + $0x2b4] ss:$24 sps:$4 sm:$0xff]  }
 0x38b   : > { %v8093_v33 = vsub.f32 %v8022_v38, %v774_v27  ;;  %v8096_v34 = vsub.f32 %v8024_v39, %v774_v27  ;;  %792 = vadd.xlane.f32.xlu0 %v791_v32  ;;  %v785_v35 = vmul.f32 %v8087_v30, %v8087_v30  ;;  %v786_v40 = vmul.f32 %v8090_v31, %v8090_v31  ;;  %v755_v27 = vld [vmem:[%s7966_s29] ss:$8 sm:$0x3] }
 0x38c   : > { %v8135_v25 = vsub.s32 1, %v825_v23  ;;  %v8137_v26 = vsub.s32 0, %v825_v23  ;;  %v6832_v23 = vld [vmem:[%s7972_s1 + $0x250] ss:$24 sps:$4 sm:$0xff]  }
 0x38d   : > { %v789_v36 = vmul.f32 %v8093_v33, %v8093_v33  ;;  %v790_v38 = vmul.f32 %v8096_v34, %v8096_v34  ;;  %v794_v41 = vadd.f32 %v786_v40, %v785_v35 }
 0x38e   : > { %v831_v29 = vrot.slane %v755_v27, %v8135_v25  ;;  %v827_v32 = vrot.slane %v755_v27, %v8137_v26  ;;  %v6835_v27 = vld [vmem:[%s7972_s1 + $0x220] ss:$24 sps:$4 sm:$0xff]  }
 0x38f   : > { %798 = vadd.xlane.f32.xlu0 %v797_v37  ;;  %795 = vadd.xlane.f32.xlu1 %v794_v41  ;;  %v800_v39 = vadd.f32 %v790_v38, %v789_v36  ;;  %v5948_v37 = vld [vmem:[%s7966_s29 + $0x1] ss:$8 sm:$0x3] }
 0x390   : > { %v850_v41 = vrot.slane %v5948_v37, %v8135_v25  ;;  %v846_v42 = vrot.slane %v5948_v37, %v8137_v26  ;;  %v6841_v37 = vld [vmem:[%s7972_s1 + $0x1c0] ss:$24 sps:$4 sm:$0xff]  }
 0x393   : > { %801 = vadd.xlane.f32.xlu1 %v800_v39 }
 0x414   : > { %v793_v7 = vpop.xlane.xlu0 %792 }
 0x415   : > { %v803_v8 = vmul.f32 0.00390625, %v793_v7  ;;  %v6814_v7 = vld [vmem:[%s7972_s1 + $0x70] ss:$24 sps:$4 sm:$0xff]  }
 0x417   : > { %v807_v11 = vadd.f32 1e-05, %v803_v8  ;;  %v6819_v8 = vld [vmem:[%s7972_s1 + $0x44] ss:$24 sps:$4 sm:$0xff]  }
 0x418   : > { %v796_v12 = vpop.xlane.xlu1 %795  ;;  %v799_v13 = vpop.xlane.xlu0 %798 }
 0x419   : > { %7087 = vrsqrt.f32 %v807_v11  ;;  %v804_v14 = vmul.f32 0.00390625, %v796_v12  ;;  %v805_v15 = vmul.f32 0.00390625, %v799_v13  ;;  %v6817_v11 = vld [vmem:[%s7972_s1 + $0x40] ss:$24 sps:$4 sm:$0xff]   ;;  %v6822_v12 = vld [vmem:[%s7972_s1 + $0x14] ss:$24 sps:$4 sm:$0xff]  }
 0x41a   : > { %v6820_v13 = vld [vmem:[%s7972_s1 + $0x10] ss:$24 sps:$4 sm:$0xff]  }
 0x41b   : > { %v808_v17 = vadd.f32 1e-05, %v804_v14  ;;  %v809_v9 = vadd.f32 1e-05, %v805_v15  ;;  %v6825_v14 = vld [vmem:[%s7972_s1 + $0x2e4] ss:$24 sps:$4 sm:$0xff]  }
 0x41c   : > { %v802_v10 = vpop.xlane.xlu1 %801  ;;  %v6823_v15 = vld [vmem:[%s7972_s1 + $0x2e0] ss:$24 sps:$4 sm:$0xff]  }
 0x41d   : > { %7089 = vrsqrt.f32 %v808_v17  ;;  %v806_v22 = vmul.f32 0.00390625, %v802_v10  ;;  %v6826_v17 = vld [vmem:[%s7972_s1 + $0x2b0] ss:$24 sps:$4 sm:$0xff]   ;;  %v6829_v10 = vld [vmem:[%s7972_s1 + $0x280] ss:$24 sps:$4 sm:$0xff]  }
 0x41e   : > { %7091 = vrsqrt.f32 %v809_v9  ;;  %v6831_v9 = vld [vmem:[%s7972_s1 + $0x284] ss:$24 sps:$4 sm:$0xff]  }
 0x41f   : > { %v810_v24 = vadd.f32 1e-05, %v806_v22  ;;  %v6834_v22 = vld [vmem:[%s7972_s1 + $0x254] ss:$24 sps:$4 sm:$0xff]  }
 0x421   : > { %7093 = vrsqrt.f32 %v810_v24  ;;  %v6837_v24 = vld [vmem:[%s7972_s1 + $0x224] ss:$24 sps:$4 sm:$0xff]  }
 0x426   : > { %v7088_v28 = vpop.eup %7087 }
 0x427   : > { %v816_v35 = vmul.f32 %v7088_v28, %v8070_v19  ;;  %v815_v40 = vmul.f32 %v7088_v28, %v8067_v18  ;;  %v6840_v28 = vld [vmem:[%s7972_s1 + $0x1f4] ss:$24 sps:$4 sm:$0xff]  }
 0x429   : > { %v835_v38 = vmul.f32 %v831_v29, %v816_v35  ;;  %v834_v39 = vmul.f32 %v827_v32, %v815_v40  ;;  %v6846_v35 = vld [vmem:[%s7972_s1 + $0x194] ss:$24 sps:$4 sm:$0xff]   ;;  %v6844_v40 = vld [vmem:[%s7972_s1 + $0x190] ss:$24 sps:$4 sm:$0xff]  }
 0x42a   : > { %v7090_v36 = vpop.eup %7089 }
 0x42b   : > { %v7092_v43 = vpop.eup %7091  ;;  %v818_v44 = vmul.f32 %v7090_v36, %v8090_v31  ;;  %v817_v45 = vmul.f32 %v7090_v36, %v8087_v30  ;;  %v854_v18 = vadd.f32 %v850_v41, %v835_v38  ;;  %v853_v49 = vadd.f32 %v846_v42, %v834_v39  ;;  %v6799_v30 = vld [vmem:[%s7972_s1 + $0x160] ss:$24 sps:$4 sm:$0xff]   ;;  %v6046_v38 = vld [vmem:[%s7966_s29 + $0x5] ss:$8 sm:$0x3] }
 0x42c   : > { %v820_v46 = vmul.f32 %v7092_v43, %v8076_v21  ;;  %v819_v55 = vmul.f32 %v7092_v43, %v8073_v20  ;;  %v7609_v36 = vmov 0.0  }
 0x42d   : > { %v837_v47 = vmul.f32 %v831_v29, %v818_v44  ;;  %v836_v19 = vmul.f32 %v827_v32, %v817_v45  ;;  %v1631_v45 = vrot.slane %v6046_v38, %v8135_v25 }
 0x42e   : > { %v7094_v48 = vpop.eup %7093  ;;  %v839_v50 = vmul.f32 %v831_v29, %v820_v46 }
 0x42f   : > { %v856_v51 = vadd.f32 %v850_v41, %v837_v47  ;;  %v855_v52 = vadd.f32 %v846_v42, %v836_v19  ;;  %v822_v53 = vmul.f32 %v7094_v48, %v8096_v34  ;;  %v821_v54 = vmul.f32 %v7094_v48, %v8093_v33  ;;  %v6802_v34 = vld [vmem:[%s7972_s1 + $0x130] ss:$24 sps:$4 sm:$0xff]  }
 0x430   : > { %v858_v59 = vadd.f32 %v850_v41, %v839_v50  ;;  %v838_v33 = vmul.f32 %v827_v32, %v819_v55  ;;  %v6045_v50 = vld [vmem:[%s7966_s29 + $0x4] ss:$8 sm:$0x3] }
 0x431   : > { %v862_v31 = vpack.c.bf16 %v856_v51, %v854_v18  ;;  %v8154_v56 = vpack.c.bf16 %v855_v52, %v853_v49  ;;  %v841_v21 = vmul.f32 %v831_v29, %v822_v53  ;;  %v840_v58 = vmul.f32 %v827_v32, %v821_v54  ;;  %v6838_v29 = vld [vmem:[%s7972_s1 + $0x1f0] ss:$24 sps:$4 sm:$0xff]   ;;  %v6843_v32 = vld [vmem:[%s7972_s1 + $0x1c4] ss:$24 sps:$4 sm:$0xff]  }
 0x432   : > { %v857_v63 = vadd.f32 %v846_v42, %v838_v33 }
 0x433   : > { %1473 = vmatprep.mubr.bf16.mxu0 %v862_v31  ;;  %1526 = vmatprep.mubr.bf16.mxu1 %v862_v31  ;;  %v860_v60 = vadd.f32 %v850_v41, %v841_v21  ;;  %v859_v62 = vadd.f32 %v846_v42, %v840_v58  ;;  %v1627_v42 = vrot.slane %v6046_v38, %v8137_v26 }
 0x434   : > { %1474 = vmatmul.mubr.bf16.vlgmr.msra.gmra.mxu0 %v8154_v56  ;;  %1527 = vmatmul.mubr.bf16.vlgmr.msra.gmra.mxu1 %v8154_v56 }
 0x435   : > { %1548 = vmatpush1.bf16.msra.mxu0 %v6799_v30  ;;  %6543 = vmatpush1.bf16.msra.mxu1 %v6799_v30  ;;  %v864_v20 = vpack.c.bf16 %v860_v60, %v858_v59  ;;  %v8162_v1 = vpack.c.bf16 %v859_v62, %v857_v63 }
 0x436   : > { %1549 = vmatprep.subr.bf16.mxu0 %v6804_v57  ;;  %6528 = vmatprep.subr.bf16.mxu1 %v6804_v57 }
 0x437   : > { %1483 = vmatprep.mubr.bf16.mxu0 %v864_v20  ;;  %1536 = vmatprep.mubr.bf16.mxu1 %v864_v20 }
 0x439   : > { %1550 = vmatpush1.bf16.msra.mxu0 %v6802_v34  ;;  %6544 = vmatpush1.bf16.msra.mxu1 %v6802_v34 }
 0x43a   : > { %1551 = vmatprep.subr.bf16.mxu0 %v6807_v61  ;;  %6529 = vmatprep.subr.bf16.mxu1 %v6807_v61 }
 0x43c   : > { %1484 = vmatmul.mubr.bf16.gmra.mxu0 %v8162_v1  ;;  %1537 = vmatmul.mubr.bf16.gmra.mxu1 %v8162_v1 }
 0x43d   : > { %1552 = vmatpush1.bf16.msra.mxu0 %v6805_v0  ;;  %6545 = vmatpush1.bf16.msra.mxu1 %v6805_v0 }
 0x43e   : > { %1579 = vmatprep.mubr.bf16.mxu0 %v862_v31  ;;  %1589 = vmatprep.mubr.bf16.mxu1 %v864_v20  ;;  %v1610_v31 = vrot.slane %v6045_v50, %v8135_v25 }
 0x43f   : > { %1553 = vmatprep.subr.bf16.mxu0 %v6810_v2  ;;  %6530 = vmatprep.subr.bf16.mxu1 %v6810_v2 }
 0x441   : > { %1554 = vmatpush1.bf16.msra.mxu0 %v6808_v3  ;;  %6546 = vmatpush1.bf16.msra.mxu1 %v6808_v3 }
 0x442   : > { %1555 = vmatprep.subr.bf16.mxu0 %v6813_v4  ;;  %6531 = vmatprep.subr.bf16.mxu1 %v6813_v4 }
 0x445   : > { %1556 = vmatpush1.bf16.msra.mxu0 %v6811_v5  ;;  %6547 = vmatpush1.bf16.msra.mxu1 %v6811_v5 }
 0x446   : > { %1557 = vmatprep.subr.bf16.mxu0 %v6816_v6  ;;  %6532 = vmatprep.subr.bf16.mxu1 %v6816_v6 }
 0x449   : > { %1558 = vmatpush1.bf16.msra.mxu0 %v6814_v7  ;;  %6548 = vmatpush1.bf16.msra.mxu1 %v6814_v7 }
 0x44a   : > { %1559 = vmatprep.subr.bf16.mxu0 %v6819_v8  ;;  %6533 = vmatprep.subr.bf16.mxu1 %v6819_v8 }
 0x44d   : > { %1560 = vmatpush1.bf16.msra.mxu0 %v6817_v11  ;;  %6549 = vmatpush1.bf16.msra.mxu1 %v6817_v11 }
 0x44e   : > { %1561 = vmatprep.subr.bf16.mxu0 %v6822_v12  ;;  %6534 = vmatprep.subr.bf16.mxu1 %v6822_v12 }
 0x451   : > { %1562 = vmatpush1.bf16.msra.mxu0 %v6820_v13  ;;  %6550 = vmatpush1.bf16.msra.mxu1 %v6820_v13 }
 0x452   : > { %1563 = vmatprep.subr.bf16.mxu0 %v6825_v14  ;;  %6535 = vmatprep.subr.bf16.mxu1 %v6825_v14 }
 0x455   : > { %1564 = vmatpush2.bf16.msra.mxu0 %v6823_v15  ;;  %6551 = vmatpush2.bf16.msra.mxu1 %v6823_v15 }
 0x456   : > { %1565 = vmatprep.subr.bf16.mxu0 %v6828_v16  ;;  %6536 = vmatprep.subr.bf16.mxu1 %v6828_v16 }
 0x459   : > { %1566 = vmatpush2.bf16.msra.mxu0 %v6826_v17  ;;  %6552 = vmatpush2.bf16.msra.mxu1 %v6826_v17 }
 0x45a   : > { %1567 = vmatprep.subr.bf16.mxu0 %v6831_v9  ;;  %6537 = vmatprep.subr.bf16.mxu1 %v6831_v9  ;;  %v6047_v9 = vld [vmem:[%s7966_s29 + $0x6] ss:$8 sm:$0x3] }
 0x45d   : > { %1568 = vmatpush2.bf16.msra.mxu0 %v6829_v10  ;;  %6553 = vmatpush2.bf16.msra.mxu1 %v6829_v10  ;;  %v1648_v10 = vrot.slane %v6047_v9, %v8137_v26 }
 0x45e   : > { %1569 = vmatprep.subr.bf16.mxu0 %v6834_v22  ;;  %6538 = vmatprep.subr.bf16.mxu1 %v6834_v22  ;;  %v1652_v22 = vrot.slane %v6047_v9, %v8135_v25 }
 0x461   : > { %1570 = vmatpush2.bf16.msra.mxu0 %v6832_v23  ;;  %6554 = vmatpush2.bf16.msra.mxu1 %v6832_v23 }
 0x462   : > { %1571 = vmatprep.subr.bf16.mxu0 %v6837_v24  ;;  %6539 = vmatprep.subr.bf16.mxu1 %v6837_v24 }
 0x465   : > { %1572 = vmatpush2.bf16.msra.mxu0 %v6835_v27  ;;  %6555 = vmatpush2.bf16.msra.mxu1 %v6835_v27 }
 0x466   : > { %1573 = vmatprep.subr.bf16.mxu0 %v6840_v28  ;;  %6540 = vmatprep.subr.bf16.mxu1 %v6840_v28 }
 0x469   : > { %1574 = vmatpush2.bf16.msra.mxu0 %v6838_v29  ;;  %6556 = vmatpush2.bf16.msra.mxu1 %v6838_v29 }
 0x46a   : > { %1575 = vmatprep.subr.bf16.mxu0 %v6843_v32  ;;  %6541 = vmatprep.subr.bf16.mxu1 %v6843_v32 }
 0x46d   : > { %1576 = vmatpush2.bf16.msra.mxu0 %v6841_v37  ;;  %6557 = vmatpush2.bf16.msra.mxu1 %v6841_v37 }
 0x46e   : > { %1577 = vmatprep.subr.bf16.mxu0 %v6846_v35  ;;  %6542 = vmatprep.subr.bf16.mxu1 %v6846_v35 }
 0x471   : > { %1578 = vmatpush2.bf16.msra.mxu0 %v6844_v40  ;;  %6558 = vmatpush2.bf16.msra.mxu1 %v6844_v40 }
 0x472   : > { %6431 = vmatprep.subr.bf16.mxu1 %v7609_v36  ;;  %6479 = vmatprep.subr.bf16.mxu0 %v7609_v36 }
 0x474   : > { %1580 = vmatmul.mubr.bf16.vlgmr.msra.gmra.mxu0 %v8154_v56  ;;  %1590 = vmatmul.mubr.bf16.vlgmr.msra.gmra.mxu1 %v8162_v1  ;;  %v1606_v56 = vrot.slane %v6045_v50, %v8137_v26 }
 0x475   : > { %6433 = vmatprep.mubr.msk.bf16.mxu1 %vm7610_vm1, %v7609_v36  ;;  %6481 = vmatprep.mubr.msk.bf16.mxu0 %vm7610_vm1, %v7609_v36 }
 0x4f4   : > { %v1475_v41 = vpop.f32.mrf.mxu0  ;;  %v1528_v39 = vpop.f32.mrf.mxu1 }
 0x4f5   : > { %v1634_v19 = vadd.f32 %v1627_v42, %v1528_v39  ;;  %v1613_v1 = vadd.f32 %v1606_v56, %v1475_v41 }
 0x4f6   : > { %v1477_v43 = vpop.f32.mrf.mxu0  ;;  %v1530_v44 = vpop.f32.mrf.mxu1 }
 0x4f7   : > { %v1635_v51 = vadd.f32 %v1631_v45, %v1530_v44  ;;  %v1614_v4 = vadd.f32 %v1610_v31, %v1477_v43 }
 0x4f8   : > { %v1479_v46 = vpop.f32.mrf.mxu0  ;;  %v1532_v47 = vpop.f32.mrf.mxu1 }
 0x4f9   : > { %v1636_v48 = vadd.f32 %v1627_v42, %v1532_v47  ;;  %v1615_v20 = vadd.f32 %v1606_v56, %v1479_v46 }
 0x4fa   : > { %v1481_v18 = vpop.f32.mrf.mxu0  ;;  %v1534_v49 = vpop.f32.mrf.mxu1 }
 0x4fb   : > { %v8204_v52 = vpack.c.bf16 %v1636_v48, %v1634_v19  ;;  %v1637_v53 = vadd.f32 %v1631_v45, %v1534_v49  ;;  %v1616_v62 = vadd.f32 %v1610_v31, %v1481_v18  ;;  %v8218_v8 = vpack.c.bf16 %v1615_v20, %v1613_v1 }
 0x4fc   : > { %v1485_v54 = vpop.f32.mrf.mxu0  ;;  %v1538_v55 = vpop.f32.mrf.mxu1 }
 0x4fd   : > { %v8207_v30 = vpack.c.bf16 %v1637_v53, %v1635_v51  ;;  %v1674_v58 = vsel %vm1669_vm2, %v8204_v52, 0  ;;  %v1638_v63 = vadd.f32 %v1627_v42, %v1538_v55  ;;  %v8220_v11 = vpack.c.bf16 %v1616_v62, %v1614_v4 }
 0x4fe   : > { %v1487_v21 = vpop.f32.mrf.mxu0  ;;  %v1540_v57 = vpop.f32.mrf.mxu1  ;;  %6432 = vmatpush3.bf16.xpose.msra.mxu1 %v1674_v58  ;;  %v1617_v16 = vadd.f32 %v1606_v56, %v1485_v54 }
 0x4ff   : > { %v1618_v59 = vadd.f32 %v1610_v31, %v1487_v21  ;;  %v1639_v60 = vadd.f32 %v1631_v45, %v1540_v57  ;;  %v2157_v33 = vsel %vm1669_vm2, %v8207_v30, 0  ;;  %6437 = vmatprep.subr.bf16.mxu1 %v7609_v36 }
 0x500   : > { %v1489_v34 = vpop.f32.mrf.mxu0  ;;  %v1542_v61 = vpop.f32.mrf.mxu1  ;;  %6480 = vmatpush3.bf16.xpose.msra.mxu0 %v2157_v33 }
 0x501   : > { %v1640_v0 = vadd.f32 %v1627_v42, %v1542_v61  ;;  %6491 = vmatprep.subr.bf16.mxu0 %v7609_v36  ;;  %v1619_v15 = vadd.f32 %v1606_v56, %v1489_v34 }
 0x502   : > { %v1491_v2 = vpop.f32.mrf.mxu0  ;;  %v1544_v3 = vpop.f32.mrf.mxu1 }
 0x503   : > { %v8216_v5 = vpack.c.bf16 %v1640_v0, %v1638_v63  ;;  %v1620_v6 = vadd.f32 %v1610_v31, %v1491_v2  ;;  %v1641_v7 = vadd.f32 %v1631_v45, %v1544_v3  ;;  %v8237_v17 = vpack.c.bf16 %v1619_v15, %v1617_v16 }
 0x505   : > { %v8222_v12 = vpack.c.bf16 %v1620_v6, %v1618_v59  ;;  %v8224_v13 = vpack.c.bf16 %v1641_v7, %v1639_v60  ;;  %v1721_v14 = vsel %vm1669_vm2, %v8216_v5, 0  ;;  %6434 = vmatmul.mubr.msk.bf16.vlgmr.msra.gmra.mxu1 %vm1669_vm2, %v8218_v8 }
 0x506   : > { %6438 = vmatpush3.bf16.xpose.msra.mxu1 %v1721_v14  ;;  %6439 = vmatprep.mubr.msk.bf16.mxu1 %vm7610_vm1, %v7609_v36 }
 0x507   : > { %6482 = vmatmul.mubr.msk.bf16.vlgmr.msra.gmra.mxu0 %vm1669_vm2, %v8220_v11  ;;  %6443 = vmatprep.subr.bf16.mxu1 %v7609_v36 }
 0x508   : > { %6493 = vmatprep.mubr.msk.bf16.mxu0 %vm7610_vm1, %v7609_v36 }
 0x50d   : > { %6440 = vmatmul.mubr.msk.bf16.vlgmr.msra.gmra.mxu1 %vm1669_vm2, %v8237_v17 }
 0x50e   : > { %6445 = vmatprep.mubr.msk.bf16.mxu1 %vm7610_vm1, %v7609_v36 }
 0x534   : > { %v1581_v23 = vpop.f32.mrf.mxu0  ;;  %v1591_v24 = vpop.f32.mrf.mxu1 }
 0x535   : > { %v1659_v27 = vadd.f32 %v1648_v10, %v1591_v24  ;;  %v1655_v40 = vadd.f32 %v1648_v10, %v1581_v23 }
 0x536   : > { %v1583_v28 = vpop.f32.mrf.mxu0  ;;  %v1593_v29 = vpop.f32.mrf.mxu1 }
 0x537   : > { %v1660_v32 = vadd.f32 %v1652_v22, %v1593_v29  ;;  %v1656_v39 = vadd.f32 %v1652_v22, %v1583_v28 }
 0x538   : > { %v1585_v37 = vpop.f32.mrf.mxu0  ;;  %v1595_v35 = vpop.f32.mrf.mxu1 }
 0x539   : > { %v1657_v38 = vadd.f32 %v1648_v10, %v1585_v37  ;;  %v1661_v41 = vadd.f32 %v1648_v10, %v1595_v35 }
 0x53a   : > { %v1587_v42 = vpop.f32.mrf.mxu0  ;;  %v1597_v43 = vpop.f32.mrf.mxu1 }
 0x53b   : > { %v8246_v44 = vpack.c.bf16 %v1657_v38, %v1655_v40  ;;  %v8248_v45 = vpack.c.bf16 %v1661_v41, %v1659_v27  ;;  %v1658_v46 = vadd.f32 %v1652_v22, %v1587_v42  ;;  %v1662_v47 = vadd.f32 %v1652_v22, %v1597_v43 }
 0x53d   : > { %v8250_v19 = vpack.c.bf16 %v1658_v46, %v1656_v39  ;;  %v8252_v48 = vpack.c.bf16 %v1662_v47, %v1660_v32  ;;  %6444 = vmatpush3.bf16.msra.mxu1 %v8246_v44 }
 0x53e   : > { %6449 = vmatprep.subr.bf16.mxu1 %v7609_v36 }
 0x53f   : > { %6492 = vmatpush3.bf16.msra.mxu0 %v8250_v19 }
 0x540   : > { %6503 = vmatprep.subr.bf16.mxu0 %v7609_v36 }
 0x5c5   : > { %v1710_v18 = vpop.f32.mrf.mxu1 }
 0x5c6   : > { %v1765_v49 = vsel %vm1764_vm3, %v1710_v18, -inf }
 0x5c7   : > { %v8259_v50 = vpop.f32.mrf.mxu0  ;;  %1766 = vmax.xlane.f32.xlu0 %v1765_v49  ;;  %v6435_v51 = vpop.f32.mrf.mxu1 }
 0x5c9   : > { %v6483_v53 = vpop.f32.mrf.mxu0  ;;  %v1713_v54 = vpop.f32.mrf.mxu1 }
 0x5ca   : > { %v1768_v55 = vsel %vm1764_vm3, %v1713_v54, -inf }
 0x5cb   : > { %v8262_v31 = vpop.f32.mrf.mxu0  ;;  %1769 = vmax.xlane.f32.xlu1 %v1768_v55  ;;  %v6436_v56 = vpop.f32.mrf.mxu1 }
 0x5cd   : > { %v6484_v21 = vpop.f32.mrf.mxu0  ;;  %v1757_v57 = vpop.f32.mrf.mxu1 }
 0x5ce   : > { %v1771_v58 = vsel %vm1764_vm3, %v1757_v57, -inf }
 0x5cf   : > { %1772 = vmax.xlane.f32.xlu0 %v1771_v58  ;;  %v6441_v59 = vpop.f32.mrf.mxu1 }
 0x5d1   : > { %v1760_v60 = vpop.f32.mrf.mxu1 }
 0x5d2   : > { %v1774_v33 = vsel %vm1764_vm3, %v1760_v60, -inf }
 0x5d3   : > { %1775 = vmax.xlane.f32.xlu1 %v1774_v33  ;;  %v6442_v20 = vpop.f32.mrf.mxu1 }
 0x650   : > { %v1767_v34 = vpop.xlane.xlu0 %1766 }
 0x651   : > { %v1777_v61 = vsub.f32 %v1710_v18, %v1767_v34 }
 0x653   : > { %v1781_v62 = vmul.f32 1.442695, %v1777_v61 }
 0x654   : > { %v1770_v63 = vpop.xlane.xlu1 %1769 }
 0x655   : > { %7095 = vpow2.f32 %v1781_v62  ;;  %v1778_v0 = vsub.f32 %v1713_v54, %v1770_v63 }
 0x657   : > { %v1783_v1 = vmul.f32 1.442695, %v1778_v0 }
 0x658   : > { %v1773_v2 = vpop.xlane.xlu0 %1772 }
 0x659   : > { %7097 = vpow2.f32 %v1783_v1  ;;  %v1779_v3 = vsub.f32 %v1757_v57, %v1773_v2 }
 0x65b   : > { %v1785_v4 = vmul.f32 1.442695, %v1779_v3 }
 0x65c   : > { %v1776_v6 = vpop.xlane.xlu1 %1775 }
 0x65d   : > { %7099 = vpow2.f32 %v1785_v4  ;;  %v1780_v7 = vsub.f32 %v1760_v60, %v1776_v6 }
 0x65f   : > { %v1787_v14 = vmul.f32 1.442695, %v1780_v7 }
 0x661   : > { %7101 = vpow2.f32 %v1787_v14 }
 0x662   : > { %v7096_v15 = vpop.eup %7095 }
 0x663   : > { %v1789_v16 = vsel %vm1764_vm3, %v7096_v15, 0.0 }
 0x664   : > { %1790 = vadd.xlane.f32.xlu0 %v1789_v16 }
 0x666   : > { %v7098_v9 = vpop.eup %7097 }
 0x667   : > { %v1792_v10 = vsel %vm1764_vm3, %v7098_v9, 0.0 }
 0x668   : > { %1793 = vadd.xlane.f32.xlu1 %v1792_v10 }
 0x66a   : > { %v7100_v22 = vpop.eup %7099 }
 0x66b   : > { %v1795_v23 = vsel %vm1764_vm3, %v7100_v22, 0.0 }
 0x66c   : > { %1796 = vadd.xlane.f32.xlu0 %v1795_v23 }
 0x66e   : > { %v7102_v24 = vpop.eup %7101 }
 0x66f   : > { %v1798_v27 = vsel %vm1764_vm3, %v7102_v24, 0.0 }
 0x670   : > { %1799 = vadd.xlane.f32.xlu1 %v1798_v27 }
 0x681   : > { %1900 = vrot.lane.b32.xlu1 %v8218_v8, %s7611_s14 }
 0x682   : > { %1903 = vrot.lane.b32.xlu0 %v8204_v52, %s7611_s14 }
 0x685   : > { %1956 = vrot.lane.b32.xlu1 %v8216_v5, %s7611_s14 }
 0x689   : > { %1953 = vrot.lane.b32.xlu1 %v8237_v17, %s7611_s14 }
 0x6ed   : > { %v1791_v28 = vpop.xlane.xlu0 %1790 }
 0x6ee   : > { %7103 = vrcp.f32 %v1791_v28 }
 0x6f1   : > { %v1794_v29 = vpop.xlane.xlu1 %1793 }
 0x6f2   : > { %7105 = vrcp.f32 %v1794_v29 }
 0x6f5   : > { %v1797_v32 = vpop.xlane.xlu0 %1796 }
 0x6f6   : > { %7107 = vrcp.f32 %v1797_v32 }
 0x6f9   : > { %v1800_v37 = vpop.xlane.xlu1 %1799  ;;  %v1904_v42 = vpop.permute.xlu0 %1903 }
 0x6fa   : > { %7109 = vrcp.f32 %v1800_v37  ;;  %v1909_v47 = vsel %vm1669_vm2, %v1904_v42, 0 }
 0x6fb   : > { %v7104_v35 = vpop.eup %7103 }
 0x6fc   : > { %v1805_v8 = vmul.f32 %v7104_v35, %v7096_v15 }
 0x6fd   : > { %v1901_v46 = vpop.permute.xlu1 %1900 }
 0x6ff   : > { %v7106_v40 = vpop.eup %7105 }
 0x700   : > { %v1806_v38 = vmul.f32 %v7106_v40, %v7098_v9 }
 0x701   : > { %v1957_v18 = vpop.permute.xlu1 %1956 }
 0x702   : > { %v1809_v41 = vpack.c.bf16 %v1806_v38, %v1805_v8  ;;  %v1962_v49 = vsel %vm1669_vm2, %v1957_v18, 0 }
 0x703   : > { %v7108_v52 = vpop.eup %7107 }
 0x704   : > { %6446 = vmatmul.mubr.msk.bf16.vlgmr.msra.gmra.mxu1 %vm1764_vm3, %v1809_v41  ;;  %v1807_v17 = vmul.f32 %v7108_v52, %v7100_v22  ;;  %v2250_v52 = vsel %vm1764_vm3, %v8262_v31, -inf }
 0x705   : > { %6450 = vmatpush3.bf16.msra.mxu1 %v8248_v45  ;;  %6451 = vmatprep.mubr.msk.bf16.mxu1 %vm7610_vm1, %v7609_v36  ;;  %v1954_v51 = vpop.permute.xlu1 %1953 }
 0x706   : > { %6455 = vmatprep.subr.bf16.mxu1 %v7609_v36 }
 0x707   : > { %v7110_v5 = vpop.eup %7109 }
 0x708   : > { %v1808_v39 = vmul.f32 %v7110_v5, %v7102_v24  ;;  %v2247_v5 = vsel %vm1764_vm3, %v8259_v50, -inf }
 0x70a   : > { %v1810_v43 = vpack.c.bf16 %v1808_v39, %v1807_v17 }
 0x70c   : > { %6452 = vmatmul.mubr.msk.bf16.vlgmr.msra.gmra.mxu1 %vm1764_vm3, %v1810_v43 }
 0x70d   : > { %6456 = vmatpush3.bf16.xpose.msra.mxu1 %v1909_v47  ;;  %6457 = vmatprep.mubr.msk.bf16.mxu1 %vm7610_vm1, %v7609_v36 }
 0x70e   : > { %6461 = vmatprep.subr.bf16.mxu1 %v7609_v36 }
 0x714   : > { %6458 = vmatmul.mubr.msk.bf16.vlgmr.msra.gmra.mxu1 %vm1669_vm2, %v1901_v46 }
 0x715   : > { %6462 = vmatpush3.bf16.xpose.msra.mxu1 %v1962_v49  ;;  %6463 = vmatprep.mubr.msk.bf16.mxu1 %vm7610_vm1, %v7609_v36 }
 0x716   : > { %6467 = vmatprep.subr.bf16.mxu1 %v7609_v36 }
 0x71c   : > { %6464 = vmatmul.mubr.msk.bf16.vlgmr.msra.gmra.mxu1 %vm1669_vm2, %v1954_v51 }
 0x71d   : > { %6469 = vmatprep.mubr.msk.bf16.mxu1 %vm7610_vm1, %v7609_v36 }
 0x7c4   : > { %v8296_v53 = vpop.f32.mrf.mxu1 }
 0x7c6   : > { %v6447_v54 = vpop.f32.mrf.mxu1 }
 0x7c8   : > { %v8298_v55 = vpop.f32.mrf.mxu1 }
 0x7ca   : > { %v6448_v56 = vpop.f32.mrf.mxu1 }
 0x7cc   : > { %v8300_v21 = vpop.f32.mrf.mxu1 }
 0x7ce   : > { %v6453_v57 = vpop.f32.mrf.mxu1 }
 0x7d0   : > { %v8302_v58 = vpop.f32.mrf.mxu1 }
 0x7d2   : > { %v6454_v59 = vpop.f32.mrf.mxu1 }
 0x7d4   : > { %v1945_v60 = vpop.f32.mrf.mxu1 }
 0x7d5   : > { %v2005_v33 = vsel %vm1764_vm3, %v1945_v60, -inf }
 0x7d6   : > { %2006 = vmax.xlane.f32.xlu0 %v2005_v33  ;;  %v6459_v20 = vpop.f32.mrf.mxu1  ;;  %v2204_v33 = vsel %vm1669_vm2, %v8224_v13, 0 }
 0x7d8   : > { %v1948_v34 = vpop.f32.mrf.mxu1 }
 0x7d9   : > { %v2008_v61 = vsel %vm1764_vm3, %v1948_v34, -inf }
 0x7da   : > { %2009 = vmax.xlane.f32.xlu1 %v2008_v61  ;;  %v6460_v62 = vpop.f32.mrf.mxu1 }
 0x7dc   : > { %v1998_v63 = vpop.f32.mrf.mxu1 }
 0x7dd   : > { %v2011_v0 = vsel %vm1764_vm3, %v1998_v63, -inf }
 0x7de   : > { %2012 = vmax.xlane.f32.xlu0 %v2011_v0  ;;  %v6465_v1 = vpop.f32.mrf.mxu1 }
 0x7e0   : > { %v2001_v2 = vpop.f32.mrf.mxu1 }
 0x7e1   : > { %v2014_v3 = vsel %vm1764_vm3, %v2001_v2, -inf }
 0x7e2   : > { %2015 = vmax.xlane.f32.xlu0 %v2014_v3  ;;  %v6466_v4 = vpop.f32.mrf.mxu1 }
 0x85f   : > { %v2007_v6 = vpop.xlane.xlu0 %2006 }
 0x860   : > { %v2017_v7 = vsub.f32 %v1945_v60, %v2007_v6 }
 0x862   : > { %v2021_v14 = vmul.f32 1.442695, %v2017_v7 }
 0x863   : > { %v2010_v15 = vpop.xlane.xlu1 %2009 }
 0x864   : > { %7111 = vpow2.f32 %v2021_v14  ;;  %v2018_v16 = vsub.f32 %v1948_v34, %v2010_v15 }
 0x866   : > { %v2023_v9 = vmul.f32 1.442695, %v2018_v16 }
 0x867   : > { %v2013_v10 = vpop.xlane.xlu0 %2012 }
 0x868   : > { %7113 = vpow2.f32 %v2023_v9  ;;  %v2019_v22 = vsub.f32 %v1998_v63, %v2013_v10 }
 0x86a   : > { %v2025_v23 = vmul.f32 1.442695, %v2019_v22 }
 0x86b   : > { %v2016_v24 = vpop.xlane.xlu0 %2015 }
 0x86c   : > { %7115 = vpow2.f32 %v2025_v23  ;;  %v2020_v27 = vsub.f32 %v2001_v2, %v2016_v24 }
 0x86e   : > { %v2027_v28 = vmul.f32 1.442695, %v2020_v27 }
 0x870   : > { %7117 = vpow2.f32 %v2027_v28 }
 0x871   : > { %v7112_v29 = vpop.eup %7111 }
 0x872   : > { %v2029_v32 = vsel %vm1764_vm3, %v7112_v29, 0.0 }
 0x873   : > { %2030 = vadd.xlane.f32.xlu0 %v2029_v32 }
 0x875   : > { %v7114_v37 = vpop.eup %7113 }
 0x876   : > { %v2032_v35 = vsel %vm1764_vm3, %v7114_v37, 0.0 }
 0x877   : > { %2033 = vadd.xlane.f32.xlu1 %v2032_v35 }
 0x879   : > { %v7116_v40 = vpop.eup %7115 }
 0x87a   : > { %v2035_v8 = vsel %vm1764_vm3, %v7116_v40, 0.0 }
 0x87b   : > { %2036 = vadd.xlane.f32.xlu0 %v2035_v8 }
 0x87d   : > { %v7118_v38 = vpop.eup %7117 }
 0x87e   : > { %v2038_v41 = vsel %vm1764_vm3, %v7118_v38, 0.0 }
 0x87f   : > { %2039 = vadd.xlane.f32.xlu1 %v2038_v41 }
 0x890   : > { %2100 = vrot.lane.b32.xlu1 %v8248_v45, %s7611_s14 }
 0x891   : > { %2052 = vrot.lane.b32.xlu0 %v8246_v44, %s7611_s14 }
 0x8b0   : > { %2251 = vmax.xlane.f32.xlu0 %v2250_v52 }
 0x8b4   : > { %2248 = vmax.xlane.f32.xlu1 %v2247_v5 }
 0x8fc   : > { %v2031_v17 = vpop.xlane.xlu0 %2030 }
 0x8fd   : > { %7119 = vrcp.f32 %v2031_v17 }
 0x900   : > { %v2034_v39 = vpop.xlane.xlu1 %2033 }
 0x901   : > { %7121 = vrcp.f32 %v2034_v39 }
 0x904   : > { %v2037_v42 = vpop.xlane.xlu0 %2036 }
 0x905   : > { %7123 = vrcp.f32 %v2037_v42 }
 0x908   : > { %v2040_v43 = vpop.xlane.xlu1 %2039  ;;  %v2053_v46 = vpop.permute.xlu0 %2052 }
 0x909   : > { %7125 = vrcp.f32 %v2040_v43  ;;  %6468 = vmatpush3.bf16.msra.mxu1 %v2053_v46 }
 0x90a   : > { %6473 = vmatprep.subr.bf16.mxu1 %v7609_v36  ;;  %v7120_v44 = vpop.eup %7119 }
 0x90b   : > { %v2045_v47 = vmul.f32 %v7120_v44, %v7112_v29 }
 0x90c   : > { %v2101_v51 = vpop.permute.xlu1 %2100 }
 0x90e   : > { %v7122_v45 = vpop.eup %7121 }
 0x90f   : > { %v2046_v18 = vmul.f32 %v7122_v45, %v7114_v37 }
 0x911   : > { %v2049_v49 = vpack.c.bf16 %v2046_v18, %v2045_v47 }
 0x912   : > { %v7124_v54 = vpop.eup %7123 }
 0x913   : > { %6470 = vmatmul.mubr.msk.bf16.vlgmr.msra.gmra.mxu1 %vm1764_vm3, %v2049_v49  ;;  %v2047_v57 = vmul.f32 %v7124_v54, %v7116_v40 }
 0x914   : > { %6474 = vmatpush3.bf16.msra.mxu1 %v2101_v51  ;;  %6475 = vmatprep.mubr.msk.bf16.mxu1 %vm7610_vm1, %v7609_v36 }
 0x915   : > { %6485 = vmatprep.subr.bf16.mxu1 %v7609_v36 }
 0x916   : > { %v7126_v56 = vpop.eup %7125 }
 0x917   : > { %v2048_v59 = vmul.f32 %v7126_v56, %v7118_v38 }
 0x919   : > { %v2050_v60 = vpack.c.bf16 %v2048_v59, %v2047_v57 }
 0x91b   : > { %6476 = vmatmul.mubr.msk.bf16.vlgmr.msra.gmra.mxu1 %vm1764_vm3, %v2050_v60 }
 0x91c   : > { %6486 = vmatpush3.bf16.xpose.msra.mxu1 %v2204_v33  ;;  %6487 = vmatprep.mubr.msk.bf16.mxu1 %vm7610_vm1, %v7609_v36 }
 0x91d   : > { %6497 = vmatprep.subr.bf16.mxu1 %v7609_v36 }
 0x923   : > { %6488 = vmatmul.mubr.msk.bf16.vlgmr.msra.gmra.mxu1 %vm1669_vm2, %v8222_v12 }
 0x924   : > { %6498 = vmatpush3.bf16.msra.mxu1 %v8252_v48  ;;  %6499 = vmatprep.mubr.msk.bf16.mxu1 %vm7610_vm1, %v7609_v36 }
 0x925   : > { %6509 = vmatprep.subr.bf16.mxu1 %v7609_v36 }
 0x939   : > { %v2252_v61 = vpop.xlane.xlu0 %2251 }
 0x93a   : > { %v2260_v63 = vsub.f32 %v8262_v31, %v2252_v61 }
 0x93c   : > { %v2265_v3 = vmul.f32 1.442695, %v2260_v63 }
 0x93d   : > { %v2249_v20 = vpop.xlane.xlu1 %2248 }
 0x93e   : > { %v2259_v34 = vsub.f32 %v8259_v50, %v2249_v20 }
 0x940   : > { %v2263_v0 = vmul.f32 1.442695, %v2259_v34 }
 0x942   : > { %7127 = vpow2.f32 %v2263_v0 }
 0x943   : > { %7129 = vpow2.f32 %v2265_v3 }
 0x94f   : > { %v7128_v10 = vpop.eup %7127 }
 0x950   : > { %v2271_v27 = vsel %vm1764_vm3, %v7128_v10, 0.0  ;;  %v7130_v28 = vpop.eup %7129 }
 0x951   : > { %v2274_v32 = vsel %vm1764_vm3, %v7130_v28, 0.0 }
 0x9d3   : > { %v8338_v62 = vpop.f32.mrf.mxu1 }
 0x9d5   : > { %v6471_v1 = vpop.f32.mrf.mxu1 }
 0x9d7   : > { %v8341_v2 = vpop.f32.mrf.mxu1 }
 0x9d8   : > { %v6688_v4 = vpack.i.bf16 %v8341_v2, %v8338_v62  ;;  %v6853_v62 = vld [vmem:[%s7974_s23 + $0x50] ss:$8 sps:$4 sm:$0xff]   ;;  %v6858_v2 = vld [vmem:[%s7974_s23 + $0x44] ss:$8 sps:$4 sm:$0xff]  }
 0x9d9   : > { %v6472_v6 = vpop.f32.mrf.mxu1 }
 0x9db   : > { %v8345_v7 = vpop.f32.mrf.mxu1 }
 0x9dd   : > { %v6477_v14 = vpop.f32.mrf.mxu1 }
 0x9df   : > { %v8347_v50 = vpop.f32.mrf.mxu1 }
 0x9e0   : > { %v6698_v15 = vpack.i.bf16 %v8347_v50, %v8345_v7  ;;  %v6861_v7 = vld [vmem:[%s7974_s23 + $0x34] ss:$8 sps:$4 sm:$0xff]   ;;  %v6859_v50 = vld [vmem:[%s7974_s23 + $0x30] ss:$8 sps:$4 sm:$0xff]  }
 0x9e1   : > { %v6478_v31 = vpop.f32.mrf.mxu1 }
 0x9e3   : > { %v2240_v16 = vpop.f32.mrf.mxu1 }
 0x9e4   : > { %v2253_v9 = vsel %vm1764_vm3, %v2240_v16, -inf }
 0x9e5   : > { %v6489_v22 = vpop.f32.mrf.mxu1  ;;  %2254 = vmax.xlane.f32.xlu0 %v2253_v9 }
 0x9e7   : > { %v2243_v23 = vpop.f32.mrf.mxu1 }
 0x9e8   : > { %v2256_v24 = vsel %vm1764_vm3, %v2243_v23, -inf }
 0x9e9   : > { %v6490_v29 = vpop.f32.mrf.mxu1  ;;  %2257 = vmax.xlane.f32.xlu1 %v2256_v24  ;;  %2272 = vadd.xlane.f32.xlu0 %v2271_v27 }
 0x9ed   : > { %2275 = vadd.xlane.f32.xlu1 %v2274_v32 }
 0x9fe   : > { %2382 = vrot.lane.b32.xlu1 %v8220_v11, %s7611_s14 }
 0x9ff   : > { %2385 = vrot.lane.b32.xlu0 %v8207_v30, %s7611_s14 }
 0xa6e   : > { %v2255_v37 = vpop.xlane.xlu0 %2254 }
 0xa6f   : > { %v2261_v35 = vsub.f32 %v2240_v16, %v2255_v37 }
 0xa71   : > { %v2267_v40 = vmul.f32 1.442695, %v2261_v35 }
 0xa72   : > { %v2258_v8 = vpop.xlane.xlu1 %2257  ;;  %v2273_v41 = vpop.xlane.xlu0 %2272 }
 0xa73   : > { %7131 = vpow2.f32 %v2267_v40  ;;  %v2262_v38 = vsub.f32 %v2243_v23, %v2258_v8 }
 0xa74   : > { %7133 = vrcp.f32 %v2273_v41 }
 0xa75   : > { %v2269_v52 = vmul.f32 1.442695, %v2262_v38 }
 0xa76   : > { %v2276_v5 = vpop.xlane.xlu1 %2275  ;;  %v2386_v45 = vpop.permute.xlu0 %2385 }
 0xa77   : > { %7135 = vpow2.f32 %v2269_v52  ;;  %v2391_v18 = vsel %vm1669_vm2, %v2386_v45, 0 }
 0xa78   : > { %7137 = vrcp.f32 %v2276_v5 }
 0xa7a   : > { %v2383_v49 = vpop.permute.xlu1 %2382 }
 0xa80   : > { %v7132_v17 = vpop.eup %7131 }
 0xa81   : > { %v2277_v39 = vsel %vm1764_vm3, %v7132_v17, 0.0  ;;  %v7134_v11 = vpop.eup %7133 }
 0xa82   : > { %2278 = vadd.xlane.f32.xlu1 %v2277_v39  ;;  %v2287_v46 = vmul.f32 %v7134_v11, %v7128_v10 }
 0xa84   : > { %v7136_v42 = vpop.eup %7135 }
 0xa85   : > { %v7138_v43 = vpop.eup %7137  ;;  %v2280_v30 = vsel %vm1764_vm3, %v7136_v42, 0.0 }
 0xa86   : > { %2281 = vadd.xlane.f32.xlu0 %v2280_v30  ;;  %v2288_v44 = vmul.f32 %v7138_v43, %v7130_v28 }
 0xa88   : > { %v2291_v47 = vpack.c.bf16 %v2288_v44, %v2287_v46 }
 0xa8a   : > { %6494 = vmatmul.mubr.msk.bf16.vlgmr.msra.gmra.mxu0 %vm1764_vm3, %v2291_v47 }
 0xa8b   : > { %6504 = vmatpush3.bf16.xpose.msra.mxu0 %v2391_v18  ;;  %6505 = vmatprep.mubr.msk.bf16.mxu0 %vm7610_vm1, %v7609_v36 }
 0xa8c   : > { %6515 = vmatprep.subr.bf16.mxu0 %v7609_v36 }
 0xa92   : > { %6506 = vmatmul.mubr.msk.bf16.vlgmr.msra.gmra.mxu0 %vm1669_vm2, %v2383_v49 }
 0xa93   : > { %2435 = vrot.lane.b32.xlu1 %v8222_v12, %s7611_s14  ;;  %6517 = vmatprep.mubr.msk.bf16.mxu0 %vm7610_vm1, %v7609_v36 }
 0xa9c   : > { %2438 = vrot.lane.b32.xlu0 %v8224_v13, %s7611_s14 }
 0xb0b   : > { %v2279_v51 = vpop.xlane.xlu1 %2278 }
 0xb0c   : > { %7139 = vrcp.f32 %v2279_v51 }
 0xb0f   : > { %v2282_v54 = vpop.xlane.xlu0 %2281  ;;  %v2436_v12 = vpop.permute.xlu1 %2435 }
 0xb10   : > { %7141 = vrcp.f32 %v2282_v54 }
 0xb13   : > { %v2439_v33 = vpop.permute.xlu0 %2438 }
 0xb14   : > { %v2444_v34 = vsel %vm1669_vm2, %v2439_v33, 0 }
 0xb19   : > { %v7140_v56 = vpop.eup %7139 }
 0xb1a   : > { %v2289_v59 = vmul.f32 %v7140_v56, %v7132_v17 }
 0xb1d   : > { %v7142_v57 = vpop.eup %7141 }
 0xb1e   : > { %v2290_v60 = vmul.f32 %v7142_v57, %v7136_v42 }
 0xb20   : > { %v2292_v20 = vpack.c.bf16 %v2290_v60, %v2289_v59 }
 0xb22   : > { %6500 = vmatmul.mubr.msk.bf16.vlgmr.msra.gmra.mxu1 %vm1764_vm3, %v2292_v20  ;;  %v6847_v20 = vld [vmem:[%s7974_s23 + $0x70] ss:$8 sps:$4 sm:$0xff]  }
 0xb23   : > { %6510 = vmatpush3.bf16.xpose.msra.mxu1 %v2444_v34  ;;  %6511 = vmatprep.mubr.msk.bf16.mxu1 %vm7610_vm1, %v7609_v36  ;;  %v6849_v34 = vld [vmem:[%s7974_s23 + $0x74] ss:$8 sps:$4 sm:$0xff]  }
 0xb24   : > { %6521 = vmatprep.subr.bf16.mxu1 %v7609_v36 }
 0xb2a   : > { %6512 = vmatmul.mubr.msk.bf16.vlgmr.msra.gmra.mxu1 %vm1669_vm2, %v2436_v12  ;;  %v6852_v12 = vld [vmem:[%s7974_s23 + $0x64] ss:$8 sps:$4 sm:$0xff]  }
 0xb2b   : > { %6523 = vmatprep.mubr.msk.bf16.mxu1 %vm7610_vm1, %v7609_v36 }
 0xb4a   : > { %v8381_v13 = vpop.f32.mrf.mxu0 }
 0xb4c   : > { %v6495_v61 = vpop.f32.mrf.mxu0 }
 0xb4d   : > { %v6855_v61 = vld [vmem:[%s7974_s23 + $0x54] ss:$8 sps:$4 sm:$0xff]  }
 0xb4e   : > { %v8383_v63 = vpop.f32.mrf.mxu0 }
 0xb50   : > { %v6496_v0 = vpop.f32.mrf.mxu0 }
 0xb51   : > { %v6862_v0 = vld [vmem:[%s7974_s23 + $0x20] ss:$8 sps:$4 sm:$0xff]  }
 0xb52   : > { %v2427_v1 = vpop.f32.mrf.mxu0 }
 0xb53   : > { %v2487_v3 = vsel %vm1764_vm3, %v2427_v1, -inf }
 0xb54   : > { %2488 = vmax.xlane.f32.xlu1 %v2487_v3  ;;  %v6507_v6 = vpop.f32.mrf.mxu0  ;;  %v6865_v3 = vld [vmem:[%s7974_s23 + $0x10] ss:$8 sps:$4 sm:$0xff]  }
 0xb55   : > { %v6870_v6 = vld [vmem:[%s7974_s23 + $0x4] ss:$8 sps:$4 sm:$0xff]  }
 0xb56   : > { %v2430_v14 = vpop.f32.mrf.mxu0 }
 0xb57   : > { %v2490_v31 = vsel %vm1764_vm3, %v2430_v14, -inf }
 0xb58   : > { %2491 = vmax.xlane.f32.xlu0 %v2490_v31  ;;  %v6508_v16 = vpop.f32.mrf.mxu0  ;;  %v6873_v31 = vld [vmem:[%s7974_s23 + $0xf4] ss:$8 sps:$4 sm:$0xff]  }
 0xb59   : > { %v6871_v16 = vld [vmem:[%s7974_s23 + $0xf0] ss:$8 sps:$4 sm:$0xff]  }
 0xbdd   : > { %v2489_v9 = vpop.xlane.xlu1 %2488 }
 0xbde   : > { %v2499_v10 = vsub.f32 %v2427_v1, %v2489_v9  ;;  %v6867_v1 = vld [vmem:[%s7974_s23 + $0x14] ss:$8 sps:$4 sm:$0xff]   ;;  %v6876_v9 = vld [vmem:[%s7974_s23 + $0xe4] ss:$8 sps:$4 sm:$0xff]  }
 0xbe0   : > { %v2503_v22 = vmul.f32 1.442695, %v2499_v10  ;;  %v6874_v10 = vld [vmem:[%s7974_s23 + $0xe0] ss:$8 sps:$4 sm:$0xff]  }
 0xbe1   : > { %v2492_v36 = vpop.xlane.xlu0 %2491 }
 0xbe2   : > { %7143 = vpow2.f32 %v2503_v22  ;;  %v2500_v23 = vsub.f32 %v2430_v14, %v2492_v36  ;;  %v8387_v24 = vpop.f32.mrf.mxu1  ;;  %v6868_v14 = vld [vmem:[%s7974_s23] ss:$8 sps:$4 sm:$0xff]   ;;  %v6879_v22 = vld [vmem:[%s7974_s23 + $0xd4] ss:$8 sps:$4 sm:$0xff]   ;;  %v6877_v36 = vld [vmem:[%s7974_s23 + $0xd0] ss:$8 sps:$4 sm:$0xff]  }
 0xbe4   : > { %v2505_v27 = vmul.f32 1.442695, %v2500_v23  ;;  %v6501_v28 = vpop.f32.mrf.mxu1  ;;  %v6882_v23 = vld [vmem:[%s7974_s23 + $0xc4] ss:$8 sps:$4 sm:$0xff]  }
 0xbe5   : > { %v6885_v28 = vld [vmem:[%s7974_s23 + $0xb4] ss:$8 sps:$4 sm:$0xff]  }
 0xbe6   : > { %7145 = vpow2.f32 %v2505_v27  ;;  %v8389_v29 = vpop.f32.mrf.mxu1  ;;  %v6880_v27 = vld [vmem:[%s7974_s23 + $0xc0] ss:$8 sps:$4 sm:$0xff]  }
 0xbe8   : > { %v6502_v32 = vpop.f32.mrf.mxu1 }
 0xbe9   : > { %v6883_v32 = vld [vmem:[%s7974_s23 + $0xb0] ss:$8 sps:$4 sm:$0xff]  }
 0xbea   : > { %v2480_v37 = vpop.f32.mrf.mxu1 }
 0xbeb   : > { %v2493_v35 = vsel %vm1764_vm3, %v2480_v37, -inf }
 0xbec   : > { %v6513_v40 = vpop.f32.mrf.mxu1  ;;  %2494 = vmax.xlane.f32.xlu0 %v2493_v35  ;;  %v6886_v35 = vld [vmem:[%s7974_s23 + $0xa0] ss:$8 sps:$4 sm:$0xff]  }
 0xbed   : > { %v6891_v40 = vld [vmem:[%s7974_s23 + $0x94] ss:$8 sps:$4 sm:$0xff]  }
 0xbee   : > { %v2483_v8 = vpop.f32.mrf.mxu1 }
 0xbef   : > { %v7144_v38 = vpop.eup %7143  ;;  %v2496_v41 = vsel %vm1764_vm3, %v2483_v8, -inf }
 0xbf0   : > { %v6514_v52 = vpop.f32.mrf.mxu1  ;;  %2497 = vmax.xlane.f32.xlu1 %v2496_v41  ;;  %v2511_v5 = vsel %vm1764_vm3, %v7144_v38, 0.0 }
 0xbf1   : > { %2512 = vadd.xlane.f32.xlu0 %v2511_v5 }
 0xbf3   : > { %v7146_v17 = vpop.eup %7145 }
 0xbf4   : > { %v2514_v39 = vsel %vm1764_vm3, %v7146_v17, 0.0 }
 0xbf5   : > { %2515 = vadd.xlane.f32.xlu1 %v2514_v39 }
 0xc07   : > { %2534 = vrot.lane.b32.xlu0 %v8250_v19, %s7611_s14 }
 0xc75   : > { %v2495_v11 = vpop.xlane.xlu0 %2494 }
 0xc76   : > { %v2501_v42 = vsub.f32 %v2480_v37, %v2495_v11  ;;  %v6888_v37 = vld [vmem:[%s7974_s23 + $0xa4] ss:$8 sps:$4 sm:$0xff]  }
 0xc78   : > { %v2507_v43 = vmul.f32 1.442695, %v2501_v42 }
 0xc79   : > { %v2498_v30 = vpop.xlane.xlu1 %2497 }
 0xc7a   : > { %7147 = vpow2.f32 %v2507_v43  ;;  %v2502_v46 = vsub.f32 %v2483_v8, %v2498_v30  ;;  %v2513_v44 = vpop.xlane.xlu0 %2512  ;;  %v6889_v8 = vld [vmem:[%s7974_s23 + $0x90] ss:$8 sps:$4 sm:$0xff]   ;;  %v6892_v43 = vld [vmem:[%s7974_s23 + $0x80] ss:$8 sps:$4 sm:$0xff]   ;;  %v6894_v30 = vld [vmem:[%s7974_s23 + $0x84] ss:$8 sps:$4 sm:$0xff]  }
 0xc7b   : > { %7149 = vrcp.f32 %v2513_v44 }
 0xc7c   : > { %v2509_v45 = vmul.f32 1.442695, %v2502_v46 }
 0xc7e   : > { %7151 = vpow2.f32 %v2509_v45  ;;  %v2516_v47 = vpop.xlane.xlu1 %2515  ;;  %v2535_v18 = vpop.permute.xlu0 %2534 }
 0xc7f   : > { %7153 = vrcp.f32 %v2516_v47  ;;  %6516 = vmatpush3.bf16.msra.mxu0 %v2535_v18 }
 0xc80   : > { %2865 = vmatprep.subr.bf16.mxu0 %v6849_v34 }
 0xc87   : > { %v8397_v49 = vpop.eup %7147 }
 0xc88   : > { %v2517_v19 = vsel %vm1764_vm3, %v8397_v49, 0.0  ;;  %v7150_v51 = vpop.eup %7149 }
 0xc89   : > { %2518 = vadd.xlane.f32.xlu1 %v2517_v19  ;;  %v2527_v59 = vmul.f32 %v7150_v51, %v7144_v38 }
 0xc8b   : > { %v8401_v54 = vpop.eup %7151 }
 0xc8c   : > { %v7154_v56 = vpop.eup %7153  ;;  %v2520_v57 = vsel %vm1764_vm3, %v8401_v54, 0.0 }
 0xc8d   : > { %2521 = vadd.xlane.f32.xlu1 %v2520_v57  ;;  %v2528_v60 = vmul.f32 %v7154_v56, %v7146_v17 }
 0xc8f   : > { %v2531_v33 = vpack.c.bf16 %v2528_v60, %v2527_v59 }
 0xc91   : > { %6518 = vmatmul.mubr.msk.bf16.vlgmr.msra.gmra.mxu0 %vm1764_vm3, %v2531_v33 }
 0xc92   : > { %2866 = vmatpush1.bf16.msra.mxu0 %v6847_v20 }
 0xc93   : > { %2867 = vmatprep.subr.bf16.mxu0 %v6852_v12 }
 0xc9e   : > { %2582 = vrot.lane.b32.xlu1 %v8252_v48, %s7611_s14  ;;  %v6850_v48 = vld [vmem:[%s7974_s23 + $0x60] ss:$8 sps:$4 sm:$0xff]  }
 0xc9f   : > { %2868 = vmatpush1.bf16.msra.mxu0 %v6850_v48 }
 0xca0   : > { %2869 = vmatprep.subr.bf16.mxu0 %v6855_v61 }
 0xca2   : > { %6689 = vrot.lane.b32.xlu1 %v6688_v4, %s7611_s14  ;;  %v6856_v4 = vld [vmem:[%s7974_s23 + $0x40] ss:$8 sps:$4 sm:$0xff]  }
 0xca3   : > { %2870 = vmatpush1.bf16.msra.mxu0 %v6853_v62 }
 0xca4   : > { %2871 = vmatprep.subr.bf16.mxu0 %v6858_v2 }
 0xca6   : > { %6699 = vrot.lane.b32.xlu1 %v6698_v15, %s7611_s14  ;;  %v6864_v15 = vld [vmem:[%s7974_s23 + $0x24] ss:$8 sps:$4 sm:$0xff]  }
 0xca7   : > { %2872 = vmatpush1.bf16.msra.mxu0 %v6856_v4 }
 0xca8   : > { %2873 = vmatprep.subr.bf16.mxu0 %v6861_v7 }
 0xcab   : > { %2874 = vmatpush1.bf16.msra.mxu0 %v6859_v50 }
 0xcac   : > { %2875 = vmatprep.subr.bf16.mxu0 %v6864_v15 }
 0xcaf   : > { %2876 = vmatpush1.bf16.msra.mxu0 %v6862_v0 }
 0xcb0   : > { %2877 = vmatprep.subr.bf16.mxu0 %v6867_v1 }
 0xcb3   : > { %2878 = vmatpush1.bf16.msra.mxu0 %v6865_v3 }
 0xcb4   : > { %2879 = vmatprep.subr.bf16.mxu0 %v6870_v6 }
 0xcb7   : > { %2880 = vmatpush1.bf16.msra.mxu0 %v6868_v14 }
 0xcb8   : > { %2881 = vmatprep.subr.bf16.mxu0 %v6873_v31  ;;  %v6096_v31 = vld [vmem:[%s7966_s29 + $0x7] ss:$8 sm:$0x3] }
 0xcbb   : > { %2882 = vmatpush2.bf16.msra.mxu0 %v6871_v16 }
 0xcbc   : > { %2883 = vmatprep.subr.bf16.mxu0 %v6876_v9  ;;  %v7231_v9 = vld [vmem:[#allocation2 + $0x30] sm:$0xff] }
 0xcbf   : > { %2884 = vmatpush2.bf16.msra.mxu0 %v6874_v10 }
 0xcc0   : > { %2885 = vmatprep.subr.bf16.mxu0 %v6879_v22  ;;  %v8471_v22 = vrot.slane %v6096_v31, %v8137_v26 }
 0xcc3   : > { %2886 = vmatpush2.bf16.msra.mxu0 %v6877_v36  ;;  %v7232_v36 = vld [vmem:[#allocation2] sm:$0xff] }
 0xcc4   : > { %2887 = vmatprep.subr.bf16.mxu0 %v6882_v23 }
 0xcc7   : > { %2888 = vmatpush2.bf16.msra.mxu0 %v6880_v27 }
 0xcc8   : > { %2889 = vmatprep.subr.bf16.mxu0 %v6885_v28  ;;  %v7233_v28 = vld [vmem:[#allocation2 + $0x18] sm:$0xff] }
 0xccb   : > { %2890 = vmatpush2.bf16.msra.mxu0 %v6883_v32 }
 0xccc   : > { %2891 = vmatprep.subr.bf16.mxu0 %v6888_v37 }
 0xccf   : > { %2892 = vmatpush2.bf16.msra.mxu0 %v6886_v35  ;;  %v7234_v35 = vld [vmem:[#allocation2 + $0x10] sm:$0xff] }
 0xcd0   : > { %2893 = vmatprep.subr.bf16.mxu0 %v6891_v40 }
 0xcd3   : > { %2894 = vmatpush2.bf16.msra.mxu0 %v6889_v8 }
 0xcd4   : > { %2895 = vmatprep.subr.bf16.mxu0 %v6894_v30  ;;  %v3069_v30 = vld [vmem:[%s7980_s28 + $0x180] sm:$0xff] }
 0xcd7   : > { %2896 = vmatpush2.bf16.msra.mxu0 %v6892_v43  ;;  %v3438_v43 = vld [vmem:[%s7980_s28 + $0x1e8] sm:$0xff] }
 0xd12   : > { %v2519_v38 = vpop.xlane.xlu1 %2518 }
 0xd13   : > { %7155 = vrcp.f32 %v2519_v38 }
 0xd16   : > { %v2522_v41 = vpop.xlane.xlu1 %2521 }
 0xd17   : > { %7157 = vrcp.f32 %v2522_v41 }
 0xd1a   : > { %v2583_v52 = vpop.permute.xlu1 %2582 }
 0xd1b   : > { %6522 = vmatpush3.bf16.msra.mxu1 %v2583_v52 }
 0xd1e   : > { %v6690_v19 = vpop.permute.xlu1 %6689 }
 0xd1f   : > { %v6692_v51 = vunpack.i.h.bf16 %v6690_v19  ;;  %v6691_v56 = vunpack.i.l.bf16 %v6690_v19  ;;  %v3436_v19 = vld [vmem:[%s7980_s28 + $0x1a8] sm:$0xff] }
 0xd20   : > { %v7156_v5 = vpop.eup %7155 }
 0xd21   : > { %v2529_v39 = vmul.f32 %v7156_v5, %v8397_v49  ;;  %v2662_v59 = vsel %vm1669_vm2, %v8298_v55, %v6692_v51  ;;  %v2661_v60 = vsel %vm1669_vm2, %v8296_v53, %v6691_v56  ;;  %v3071_v5 = vld [vmem:[%s7980_s28 + $0x1c0] sm:$0xff] }
 0xd22   : > { %v2669_v12 = vpack.c.bf16 %v2662_v59, %v2661_v60  ;;  %v6700_v55 = vpop.permute.xlu1 %6699  ;;  %v3067_v51 = vld [vmem:[%s7980_s28 + $0x140] sm:$0xff] }
 0xd23   : > { %v6702_v53 = vunpack.i.h.bf16 %v6700_v55  ;;  %v6701_v7 = vunpack.i.l.bf16 %v6700_v55 }
 0xd24   : > { %v7158_v17 = vpop.eup %7157 }
 0xd25   : > { %v2530_v11 = vmul.f32 %v7158_v17, %v8401_v54  ;;  %v2664_v0 = vsel %vm1669_vm2, %v8302_v58, %v6702_v53  ;;  %v3072_v17 = vld [vmem:[%s7980_s28 + $0x1e0] sm:$0xff] }
 0xd26   : > { %v3063_v53 = vld [vmem:[%s7980_s28 + $0xc0] sm:$0xff] }
 0xd27   : > { %v2532_v42 = vpack.c.bf16 %v2530_v11, %v2529_v39  ;;  %v3437_v39 = vld [vmem:[%s7980_s28 + $0x1c8] sm:$0xff]  ;;  %v6114_v11 = vcombine.low %v3071_v5, %v3072_v17 }
 0xd29   : > { %6524 = vmatmul.mubr.msk.bf16.vlgmr.msra.gmra.mxu1 %vm1764_vm3, %v2532_v42  ;;  %v6115_v42 = vcombine.high %v3071_v5, %v3072_v17 }
 0xd2b   : > { %3262 = vmatprep.subr.bf16.mxu1 %v6115_v42 }
 0xd2c   : > { %3263 = vmatpush1.bf16.msra.mxu1 %v6114_v11 }
 0xd51   : > { %v2574_v46 = vpop.f32.mrf.mxu0 }
 0xd53   : > { %v6519_v44 = vpop.f32.mrf.mxu0 }
 0xd54   : > { %v6147_v44 = vcombine.low %v3437_v39, %v3438_v43 }
 0xd55   : > { %v2577_v45 = vpop.f32.mrf.mxu0 }
 0xd56   : > { %v6683_v47 = vpack.i.bf16 %v2577_v45, %v2574_v46  ;;  %v3070_v46 = vld [vmem:[%s7980_s28 + $0x1a0] sm:$0xff]  ;;  %v6148_v45 = vcombine.high %v3437_v39, %v3438_v43 }
 0xd57   : > { %v6520_v18 = vpop.f32.mrf.mxu0  ;;  %v6112_v59 = vcombine.low %v3069_v30, %v3070_v46 }
 0xd58   : > { %6684 = vrot.lane.b32.xlu0 %v6683_v47, %s7611_s14  ;;  %v6113_v47 = vcombine.high %v3069_v30, %v3070_v46  ;;  %v3435_v18 = vld [vmem:[%s7980_s28 + $0x188] sm:$0xff]  ;;  %3628 = vmatprep.subr.bf16.mxu0 %v6148_v45  ;;  %v7235_v30 = vld [vmem:[#allocation2 + $0x8] sm:$0xff] }
 0xd59   : > { %v6146_v56 = vcombine.high %v3435_v18, %v3436_v19  ;;  %v6145_v60 = vcombine.low %v3435_v18, %v3436_v19 }
 0xd5a   : > { %3264 = vmatprep.subr.bf16.mxu1 %v6113_v47  ;;  %v7236_v47 = vld [vmem:[#allocation2 + $0x20] sm:$0xff] }
 0xd5b   : > { %3265 = vmatpush1.bf16.msra.mxu1 %v6112_v59 }
 0xdca   : > { %v6685_v49 = vpop.permute.xlu0 %6684 }
 0xdcb   : > { %v6687_v57 = vunpack.i.h.bf16 %v6685_v49  ;;  %v6686_v54 = vunpack.i.l.bf16 %v6685_v49  ;;  %v3068_v49 = vld [vmem:[%s7980_s28 + $0x160] sm:$0xff] }
 0xdcd   : > { %v2665_v33 = vsel %vm1669_vm2, %v8381_v13, %v6686_v54  ;;  %v2666_v20 = vsel %vm1669_vm2, %v8383_v63, %v6687_v57  ;;  %v2663_v63 = vsel %vm1669_vm2, %v8300_v21, %v6701_v7  ;;  %v8474_v21 = vrot.slane %v6096_v31, %v8135_v25  ;;  %v3433_v57 = vld [vmem:[%s7980_s28 + $0x148] sm:$0xff]  ;;  %v3064_v7 = vld [vmem:[%s7980_s28 + $0xe0] sm:$0xff] }
 0xdce   : > { %v2670_v34 = vpack.c.bf16 %v2666_v20, %v2665_v33  ;;  %v2671_v14 = vpack.c.bf16 %v2664_v0, %v2663_v63  ;;  %v3434_v54 = vld [vmem:[%s7980_s28 + $0x168] sm:$0xff]  ;;  %v6111_v33 = vcombine.high %v3067_v51, %v3068_v49  ;;  %v6107_v0 = vcombine.high %v3063_v53, %v3064_v7 }
 0xdcf   : > { %v6144_v20 = vcombine.high %v3433_v57, %v3434_v54  ;;  %v3428_v31 = vld [vmem:[%s7980_s28 + $0xa8] sm:$0xff] }
 0xdd0   : > { %2897 = vmatprep.mubr.bf16.mxu0 %v2670_v34  ;;  %v3065_v34 = vld [vmem:[%s7980_s28 + $0x100] sm:$0xff]  ;;  %3266 = vmatprep.subr.bf16.mxu1 %v6111_v33 }
 0xdd1   : > { %2898 = vmatmul.mubr.bf16.vlgmr.msra.gmra.mxu0 %v2669_v12  ;;  %v3066_v12 = vld [vmem:[%s7980_s28 + $0x120] sm:$0xff] }
 0xdd2   : > { %3629 = vmatpush1.bf16.msra.mxu0 %v6147_v44 }
 0xdd3   : > { %3630 = vmatprep.subr.bf16.mxu0 %v6146_v56 }
 0xdd6   : > { %3631 = vmatpush1.bf16.msra.mxu0 %v6145_v60 }
 0xdd7   : > { %3632 = vmatprep.subr.bf16.mxu0 %v6144_v20 }
 0xde9   : > { %v2622_v48 = vpop.f32.mrf.mxu1 }
 0xdeb   : > { %v6525_v61 = vpop.f32.mrf.mxu1 }
 0xdec   : > { %v3432_v61 = vld [vmem:[%s7980_s28 + $0x128] sm:$0xff] }
 0xded   : > { %v2625_v62 = vpop.f32.mrf.mxu1 }
 0xdee   : > { %v6693_v2 = vpack.i.bf16 %v2625_v62, %v2622_v48  ;;  %v3431_v48 = vld [vmem:[%s7980_s28 + $0x108] sm:$0xff]  ;;  %v6110_v62 = vcombine.low %v3067_v51, %v3068_v49 }
 0xdef   : > { %v6526_v4 = vpop.f32.mrf.mxu1  ;;  %v6142_v55 = vcombine.high %v3431_v48, %v3432_v61  ;;  %v6141_v63 = vcombine.low %v3431_v48, %v3432_v61 }
 0xdf0   : > { %6694 = vrot.lane.b32.xlu0 %v6693_v2, %s7611_s14  ;;  %v6143_v2 = vcombine.low %v3433_v57, %v3434_v54  ;;  %v6109_v4 = vcombine.high %v3065_v34, %v3066_v12  ;;  %3267 = vmatpush1.bf16.msra.mxu1 %v6110_v62  ;;  %v7237_v54 = vld [vmem:[#allocation2 + $0x28] sm:$0xff] }
 0xdf2   : > { %3633 = vmatpush1.bf16.msra.mxu0 %v6143_v2  ;;  %3268 = vmatprep.subr.bf16.mxu1 %v6109_v4 }
 0xdf3   : > { %3634 = vmatprep.subr.bf16.mxu0 %v6142_v55 }
 0xdf6   : > { %3635 = vmatpush1.bf16.msra.mxu0 %v6141_v63 }
 0xe62   : > { %v6695_v50 = vpop.permute.xlu0 %6694 }
 0xe63   : > { %v6697_v13 = vunpack.i.h.bf16 %v6695_v50  ;;  %v6696_v15 = vunpack.i.l.bf16 %v6695_v50  ;;  %v3429_v50 = vld [vmem:[%s7980_s28 + $0xc8] sm:$0xff] }
 0xe65   : > { %v2667_v1 = vsel %vm1669_vm2, %v8387_v24, %v6696_v15  ;;  %v2668_v3 = vsel %vm1669_vm2, %v8389_v29, %v6697_v13  ;;  %v3430_v13 = vld [vmem:[%s7980_s28 + $0xe8] sm:$0xff]  ;;  %v6108_v15 = vcombine.low %v3065_v34, %v3066_v12 }
 0xe66   : > { %v2672_v6 = vpack.c.bf16 %v2668_v3, %v2667_v1  ;;  %v6140_v1 = vcombine.high %v3429_v50, %v3430_v13  ;;  %v3061_v3 = vld [vmem:[%s7980_s28 + $0x80] sm:$0xff]  ;;  %v7238_v12 = vld [vmem:[#allocation2 + $0x38] sm:$0xff] }
 0xe67   : > { %3269 = vmatpush1.bf16.msra.mxu1 %v6108_v15  ;;  %v3424_v15 = vld [vmem:[%s7980_s28 + $0x28] sm:$0xff] }
 0xe68   : > { %2907 = vmatprep.mubr.bf16.mxu0 %v2672_v6  ;;  %v3062_v6 = vld [vmem:[%s7980_s28 + $0xa0] sm:$0xff]  ;;  %3270 = vmatprep.subr.bf16.mxu1 %v6107_v0 }
 0xe69   : > { %2908 = vmatmul.mubr.bf16.gmra.mxu0 %v2671_v14  ;;  %v3427_v14 = vld [vmem:[%s7980_s28 + $0x88] sm:$0xff]  ;;  %3636 = vmatprep.subr.bf16.mxu0 %v6140_v1 }
 0xe91   : > { %v2899_v16 = vpop.f32.mrf.mxu0 }
 0xe92   : > { %v2918_v10 = vadd.f32 %v7231_v9, %v2899_v16  ;;  %v6106_v16 = vcombine.low %v3063_v53, %v3064_v7  ;;  %v6139_v9 = vcombine.low %v3429_v50, %v3430_v13  ;;  %v3058_v50 = vld [vmem:[%s7980_s28 + $0x20] sm:$0xff] }
 0xe93   : > { %v2901_v58 = vpop.f32.mrf.mxu0 }
 0xe94   : > { %v2919_v24 = vadd.f32 %v7232_v36, %v2901_v58  ;;  %v8477_v23 = vadd.f32 %v8471_v22, %v2918_v10  ;;  %v6105_v10 = vcombine.high %v3061_v3, %v3062_v6  ;;  %v6138_v58 = vcombine.high %v3427_v14, %v3428_v31  ;;  %v3059_v36 = vld [vmem:[%s7980_s28 + $0x40] sm:$0xff]  ;;  %3271 = vmatpush1.bf16.msra.mxu1 %v6106_v16 }
 0xe95   : > { %v2903_v29 = vpop.f32.mrf.mxu0  ;;  %3637 = vmatpush1.bf16.msra.mxu0 %v6139_v9  ;;  %v3454_v9 = vld [vmem:[%s7980_s28 + $0x3e8] sm:$0xff] }
 0xe96   : > { %v8480_v27 = vadd.f32 %v8474_v21, %v2919_v24  ;;  %v2920_v32 = vadd.f32 %v7233_v28, %v2903_v29  ;;  %v3060_v24 = vld [vmem:[%s7980_s28 + $0x60] sm:$0xff]  ;;  %v3425_v29 = vld [vmem:[%s7980_s28 + $0x48] sm:$0xff]  ;;  %3272 = vmatprep.subr.bf16.mxu1 %v6105_v10  ;;  %3638 = vmatprep.subr.bf16.mxu0 %v6138_v58 }
 0xe97   : > { %v2905_v37 = vpop.f32.mrf.mxu0  ;;  %v3426_v28 = vld [vmem:[%s7980_s28 + $0x68] sm:$0xff] }
 0xe98   : > { %v2921_v40 = vadd.f32 %v7234_v35, %v2905_v37  ;;  %v2951_v8 = vadd.f32 %v8480_v27, %v8477_v23  ;;  %v8485_v38 = vadd.f32 %v8471_v22, %v2920_v32  ;;  %v6104_v32 = vcombine.low %v3061_v3, %v3062_v6  ;;  %v3087_v3 = vld [vmem:[%s7980_s28 + $0x3c0] sm:$0xff] }
 0xe99   : > { %v6137_v37 = vcombine.low %v3427_v14, %v3428_v31  ;;  %v6103_v35 = vcombine.high %v3059_v36, %v3060_v24  ;;  %v3088_v6 = vld [vmem:[%s7980_s28 + $0x3e0] sm:$0xff]  ;;  %v3453_v14 = vld [vmem:[%s7980_s28 + $0x3c8] sm:$0xff] }
 0xe9a   : > { %v8488_v41 = vadd.f32 %v8474_v21, %v2921_v40  ;;  %2952 = vadd.xlane.f32.xlu0 %v2951_v8  ;;  %v6136_v40 = vcombine.high %v3425_v29, %v3426_v28  ;;  %3273 = vmatpush1.bf16.msra.mxu1 %v6104_v32  ;;  %v6102_v8 = vcombine.low %v3059_v36, %v3060_v24  ;;  %v3085_v36 = vld [vmem:[%s7980_s28 + $0x380] sm:$0xff] }
 0xe9b   : > { %3639 = vmatpush1.bf16.msra.mxu0 %v6137_v37  ;;  %3274 = vmatprep.subr.bf16.mxu1 %v6103_v35  ;;  %v6130_v31 = vcombine.low %v3087_v3, %v3088_v6  ;;  %v6131_v16 = vcombine.high %v3087_v3, %v3088_v6  ;;  %v6163_v10 = vcombine.low %v3453_v14, %v3454_v9  ;;  %v3086_v24 = vld [vmem:[%s7980_s28 + $0x3a0] sm:$0xff]  ;;  %v3452_v37 = vld [vmem:[%s7980_s28 + $0x3a8] sm:$0xff] }
 0xe9c   : > { %v2954_v52 = vadd.f32 %v8488_v41, %v8485_v38  ;;  %3640 = vmatprep.subr.bf16.mxu0 %v6136_v40  ;;  %v6164_v58 = vcombine.high %v3453_v14, %v3454_v9  ;;  %v6129_v32 = vcombine.high %v3085_v36, %v3086_v24  ;;  %v3074_v9 = vld [vmem:[%s7980_s28 + $0x220] sm:$0xff] }
 0xe9e   : > { %2955 = vadd.xlane.f32.xlu1 %v2954_v52  ;;  %v6135_v52 = vcombine.low %v3425_v29, %v3426_v28  ;;  %3275 = vmatpush1.bf16.msra.mxu1 %v6102_v8  ;;  %v3451_v29 = vld [vmem:[%s7980_s28 + $0x388] sm:$0xff]  ;;  %v6128_v28 = vcombine.low %v3085_v36, %v3086_v24  ;;  %v3083_v8 = vld [vmem:[%s7980_s28 + $0x340] sm:$0xff] }
 0xe9f   : > { %v6161_v35 = vcombine.low %v3451_v29, %v3452_v37  ;;  %v6162_v40 = vcombine.high %v3451_v29, %v3452_v37 }
 0xea0   : > { %3641 = vmatpush1.bf16.msra.mxu0 %v6135_v52  ;;  %v3084_v52 = vld [vmem:[%s7980_s28 + $0x360] sm:$0xff] }
 0xf23   : > { %v2953_v39 = vpop.xlane.xlu0 %2952 }
 0xf24   : > { %v2963_v45 = vmul.f32 0.00390625, %v2953_v39  ;;  %v3450_v39 = vld [vmem:[%s7980_s28 + $0x368] sm:$0xff] }
 0xf26   : > { %v8537_v20 = vsub.f32 %v8477_v23, %v2963_v45  ;;  %v8540_v34 = vsub.f32 %v8480_v27, %v2963_v45  ;;  %v3082_v45 = vld [vmem:[%s7980_s28 + $0x320] sm:$0xff] }
 0xf27   : > { %v2956_v5 = vpop.xlane.xlu1 %2955 }
 0xf28   : > { %v2964_v17 = vmul.f32 0.00390625, %v2956_v5  ;;  %v2975_v55 = vmul.f32 %v8537_v20, %v8537_v20  ;;  %v2976_v53 = vmul.f32 %v8540_v34, %v8540_v34  ;;  %v3449_v5 = vld [vmem:[%s7980_s28 + $0x348] sm:$0xff] }
 0xf29   : > { %v2909_v11 = vpop.f32.mrf.mxu0 }
 0xf2a   : > { %v8521_v42 = vsub.f32 %v8485_v38, %v2964_v17  ;;  %v8524_v43 = vsub.f32 %v8488_v41, %v2964_v17  ;;  %v2922_v46 = vadd.f32 %v7235_v30, %v2909_v11  ;;  %v2983_v7 = vadd.f32 %v2976_v53, %v2975_v55  ;;  %v3078_v55 = vld [vmem:[%s7980_s28 + $0x2a0] sm:$0xff]  ;;  %v3443_v53 = vld [vmem:[%s7980_s28 + $0x288] sm:$0xff] }
 0xf2b   : > { %v2911_v44 = vpop.f32.mrf.mxu0  ;;  %v6127_v17 = vcombine.high %v3083_v8, %v3084_v52  ;;  %v6126_v11 = vcombine.low %v3083_v8, %v3084_v52  ;;  %v6159_v30 = vcombine.low %v3449_v5, %v3450_v39 }
 0xf2c   : > { %v2923_v18 = vadd.f32 %v7236_v47, %v2911_v44  ;;  %v2977_v19 = vmul.f32 %v8521_v42, %v8521_v42  ;;  %v2978_v51 = vmul.f32 %v8524_v43, %v8524_v43  ;;  %v8531_v49 = vadd.f32 %v8471_v22, %v2922_v46  ;;  %v3081_v44 = vld [vmem:[%s7980_s28 + $0x300] sm:$0xff]  ;;  %v3447_v47 = vld [vmem:[%s7980_s28 + $0x308] sm:$0xff] }
 0xf2d   : > { %v2913_v56 = vpop.f32.mrf.mxu0  ;;  %v6160_v46 = vcombine.high %v3449_v5, %v3450_v39 }
 0xf2e   : > { %v8534_v57 = vadd.f32 %v8474_v21, %v2923_v18  ;;  %v2924_v59 = vadd.f32 %v7237_v54, %v2913_v56  ;;  %v2986_v60 = vadd.f32 %v2978_v51, %v2977_v19  ;;  %v6125_v18 = vcombine.high %v3081_v44, %v3082_v45  ;;  %v3448_v19 = vld [vmem:[%s7980_s28 + $0x328] sm:$0xff]  ;;  %v3079_v51 = vld [vmem:[%s7980_s28 + $0x2c0] sm:$0xff] }
 0xf2f   : > { %v2915_v33 = vpop.f32.mrf.mxu0  ;;  %v3080_v56 = vld [vmem:[%s7980_s28 + $0x2e0] sm:$0xff]  ;;  %v6124_v54 = vcombine.low %v3081_v44, %v3082_v45 }
 0xf30   : > { %2987 = vadd.xlane.f32.xlu1 %v2986_v60  ;;  %v2925_v48 = vadd.f32 %v7238_v12, %v2915_v33  ;;  %v2957_v61 = vadd.f32 %v8534_v57, %v8531_v49  ;;  %v8545_v62 = vadd.f32 %v8471_v22, %v2924_v59  ;;  %v3057_v22 = vld [vmem:[%s7980_s28] sm:$0xff]  ;;  %v6158_v59 = vcombine.high %v3447_v47, %v3448_v19  ;;  %v3445_v60 = vld [vmem:[%s7980_s28 + $0x2c8] sm:$0xff] }
 0xf31   : > { %v6101_v13 = vcombine.high %v3057_v22, %v3058_v50  ;;  %v6100_v63 = vcombine.low %v3057_v22, %v3058_v50  ;;  %v3446_v33 = vld [vmem:[%s7980_s28 + $0x2e8] sm:$0xff]  ;;  %v6157_v12 = vcombine.low %v3447_v47, %v3448_v19  ;;  %v6122_v22 = vcombine.low %v3079_v51, %v3080_v56 }
 0xf32   : > { %v8548_v2 = vadd.f32 %v8474_v21, %v2925_v48  ;;  %2958 = vadd.xlane.f32.xlu0 %v2957_v61  ;;  %v3423_v21 = vld [vmem:[%s7980_s28 + $0x8] sm:$0xff]  ;;  %v6123_v48 = vcombine.high %v3079_v51, %v3080_v56  ;;  %v6156_v61 = vcombine.high %v3445_v60, %v3446_v33  ;;  %v6155_v50 = vcombine.low %v3445_v60, %v3446_v33 }
 0xf33   : > { %v6133_v0 = vcombine.low %v3423_v21, %v3424_v15  ;;  %v6134_v1 = vcombine.high %v3423_v21, %v3424_v15  ;;  %3276 = vmatprep.subr.bf16.mxu1 %v6101_v13  ;;  %v3075_v15 = vld [vmem:[%s7980_s28 + $0x240] sm:$0xff] }
 0xf34   : > { %v2960_v4 = vadd.f32 %v8548_v2, %v8545_v62  ;;  %3277 = vmatpush1.bf16.msra.mxu1 %v6100_v63  ;;  %v3076_v63 = vld [vmem:[%s7980_s28 + $0x260] sm:$0xff] }
 0xf35   : > { %3642 = vmatprep.subr.bf16.mxu0 %v6134_v1  ;;  %3278 = vmatprep.subr.bf16.mxu1 %v6131_v16  ;;  %v3442_v1 = vld [vmem:[%s7980_s28 + $0x268] sm:$0xff]  ;;  %v6119_v14 = vcombine.high %v3075_v15, %v3076_v63  ;;  %v3073_v16 = vld [vmem:[%s7980_s28 + $0x200] sm:$0xff]  ;;  %v6118_v36 = vcombine.low %v3075_v15, %v3076_v63 }
 0xf36   : > { %2961 = vadd.xlane.f32.xlu0 %v2960_v4  ;;  %3643 = vmatpush1.bf16.msra.mxu0 %v6133_v0  ;;  %v3077_v4 = vld [vmem:[%s7980_s28 + $0x280] sm:$0xff]  ;;  %v3441_v0 = vld [vmem:[%s7980_s28 + $0x248] sm:$0xff]  ;;  %v6117_v29 = vcombine.high %v3073_v16, %v3074_v9 }
 0xf37   : > { %3644 = vmatprep.subr.bf16.mxu0 %v6164_v58  ;;  %v6121_v21 = vcombine.high %v3077_v4, %v3078_v55  ;;  %v6120_v3 = vcombine.low %v3077_v4, %v3078_v55  ;;  %v3440_v58 = vld [vmem:[%s7980_s28 + $0x228] sm:$0xff]  ;;  %v6151_v24 = vcombine.low %v3441_v0, %v3442_v1 }
 0xf38   : > { %3279 = vmatpush2.bf16.msra.mxu1 %v6130_v31  ;;  %v6152_v31 = vcombine.high %v3441_v0, %v3442_v1 }
 0xf39   : > { %3280 = vmatprep.subr.bf16.mxu1 %v6129_v32  ;;  %v6116_v32 = vcombine.low %v3073_v16, %v3074_v9  ;;  %v6898_v16 = vld [vmem:[%s7982_s12 + $0x70] ss:$8 sps:$4 sm:$0xff]   ;;  %v6900_v9 = vld [vmem:[%s7982_s12 + $0x74] ss:$8 sps:$4 sm:$0xff]  }
 0xf3a   : > { %2984 = vadd.xlane.f32.xlu0 %v2983_v7  ;;  %3645 = vmatpush2.bf16.msra.mxu0 %v6163_v10  ;;  %v3444_v7 = vld [vmem:[%s7980_s28 + $0x2a8] sm:$0xff] }
 0xf3b   : > { %3646 = vmatprep.subr.bf16.mxu0 %v6162_v40  ;;  %v6154_v13 = vcombine.high %v3443_v53, %v3444_v7  ;;  %v6153_v6 = vcombine.low %v3443_v53, %v3444_v7  ;;  %v3439_v10 = vld [vmem:[%s7980_s28 + $0x208] sm:$0xff] }
 0xf3c   : > { %3281 = vmatpush2.bf16.msra.mxu1 %v6128_v28  ;;  %v6150_v28 = vcombine.high %v3439_v10, %v3440_v58  ;;  %v6149_v37 = vcombine.low %v3439_v10, %v3440_v58  ;;  %v6903_v10 = vld [vmem:[%s7982_s12 + $0x164] ss:$8 sps:$4 sm:$0xff]  }
 0xf3d   : > { %3282 = vmatprep.subr.bf16.mxu1 %v6127_v17  ;;  %v6906_v58 = vld [vmem:[%s7982_s12 + $0x64] ss:$8 sps:$4 sm:$0xff]  }
 0xf3e   : > { %3647 = vmatpush2.bf16.msra.mxu0 %v6161_v35 }
 0xf3f   : > { %3648 = vmatprep.subr.bf16.mxu0 %v6160_v46 }
 0xf40   : > { %3283 = vmatpush2.bf16.msra.mxu1 %v6126_v11 }
 0xf41   : > { %3284 = vmatprep.subr.bf16.mxu1 %v6125_v18 }
 0xf42   : > { %3649 = vmatpush2.bf16.msra.mxu0 %v6159_v30 }
 0xf43   : > { %3650 = vmatprep.subr.bf16.mxu0 %v6158_v59 }
 0xf44   : > { %3285 = vmatpush2.bf16.msra.mxu1 %v6124_v54 }
 0xf45   : > { %3286 = vmatprep.subr.bf16.mxu1 %v6123_v48  ;;  %v6098_v48 = vld [vmem:[%s7966_s29 + $0x3] ss:$8 sm:$0x3] }
 0xf46   : > { %3651 = vmatpush2.bf16.msra.mxu0 %v6157_v12  ;;  %v6097_v12 = vld [vmem:[%s7966_s29 + $0x2] ss:$8 sm:$0x3] }
 0xf47   : > { %3652 = vmatprep.subr.bf16.mxu0 %v6156_v61  ;;  %v8616_v4 = vrot.slane %v6097_v12, %v8135_v25  ;;  %v8620_v53 = vrot.slane %v6097_v12, %v8137_v26  ;;  %v6942_v12 = vld [vmem:[%s7982_s12 + $0x4] ss:$8 sps:$4 sm:$0xff]  }
 0xf48   : > { %3287 = vmatpush2.bf16.msra.mxu1 %v6122_v22  ;;  %v8623_v22 = vrot.slane %v6098_v48, %v8135_v25 }
 0xf49   : > { %3288 = vmatprep.subr.bf16.mxu1 %v6121_v21 }
 0xf4a   : > { %3653 = vmatpush2.bf16.msra.mxu0 %v6155_v50  ;;  %v8626_v50 = vrot.slane %v6098_v48, %v8137_v26  ;;  %v6937_v48 = vld [vmem:[%s7982_s12 + $0x100] ss:$8 sps:$4 sm:$0xff]  }
 0xf4b   : > { %3654 = vmatprep.subr.bf16.mxu0 %v6154_v13 }
 0xf4c   : > { %3289 = vmatpush2.bf16.msra.mxu1 %v6120_v3 }
 0xf4d   : > { %3290 = vmatprep.subr.bf16.mxu1 %v6119_v14  ;;  %v6895_v14 = vld [vmem:[%s7982_s12 + $0x170] ss:$8 sps:$4 sm:$0xff]  }
 0xf4e   : > { %3655 = vmatpush2.bf16.msra.mxu0 %v6153_v6 }
 0xf4f   : > { %3656 = vmatprep.subr.bf16.mxu0 %v6152_v31  ;;  %v6897_v31 = vld [vmem:[%s7982_s12 + $0x174] ss:$8 sps:$4 sm:$0xff]  }
 0xf50   : > { %3291 = vmatpush2.bf16.msra.mxu1 %v6118_v36  ;;  %v6901_v36 = vld [vmem:[%s7982_s12 + $0x160] ss:$8 sps:$4 sm:$0xff]  }
 0xf51   : > { %3292 = vmatprep.subr.bf16.mxu1 %v6117_v29  ;;  %v6909_v29 = vld [vmem:[%s7982_s12 + $0x154] ss:$8 sps:$4 sm:$0xff]  }
 0xf52   : > { %3657 = vmatpush2.bf16.msra.mxu0 %v6151_v24  ;;  %v6904_v24 = vld [vmem:[%s7982_s12 + $0x60] ss:$8 sps:$4 sm:$0xff]  }
 0xf53   : > { %3658 = vmatprep.subr.bf16.mxu0 %v6150_v28  ;;  %v6912_v28 = vld [vmem:[%s7982_s12 + $0x54] ss:$8 sps:$4 sm:$0xff]  }
 0xf54   : > { %3293 = vmatpush2.bf16.msra.mxu1 %v6116_v32  ;;  %v6907_v32 = vld [vmem:[%s7982_s12 + $0x150] ss:$8 sps:$4 sm:$0xff]  }
 0xf55   : > { %3949 = vmatprep.subr.bf16.mxu1 %v6897_v31  ;;  %v6966_v31 = vld [vmem:[%s7982_s12 + $0xc4] ss:$8 sps:$4 sm:$0xff]  }
 0xf56   : > { %3659 = vmatpush2.bf16.msra.mxu0 %v6149_v37  ;;  %v6910_v37 = vld [vmem:[%s7982_s12 + $0x50] ss:$8 sps:$4 sm:$0xff]  }
 0xf57   : > { %4162 = vmatprep.subr.bf16.mxu0 %v6900_v9  ;;  %v6964_v9 = vld [vmem:[%s7982_s12 + $0xc0] ss:$8 sps:$4 sm:$0xff]  }
 0xfb9   : > { %v2988_v35 = vpop.xlane.xlu1 %2987 }
 0xfba   : > { %v2996_v40 = vmul.f32 0.00390625, %v2988_v35  ;;  %v6915_v35 = vld [vmem:[%s7982_s12 + $0x144] ss:$8 sps:$4 sm:$0xff]  }
 0xfbb   : > { %v2959_v8 = vpop.xlane.xlu0 %2958 }
 0xfbc   : > { %v2965_v52 = vmul.f32 0.00390625, %v2959_v8  ;;  %v3000_v5 = vadd.f32 1e-05, %v2996_v40  ;;  %v6918_v40 = vld [vmem:[%s7982_s12 + $0x44] ss:$8 sps:$4 sm:$0xff]  }
 0xfbd   : > { %v6913_v8 = vld [vmem:[%s7982_s12 + $0x140] ss:$8 sps:$4 sm:$0xff]  }
 0xfbe   : > { %v8593_v17 = vsub.f32 %v8531_v49, %v2965_v52  ;;  %v8596_v39 = vsub.f32 %v8534_v57, %v2965_v52  ;;  %7159 = vrsqrt.f32 %v3000_v5  ;;  %v6916_v52 = vld [vmem:[%s7982_s12 + $0x40] ss:$8 sps:$4 sm:$0xff]   ;;  %v6921_v5 = vld [vmem:[%s7982_s12 + $0x134] ss:$8 sps:$4 sm:$0xff]  }
 0xfbf   : > { %v2962_v11 = vpop.xlane.xlu0 %2961 }
 0xfc0   : > { %v2966_v30 = vmul.f32 0.00390625, %v2962_v11  ;;  %v2979_v46 = vmul.f32 %v8593_v17, %v8593_v17  ;;  %v2980_v44 = vmul.f32 %v8596_v39, %v8596_v39  ;;  %v6924_v11 = vld [vmem:[%s7982_s12 + $0x34] ss:$8 sps:$4 sm:$0xff]  }
 0xfc2   : > { %v8603_v45 = vsub.f32 %v8545_v62, %v2966_v30  ;;  %v8606_v47 = vsub.f32 %v8548_v2, %v2966_v30  ;;  %v2989_v18 = vadd.f32 %v2980_v44, %v2979_v46  ;;  %v6919_v30 = vld [vmem:[%s7982_s12 + $0x130] ss:$8 sps:$4 sm:$0xff]   ;;  %v6927_v44 = vld [vmem:[%s7982_s12 + $0x124] ss:$8 sps:$4 sm:$0xff]  }
 0xfc3   : > { %v2985_v19 = vpop.xlane.xlu0 %2984  ;;  %v6922_v46 = vld [vmem:[%s7982_s12 + $0x30] ss:$8 sps:$4 sm:$0xff]  }
 0xfc4   : > { %v2995_v51 = vmul.f32 0.00390625, %v2985_v19  ;;  %2990 = vadd.xlane.f32.xlu0 %v2989_v18  ;;  %v2981_v56 = vmul.f32 %v8603_v45, %v8603_v45  ;;  %v2982_v54 = vmul.f32 %v8606_v47, %v8606_v47  ;;  %v6930_v18 = vld [vmem:[%s7982_s12 + $0x24] ss:$8 sps:$4 sm:$0xff]   ;;  %v6925_v19 = vld [vmem:[%s7982_s12 + $0x120] ss:$8 sps:$4 sm:$0xff]  }
 0xfc6   : > { %v2999_v59 = vadd.f32 1e-05, %v2995_v51  ;;  %v2992_v60 = vadd.f32 %v2982_v54, %v2981_v56  ;;  %v6928_v51 = vld [vmem:[%s7982_s12 + $0x20] ss:$8 sps:$4 sm:$0xff]   ;;  %v6933_v56 = vld [vmem:[%s7982_s12 + $0x114] ss:$8 sps:$4 sm:$0xff]  }
 0xfc7   : > { %v6936_v54 = vld [vmem:[%s7982_s12 + $0x14] ss:$8 sps:$4 sm:$0xff]  }
 0xfc8   : > { %7161 = vrsqrt.f32 %v2999_v59  ;;  %2993 = vadd.xlane.f32.xlu1 %v2992_v60  ;;  %v6931_v59 = vld [vmem:[%s7982_s12 + $0x110] ss:$8 sps:$4 sm:$0xff]  }
 0xfc9   : > { %v6934_v60 = vld [vmem:[%s7982_s12 + $0x10] ss:$8 sps:$4 sm:$0xff]  }
 0xfcb   : > { %v7160_v33 = vpop.eup %7159 }
 0xfcc   : > { %v3010_v61 = vmul.f32 %v7160_v33, %v8524_v43  ;;  %v3009_v55 = vmul.f32 %v7160_v33, %v8521_v42  ;;  %v6939_v33 = vld [vmem:[%s7982_s12 + $0x104] ss:$8 sps:$4 sm:$0xff]  }
 0xfce   : > { %v3029_v43 = vmul.f32 %v8616_v4, %v3010_v61  ;;  %v3028_v42 = vmul.f32 %v8620_v53, %v3009_v55  ;;  %v6940_v61 = vld [vmem:[%s7982_s12] ss:$8 sps:$4 sm:$0xff]   ;;  %v6945_v55 = vld [vmem:[%s7982_s12 + $0x1f4] ss:$8 sps:$4 sm:$0xff]  }
 0xfd0   : > { %v3047_v3 = vadd.f32 %v8626_v50, %v3028_v42  ;;  %v6954_v42 = vld [vmem:[%s7982_s12 + $0xe4] ss:$8 sps:$4 sm:$0xff]  }
 0xfd5   : > { %v7162_v7 = vpop.eup %7161 }
 0xfd6   : > { %v3008_v21 = vmul.f32 %v7162_v7, %v8540_v34  ;;  %v3007_v13 = vmul.f32 %v7162_v7, %v8537_v20  ;;  %v3048_v34 = vadd.f32 %v8623_v22, %v3029_v43  ;;  %v6948_v7 = vld [vmem:[%s7982_s12 + $0xf4] ss:$8 sps:$4 sm:$0xff]   ;;  %v6946_v43 = vld [vmem:[%s7982_s12 + $0xf0] ss:$8 sps:$4 sm:$0xff]  }
 0xfd8   : > { %v3027_v15 = vmul.f32 %v8616_v4, %v3008_v21  ;;  %v3026_v63 = vmul.f32 %v8620_v53, %v3007_v13  ;;  %v6943_v21 = vld [vmem:[%s7982_s12 + $0x1f0] ss:$8 sps:$4 sm:$0xff]   ;;  %v6951_v13 = vld [vmem:[%s7982_s12 + $0x1e4] ss:$8 sps:$4 sm:$0xff]  }
 0xfda   : > { %v3046_v0 = vadd.f32 %v8623_v22, %v3027_v15  ;;  %v3045_v1 = vadd.f32 %v8626_v50, %v3026_v63  ;;  %v6949_v15 = vld [vmem:[%s7982_s12 + $0x1e0] ss:$8 sps:$4 sm:$0xff]  }
 0xfdb   : > { %v6952_v63 = vld [vmem:[%s7982_s12 + $0xe0] ss:$8 sps:$4 sm:$0xff]  }
 0xfdc   : > { %v8638_v20 = vpack.c.bf16 %v3048_v34, %v3046_v0  ;;  %v8640_v6 = vpack.c.bf16 %v3047_v3, %v3045_v1  ;;  %v6957_v0 = vld [vmem:[%s7982_s12 + $0x1d4] ss:$8 sps:$4 sm:$0xff]   ;;  %v6955_v1 = vld [vmem:[%s7982_s12 + $0x1d0] ss:$8 sps:$4 sm:$0xff]  }
 0xfdd   : > { %v6960_v34 = vld [vmem:[%s7982_s12 + $0xd4] ss:$8 sps:$4 sm:$0xff]   ;;  %v6958_v3 = vld [vmem:[%s7982_s12 + $0xd0] ss:$8 sps:$4 sm:$0xff]  }
 0xfde   : > { %3294 = vmatprep.mubr.bf16.mxu1 %v8638_v20  ;;  %3660 = vmatprep.mubr.bf16.mxu0 %v8638_v20 }
 0xfdf   : > { %3295 = vmatmul.mubr.bf16.vlgmr.msra.gmra.mxu1 %v8640_v6  ;;  %3661 = vmatmul.mubr.bf16.vlgmr.msra.gmra.mxu0 %v8640_v6 }
 0xfe0   : > { %3950 = vmatpush1.bf16.msra.mxu1 %v6895_v14  ;;  %4163 = vmatpush1.bf16.msra.mxu0 %v6898_v16  ;;  %v6963_v14 = vld [vmem:[%s7982_s12 + $0x1c4] ss:$8 sps:$4 sm:$0xff]   ;;  %v6961_v16 = vld [vmem:[%s7982_s12 + $0x1c0] ss:$8 sps:$4 sm:$0xff]  }
 0xfe1   : > { %3951 = vmatprep.subr.bf16.mxu1 %v6903_v10  ;;  %4164 = vmatprep.subr.bf16.mxu0 %v6906_v58  ;;  %v6969_v10 = vld [vmem:[%s7982_s12 + $0x1b4] ss:$8 sps:$4 sm:$0xff]  }
 0xfe2   : > { %v6972_v58 = vld [vmem:[%s7982_s12 + $0xb4] ss:$8 sps:$4 sm:$0xff]  }
 0xfe4   : > { %3952 = vmatpush1.bf16.msra.mxu1 %v6901_v36  ;;  %4165 = vmatpush1.bf16.msra.mxu0 %v6904_v24  ;;  %v6967_v36 = vld [vmem:[%s7982_s12 + $0x1b0] ss:$8 sps:$4 sm:$0xff]  }
 0xfe5   : > { %3953 = vmatprep.subr.bf16.mxu1 %v6909_v29  ;;  %4166 = vmatprep.subr.bf16.mxu0 %v6912_v28  ;;  %v6970_v24 = vld [vmem:[%s7982_s12 + $0xb0] ss:$8 sps:$4 sm:$0xff]   ;;  %v6975_v29 = vld [vmem:[%s7982_s12 + $0x1a4] ss:$8 sps:$4 sm:$0xff]  }
 0xfe6   : > { %v6978_v28 = vld [vmem:[%s7982_s12 + $0xa4] ss:$8 sps:$4 sm:$0xff]  }
 0xfe8   : > { %3954 = vmatpush1.bf16.msra.mxu1 %v6907_v32  ;;  %4167 = vmatpush1.bf16.msra.mxu0 %v6910_v37  ;;  %v6973_v32 = vld [vmem:[%s7982_s12 + $0x1a0] ss:$8 sps:$4 sm:$0xff]  }
 0xfe9   : > { %3955 = vmatprep.subr.bf16.mxu1 %v6915_v35  ;;  %4168 = vmatprep.subr.bf16.mxu0 %v6918_v40  ;;  %v6976_v37 = vld [vmem:[%s7982_s12 + $0xa0] ss:$8 sps:$4 sm:$0xff]   ;;  %v6981_v35 = vld [vmem:[%s7982_s12 + $0x194] ss:$8 sps:$4 sm:$0xff]  }
 0xfea   : > { %v6984_v40 = vld [vmem:[%s7982_s12 + $0x94] ss:$8 sps:$4 sm:$0xff]  }
 0xfec   : > { %3956 = vmatpush1.bf16.msra.mxu1 %v6913_v8  ;;  %4169 = vmatpush1.bf16.msra.mxu0 %v6916_v52  ;;  %v6979_v8 = vld [vmem:[%s7982_s12 + $0x190] ss:$8 sps:$4 sm:$0xff]  }
 0xfed   : > { %3957 = vmatprep.subr.bf16.mxu1 %v6921_v5  ;;  %4170 = vmatprep.subr.bf16.mxu0 %v6924_v11  ;;  %v6982_v52 = vld [vmem:[%s7982_s12 + $0x90] ss:$8 sps:$4 sm:$0xff]   ;;  %v6987_v5 = vld [vmem:[%s7982_s12 + $0x184] ss:$8 sps:$4 sm:$0xff]  }
 0xfee   : > { %v6990_v11 = vld [vmem:[%s7982_s12 + $0x84] ss:$8 sps:$4 sm:$0xff]  }
 0xff0   : > { %3958 = vmatpush1.bf16.msra.mxu1 %v6919_v30  ;;  %4171 = vmatpush1.bf16.msra.mxu0 %v6922_v46  ;;  %v6985_v30 = vld [vmem:[%s7982_s12 + $0x180] ss:$8 sps:$4 sm:$0xff]  }
 0xff1   : > { %3959 = vmatprep.subr.bf16.mxu1 %v6927_v44  ;;  %4172 = vmatprep.subr.bf16.mxu0 %v6930_v18  ;;  %v6988_v46 = vld [vmem:[%s7982_s12 + $0x80] ss:$8 sps:$4 sm:$0xff]   ;;  %v8711_v44 = vld [vmem:[%s7980_s28 + $0x1d0] sm:$0xff] }
 0xff2   : > { %v8714_v18 = vld [vmem:[%s7980_s28 + $0x1f0] sm:$0xff] }
 0xff4   : > { %3960 = vmatpush1.bf16.msra.mxu1 %v6925_v19  ;;  %4173 = vmatpush1.bf16.msra.mxu0 %v6928_v51  ;;  %v6244_v19 = vcombine.low %v8711_v44, %v8714_v18  ;;  %v6245_v51 = vcombine.high %v8711_v44, %v8714_v18 }
 0xff5   : > { %3961 = vmatprep.subr.bf16.mxu1 %v6933_v56  ;;  %4174 = vmatprep.subr.bf16.mxu0 %v6936_v54 }
 0xff8   : > { %3962 = vmatpush1.bf16.msra.mxu1 %v6931_v59  ;;  %4175 = vmatpush1.bf16.msra.mxu0 %v6934_v60 }
 0xff9   : > { %3963 = vmatprep.subr.bf16.mxu1 %v6939_v33  ;;  %4176 = vmatprep.subr.bf16.mxu0 %v6942_v12 }
 0xffc   : > { %3964 = vmatpush1.bf16.msra.mxu1 %v6937_v48  ;;  %4177 = vmatpush1.bf16.msra.mxu0 %v6940_v61 }
 0xffd   : > { %3965 = vmatprep.subr.bf16.mxu1 %v6945_v55  ;;  %4178 = vmatprep.subr.bf16.mxu0 %v6948_v7 }
0x1000   : > { %3966 = vmatpush2.bf16.msra.mxu1 %v6943_v21  ;;  %4179 = vmatpush2.bf16.msra.mxu0 %v6946_v43 }
0x1001   : > { %3967 = vmatprep.subr.bf16.mxu1 %v6951_v13  ;;  %4180 = vmatprep.subr.bf16.mxu0 %v6954_v42 }
0x1004   : > { %3968 = vmatpush2.bf16.msra.mxu1 %v6949_v15  ;;  %4181 = vmatpush2.bf16.msra.mxu0 %v6952_v63 }
0x1005   : > { %3969 = vmatprep.subr.bf16.mxu1 %v6957_v0  ;;  %4182 = vmatprep.subr.bf16.mxu0 %v6960_v34 }
0x1008   : > { %3970 = vmatpush2.bf16.msra.mxu1 %v6955_v1  ;;  %4183 = vmatpush2.bf16.msra.mxu0 %v6958_v3 }
0x1009   : > { %3971 = vmatprep.subr.bf16.mxu1 %v6963_v14  ;;  %4184 = vmatprep.subr.bf16.mxu0 %v6966_v31 }
0x100c   : > { %3972 = vmatpush2.bf16.msra.mxu1 %v6961_v16  ;;  %4185 = vmatpush2.bf16.msra.mxu0 %v6964_v9 }
0x100d   : > { %3973 = vmatprep.subr.bf16.mxu1 %v6969_v10  ;;  %4186 = vmatprep.subr.bf16.mxu0 %v6972_v58 }
0x1010   : > { %3974 = vmatpush2.bf16.msra.mxu1 %v6967_v36  ;;  %4187 = vmatpush2.bf16.msra.mxu0 %v6970_v24 }
0x1011   : > { %3975 = vmatprep.subr.bf16.mxu1 %v6975_v29  ;;  %4188 = vmatprep.subr.bf16.mxu0 %v6978_v28 }
0x1014   : > { %3976 = vmatpush2.bf16.msra.mxu1 %v6973_v32  ;;  %4189 = vmatpush2.bf16.msra.mxu0 %v6976_v37 }
0x1015   : > { %3977 = vmatprep.subr.bf16.mxu1 %v6981_v35  ;;  %4190 = vmatprep.subr.bf16.mxu0 %v6984_v40 }
0x1018   : > { %3978 = vmatpush2.bf16.msra.mxu1 %v6979_v8  ;;  %4191 = vmatpush2.bf16.msra.mxu0 %v6982_v52 }
0x1019   : > { %3979 = vmatprep.subr.bf16.mxu1 %v6987_v5  ;;  %4192 = vmatprep.subr.bf16.mxu0 %v6990_v11 }
0x101c   : > { %3980 = vmatpush2.bf16.msra.mxu1 %v6985_v30  ;;  %4193 = vmatpush2.bf16.msra.mxu0 %v6988_v46 }
0x101d   : > { %4420 = vmatprep.subr.bf16.mxu1 %v6245_v51 }
0x104d   : > { %v2991_v56 = vpop.xlane.xlu0 %2990 }
0x104e   : > { %v2997_v54 = vmul.f32 0.00390625, %v2991_v56 }
0x1050   : > { %v3001_v59 = vadd.f32 1e-05, %v2997_v54 }
0x1051   : > { %v2994_v60 = vpop.xlane.xlu1 %2993 }
0x1052   : > { %7163 = vrsqrt.f32 %v3001_v59  ;;  %v2998_v33 = vmul.f32 0.00390625, %v2994_v60 }
0x1054   : > { %v3002_v12 = vadd.f32 1e-05, %v2998_v33 }
0x1056   : > { %7165 = vrsqrt.f32 %v3002_v12 }
0x105f   : > { %v7164_v48 = vpop.eup %7163 }
0x1060   : > { %v3012_v61 = vmul.f32 %v7164_v48, %v8596_v39  ;;  %v3011_v55 = vmul.f32 %v7164_v48, %v8593_v17 }
0x1062   : > { %v3031_v43 = vmul.f32 %v8616_v4, %v3012_v61  ;;  %v3030_v42 = vmul.f32 %v8620_v53, %v3011_v55 }
0x1063   : > { %v7166_v7 = vpop.eup %7165 }
0x1064   : > { %v3014_v21 = vmul.f32 %v7166_v7, %v8606_v47  ;;  %v3013_v13 = vmul.f32 %v7166_v7, %v8603_v45  ;;  %v3050_v0 = vadd.f32 %v8623_v22, %v3031_v43  ;;  %v3049_v17 = vadd.f32 %v8626_v50, %v3030_v42  ;;  %v6099_v45 = vld [vmem:[%s7966_s29 + $0x10] ss:$8 sm:$0x3] }
0x1066   : > { %v3033_v15 = vmul.f32 %v8616_v4, %v3014_v21  ;;  %v3032_v63 = vmul.f32 %v8620_v53, %v3013_v13  ;;  %v6132_v4 = vld [vmem:[%s7966_s29 + $0x11] ss:$8 sm:$0x3]  ;;  %v8743_v53 = vrot.slane %v6099_v45, %v8137_v26 }
0x1067   : > { %v8752_v3 = vrot.slane %v6132_v4, %v8135_v25 }
0x1068   : > { %v3052_v39 = vadd.f32 %v8623_v22, %v3033_v15  ;;  %v3051_v47 = vadd.f32 %v8626_v50, %v3032_v63  ;;  %v8746_v22 = vrot.slane %v6132_v4, %v8137_v26  ;;  %v8749_v50 = vrot.slane %v6099_v45, %v8135_v25 }
0x106a   : > { %v8732_v34 = vpack.c.bf16 %v3052_v39, %v3050_v0  ;;  %v8734_v1 = vpack.c.bf16 %v3051_v47, %v3049_v17 }
0x106c   : > { %3304 = vmatprep.mubr.bf16.mxu1 %v8732_v34  ;;  %3670 = vmatprep.mubr.bf16.mxu0 %v8732_v34 }
0x106d   : > { %3305 = vmatmul.mubr.bf16.gmra.mxu1 %v8734_v1  ;;  %3671 = vmatmul.mubr.bf16.gmra.mxu0 %v8734_v1 }
0x109f   : > { %v3296_v14 = vpop.f32.mrf.mxu1  ;;  %v3662_v31 = vpop.f32.mrf.mxu0 }
0x10a0   : > { %v8755_v16 = vadd.f32 %v3296_v14, %v8743_v53  ;;  %v8758_v9 = vadd.f32 %v3662_v31, %v8746_v22 }
0x10a1   : > { %v3298_v10 = vpop.f32.mrf.mxu1  ;;  %v3664_v58 = vpop.f32.mrf.mxu0 }
0x10a2   : > { %v3315_v36 = vmul.f32 %v8755_v16, %v8755_v16  ;;  %v3681_v24 = vmul.f32 %v8758_v9, %v8758_v9  ;;  %v8765_v29 = vadd.f32 %v3298_v10, %v8749_v50  ;;  %v8768_v28 = vadd.f32 %v3664_v58, %v8752_v3 }
0x10a3   : > { %v3300_v32 = vpop.f32.mrf.mxu1  ;;  %v3666_v37 = vpop.f32.mrf.mxu0 }
0x10a4   : > { %v3323_v35 = vmul.f32 %v3315_v36, %v8755_v16  ;;  %v3689_v40 = vmul.f32 %v3681_v24, %v8758_v9  ;;  %v3316_v8 = vmul.f32 %v8765_v29, %v8765_v29  ;;  %v3682_v52 = vmul.f32 %v8768_v28, %v8768_v28 }
0x10a5   : > { %v8777_v5 = vadd.f32 %v3300_v32, %v8743_v53  ;;  %v8780_v11 = vadd.f32 %v3666_v37, %v8746_v22  ;;  %v3302_v30 = vpop.f32.mrf.mxu1  ;;  %v3668_v46 = vpop.f32.mrf.mxu0 }
0x10a6   : > { %v3331_v51 = vmul.f32 0.044715, %v3323_v35  ;;  %v3697_v56 = vmul.f32 0.044715, %v3689_v40  ;;  %v3324_v54 = vmul.f32 %v3316_v8, %v8765_v29  ;;  %v3690_v59 = vmul.f32 %v3682_v52, %v8768_v28 }
0x10a7   : > { %v3317_v60 = vmul.f32 %v8777_v5, %v8777_v5  ;;  %v3683_v33 = vmul.f32 %v8780_v11, %v8780_v11  ;;  %v8789_v12 = vadd.f32 %v3302_v30, %v8749_v50  ;;  %v8792_v48 = vadd.f32 %v3668_v46, %v8752_v3 }
0x10a8   : > { %v3339_v61 = vadd.f32 %v3331_v51, %v8755_v16  ;;  %v3705_v55 = vadd.f32 %v3697_v56, %v8758_v9  ;;  %v3332_v7 = vmul.f32 0.044715, %v3324_v54  ;;  %v3698_v21 = vmul.f32 0.044715, %v3690_v59 }
0x10a9   : > { %v3325_v43 = vmul.f32 %v3317_v60, %v8777_v5  ;;  %v3691_v13 = vmul.f32 %v3683_v33, %v8780_v11  ;;  %v3318_v42 = vmul.f32 %v8789_v12, %v8789_v12  ;;  %v3684_v15 = vmul.f32 %v8792_v48, %v8792_v48 }
0x10aa   : > { %v3347_v63 = vmul.f32 0.7978846, %v3339_v61  ;;  %v3713_v0 = vmul.f32 0.7978846, %v3705_v55  ;;  %v3340_v39 = vadd.f32 %v3332_v7, %v8765_v29  ;;  %v3706_v17 = vadd.f32 %v3698_v21, %v8768_v28 }
0x10ab   : > { %v3333_v47 = vmul.f32 0.044715, %v3325_v43  ;;  %v3699_v45 = vmul.f32 0.044715, %v3691_v13  ;;  %v3326_v4 = vmul.f32 %v3318_v42, %v8789_v12  ;;  %v3692_v14 = vmul.f32 %v3684_v15, %v8792_v48 }
0x10ac   : > { %7167 = vtanh.f32 %v3347_v63  ;;  %v3348_v31 = vmul.f32 0.7978846, %v3340_v39  ;;  %v3714_v10 = vmul.f32 0.7978846, %v3706_v17 }
0x10ad   : > { %7169 = vtanh.f32 %v3713_v0  ;;  %v3341_v58 = vadd.f32 %v3333_v47, %v8777_v5  ;;  %v3707_v36 = vadd.f32 %v3699_v45, %v8780_v11  ;;  %v3334_v24 = vmul.f32 0.044715, %v3326_v4 }
0x10ae   : > { %7171 = vtanh.f32 %v3348_v31  ;;  %v3700_v32 = vmul.f32 0.044715, %v3692_v14 }
0x10af   : > { %7173 = vtanh.f32 %v3714_v10  ;;  %v3349_v37 = vmul.f32 0.7978846, %v3341_v58  ;;  %v3715_v35 = vmul.f32 0.7978846, %v3707_v36  ;;  %v3342_v40 = vadd.f32 %v3334_v24, %v8789_v12 }
0x10b0   : > { %v3708_v8 = vadd.f32 %v3700_v32, %v8792_v48 }
0x10b1   : > { %7175 = vtanh.f32 %v3349_v37  ;;  %v3350_v52 = vmul.f32 0.7978846, %v3342_v40  ;;  %v4227_v40 = vld [vmem:[%s7980_s28 + $0x190] sm:$0xff] }
0x10b2   : > { %7177 = vtanh.f32 %v3715_v35  ;;  %v3716_v30 = vmul.f32 0.7978846, %v3708_v8  ;;  %v4228_v8 = vld [vmem:[%s7980_s28 + $0x1b0] sm:$0xff] }
0x10b3   : > { %7179 = vtanh.f32 %v3350_v52 }
0x10b4   : > { %7181 = vtanh.f32 %v3716_v30 }
0x10b9   : > { %v7168_v46 = vpop.eup %7167 }
0x10ba   : > { %v7170_v51 = vpop.eup %7169  ;;  %v3363_v33 = vadd.f32 1.0, %v7168_v46  ;;  %v6243_v46 = vcombine.high %v4227_v40, %v4228_v8 }
0x10bb   : > { %v7172_v56 = vpop.eup %7171  ;;  %v3729_v7 = vadd.f32 1.0, %v7170_v51  ;;  %v4224_v51 = vld [vmem:[%s7980_s28 + $0x130] sm:$0xff] }
0x10bc   : > { %v7174_v54 = vpop.eup %7173  ;;  %v3364_v59 = vadd.f32 1.0, %v7172_v56  ;;  %v3371_v39 = vmul.f32 0.5, %v3363_v33  ;;  %v4220_v33 = vld [vmem:[%s7980_s28 + $0xb0] sm:$0xff] }
0x10bd   : > { %v3730_v61 = vadd.f32 1.0, %v7174_v54  ;;  %v3737_v4 = vmul.f32 0.5, %v3729_v7  ;;  %v4217_v7 = vld [vmem:[%s7980_s28 + $0x50] sm:$0xff] }
0x10be   : > { %v7176_v60 = vpop.eup %7175  ;;  %v3372_v0 = vmul.f32 0.5, %v3364_v59  ;;  %v3379_v32 = vmul.f32 %v3371_v39, %v8755_v16  ;;  %v4225_v16 = vld [vmem:[%s7980_s28 + $0x150] sm:$0xff] }
0x10bf   : > { %v7178_v55 = vpop.eup %7177  ;;  %v3365_v21 = vadd.f32 1.0, %v7176_v60  ;;  %v3738_v45 = vmul.f32 0.5, %v3730_v61  ;;  %v3745_v52 = vmul.f32 %v3737_v4, %v8758_v9  ;;  %v6242_v9 = vcombine.low %v4227_v40, %v4228_v8  ;;  %v4221_v59 = vld [vmem:[%s7980_s28 + $0xd0] sm:$0xff] }
0x10c0   : > { %v7180_v43 = vpop.eup %7179  ;;  %v3731_v13 = vadd.f32 1.0, %v7178_v55  ;;  %v3380_v36 = vmul.f32 %v3372_v0, %v8765_v29  ;;  %v4222_v60 = vld [vmem:[%s7980_s28 + $0xf0] sm:$0xff] }
0x10c1   : > { %v7182_v42 = vpop.eup %7181  ;;  %v3373_v15 = vmul.f32 0.5, %v3365_v21  ;;  %v3366_v63 = vadd.f32 1.0, %v7180_v43  ;;  %v3746_v37 = vmul.f32 %v3738_v45, %v8768_v28  ;;  %v4226_v28 = vld [vmem:[%s7980_s28 + $0x170] sm:$0xff]  ;;  %v6237_v18 = vcombine.high %v4221_v59, %v4222_v60  ;;  %v8834_v43 = vld [vmem:[%s7980_s28 + $0x1d8] sm:$0xff] }
0x10c2   : > { %v3739_v17 = vmul.f32 0.5, %v3731_v13  ;;  %v3732_v47 = vadd.f32 1.0, %v7182_v42  ;;  %v6240_v56 = vcombine.low %v4225_v16, %v4226_v28  ;;  %v6236_v61 = vcombine.low %v4221_v59, %v4222_v60  ;;  %v4218_v21 = vld [vmem:[%s7980_s28 + $0x70] sm:$0xff]  ;;  %v8837_v13 = vld [vmem:[%s7980_s28 + $0x1f8] sm:$0xff] }
0x10c3   : > { %v3374_v14 = vmul.f32 0.5, %v3366_v63  ;;  %v3381_v31 = vmul.f32 %v3373_v15, %v8777_v5  ;;  %v6309_v42 = vcombine.low %v8834_v43, %v8837_v13  ;;  %v6233_v63 = vcombine.high %v4217_v7, %v4218_v21  ;;  %v4215_v0 = vld [vmem:[%s7980_s28 + $0x10] sm:$0xff] }
0x10c4   : > { %v3740_v10 = vmul.f32 0.5, %v3732_v47  ;;  %v3747_v58 = vmul.f32 %v3739_v17, %v8780_v11  ;;  %v4216_v39 = vld [vmem:[%s7980_s28 + $0x30] sm:$0xff]  ;;  %v6232_v17 = vcombine.low %v4217_v7, %v4218_v21  ;;  %v6996_v21 = vld [vmem:[%s7982_s12 + $0x264] ss:$8 sps:$4 sm:$0xff]  }
0x10c5   : > { %v3382_v24 = vmul.f32 %v3374_v14, %v8789_v12  ;;  %v3387_v11 = vpack.c.bf16 %v3381_v31, %v3379_v32  ;;  %v6241_v12 = vcombine.high %v4225_v16, %v4226_v28  ;;  %v6231_v47 = vcombine.high %v4215_v0, %v4216_v39  ;;  %v4245_v45 = vld [vmem:[%s7980_s28 + $0x3d0] sm:$0xff] }
0x10c6   : > { %v3748_v35 = vmul.f32 %v3740_v10, %v8792_v48  ;;  %v3753_v29 = vpack.c.bf16 %v3747_v58, %v3745_v52  ;;  %v4223_v48 = vld [vmem:[%s7980_s28 + $0x110] sm:$0xff]  ;;  %v6230_v14 = vcombine.low %v4215_v0, %v4216_v39 }
0x10c7   : > { %v3388_v5 = vpack.c.bf16 %v3382_v24, %v3380_v36  ;;  %v6239_v54 = vcombine.high %v4223_v48, %v4224_v51  ;;  %v6238_v44 = vcombine.low %v4223_v48, %v4224_v51  ;;  %v4246_v4 = vld [vmem:[%s7980_s28 + $0x3f0] sm:$0xff] }
0x10c8   : > { %v3754_v30 = vpack.c.bf16 %v3748_v35, %v3746_v37  ;;  %v6261_v31 = vcombine.high %v4245_v45, %v4246_v4  ;;  %v4243_v10 = vld [vmem:[%s7980_s28 + $0x390] sm:$0xff]  ;;  %v6260_v36 = vcombine.low %v4245_v45, %v4246_v4 }
0x10c9   : > { %4194 = vmatprep.mubr.bf16.mxu0 %v3388_v5  ;;  %v4244_v58 = vld [vmem:[%s7980_s28 + $0x3b0] sm:$0xff] }
0x10ca   : > { %3981 = vmatprep.mubr.bf16.mxu1 %v3754_v30  ;;  %4195 = vmatmul.mubr.bf16.vlgmr.msra.gmra.mxu0 %v3387_v11  ;;  %v6259_v24 = vcombine.high %v4243_v10, %v4244_v58  ;;  %v4241_v32 = vld [vmem:[%s7980_s28 + $0x350] sm:$0xff]  ;;  %v6258_v35 = vcombine.low %v4243_v10, %v4244_v58 }
0x10cb   : > { %3982 = vmatmul.mubr.bf16.vlgmr.msra.gmra.mxu1 %v3753_v29  ;;  %v4242_v37 = vld [vmem:[%s7980_s28 + $0x370] sm:$0xff] }
0x10cc   : > { %4421 = vmatpush1.bf16.msra.mxu1 %v6244_v19  ;;  %v4219_v19 = vld [vmem:[%s7980_s28 + $0x90] sm:$0xff]  ;;  %v6257_v40 = vcombine.high %v4241_v32, %v4242_v37  ;;  %v6256_v5 = vcombine.low %v4241_v32, %v4242_v37  ;;  %v7002_v37 = vld [vmem:[%s7982_s12 + $0x244] ss:$8 sps:$4 sm:$0xff]  }
0x10cd   : > { %4422 = vmatprep.subr.bf16.mxu1 %v6243_v46  ;;  %v6235_v55 = vcombine.high %v4219_v19, %v4220_v33  ;;  %v6234_v15 = vcombine.low %v4219_v19, %v4220_v33  ;;  %v4239_v8 = vld [vmem:[%s7980_s28 + $0x310] sm:$0xff] }
0x10ce   : > { %v4240_v52 = vld [vmem:[%s7980_s28 + $0x330] sm:$0xff] }
0x10cf   : > { %v6255_v11 = vcombine.high %v4239_v8, %v4240_v52  ;;  %v4237_v30 = vld [vmem:[%s7980_s28 + $0x2d0] sm:$0xff]  ;;  %v6254_v46 = vcombine.low %v4239_v8, %v4240_v52 }
0x10d0   : > { %4423 = vmatpush1.bf16.msra.mxu1 %v6242_v9  ;;  %v4238_v29 = vld [vmem:[%s7980_s28 + $0x2f0] sm:$0xff] }
0x10d1   : > { %4424 = vmatprep.subr.bf16.mxu1 %v6241_v12  ;;  %v6253_v16 = vcombine.high %v4237_v30, %v4238_v29  ;;  %v4235_v28 = vld [vmem:[%s7980_s28 + $0x290] sm:$0xff]  ;;  %v6252_v12 = vcombine.low %v4237_v30, %v4238_v29 }
0x10d2   : > { %v4236_v9 = vld [vmem:[%s7980_s28 + $0x2b0] sm:$0xff] }
0x10d3   : > { %v6251_v48 = vcombine.high %v4235_v28, %v4236_v9  ;;  %v4233_v51 = vld [vmem:[%s7980_s28 + $0x250] sm:$0xff] }
0x10d4   : > { %4425 = vmatpush1.bf16.msra.mxu1 %v6240_v56  ;;  %v4234_v56 = vld [vmem:[%s7980_s28 + $0x270] sm:$0xff] }
0x10d5   : > { %4426 = vmatprep.subr.bf16.mxu1 %v6239_v54  ;;  %v6250_v54 = vcombine.low %v4235_v28, %v4236_v9  ;;  %v6249_v59 = vcombine.high %v4233_v51, %v4234_v56  ;;  %v4231_v60 = vld [vmem:[%s7980_s28 + $0x210] sm:$0xff] }
0x10d6   : > { %v6993_v7 = vld [vmem:[%s7982_s12 + $0x274] ss:$8 sps:$4 sm:$0xff]  }
0x10d7   : > { %4741 = vmatprep.subr.bf16.mxu0 %v6993_v7  ;;  %v6999_v39 = vld [vmem:[%s7982_s12 + $0x254] ss:$8 sps:$4 sm:$0xff]  }
0x10d8   : > { %4427 = vmatpush1.bf16.msra.mxu1 %v6238_v44  ;;  %v4232_v44 = vld [vmem:[%s7980_s28 + $0x230] sm:$0xff] }
0x10d9   : > { %4428 = vmatprep.subr.bf16.mxu1 %v6237_v18  ;;  %v6248_v18 = vcombine.low %v4233_v51, %v4234_v56  ;;  %v6247_v19 = vcombine.high %v4231_v60, %v4232_v44  ;;  %v6246_v33 = vcombine.low %v4231_v60, %v4232_v44 }
0x10dc   : > { %4429 = vmatpush1.bf16.msra.mxu1 %v6236_v61  ;;  %v6310_v61 = vcombine.high %v8834_v43, %v8837_v13 }
0x10dd   : > { %4430 = vmatprep.subr.bf16.mxu1 %v6235_v55  ;;  %v6991_v55 = vld [vmem:[%s7982_s12 + $0x270] ss:$8 sps:$4 sm:$0xff]  }
0x10de   : > { %4742 = vmatpush1.bf16.msra.mxu0 %v6991_v55 }
0x10df   : > { %4743 = vmatprep.subr.bf16.mxu0 %v6996_v21 }
0x10e0   : > { %4431 = vmatpush1.bf16.msra.mxu1 %v6234_v15  ;;  %v6994_v15 = vld [vmem:[%s7982_s12 + $0x260] ss:$8 sps:$4 sm:$0xff]  }
0x10e1   : > { %4432 = vmatprep.subr.bf16.mxu1 %v6233_v63 }
0x10e2   : > { %4744 = vmatpush1.bf16.msra.mxu0 %v6994_v15 }
0x10e3   : > { %4745 = vmatprep.subr.bf16.mxu0 %v6999_v39 }
0x10e4   : > { %4433 = vmatpush1.bf16.msra.mxu1 %v6232_v17 }
0x10e5   : > { %4434 = vmatprep.subr.bf16.mxu1 %v6231_v47 }
0x10e8   : > { %4435 = vmatpush1.bf16.msra.mxu1 %v6230_v14 }
0x10e9   : > { %4436 = vmatprep.subr.bf16.mxu1 %v6261_v31 }
0x10ec   : > { %4437 = vmatpush2.bf16.msra.mxu1 %v6260_v36  ;;  %v6997_v36 = vld [vmem:[%s7982_s12 + $0x250] ss:$8 sps:$4 sm:$0xff]  }
0x10ed   : > { %4438 = vmatprep.subr.bf16.mxu1 %v6259_v24  ;;  %4746 = vmatpush1.bf16.msra.mxu0 %v6997_v36 }
0x10ee   : > { %4747 = vmatprep.subr.bf16.mxu0 %v7002_v37 }
0x10f0   : > { %4439 = vmatpush2.bf16.msra.mxu1 %v6258_v35 }
0x10f1   : > { %4440 = vmatprep.subr.bf16.mxu1 %v6257_v40 }
0x10f4   : > { %4441 = vmatpush2.bf16.msra.mxu1 %v6256_v5 }
0x10f5   : > { %4442 = vmatprep.subr.bf16.mxu1 %v6255_v11 }
0x10f8   : > { %4443 = vmatpush2.bf16.msra.mxu1 %v6254_v46 }
0x10f9   : > { %4444 = vmatprep.subr.bf16.mxu1 %v6253_v16 }
0x10fc   : > { %4445 = vmatpush2.bf16.msra.mxu1 %v6252_v12  ;;  %v7000_v12 = vld [vmem:[%s7982_s12 + $0x240] ss:$8 sps:$4 sm:$0xff]  }
0x10fd   : > { %4446 = vmatprep.subr.bf16.mxu1 %v6251_v48  ;;  %4748 = vmatpush1.bf16.msra.mxu0 %v7000_v12 }
0x1100   : > { %4447 = vmatpush2.bf16.msra.mxu1 %v6250_v54 }
0x1101   : > { %4448 = vmatprep.subr.bf16.mxu1 %v6249_v59 }
0x1104   : > { %4449 = vmatpush2.bf16.msra.mxu1 %v6248_v18 }
0x1105   : > { %4450 = vmatprep.subr.bf16.mxu1 %v6247_v19 }
0x1108   : > { %4451 = vmatpush2.bf16.msra.mxu1 %v6246_v33 }
0x1109   : > { %5007 = vmatprep.subr.bf16.mxu1 %v6310_v61 }
0x112d   : > { %v3306_v63 = vpop.f32.mrf.mxu1  ;;  %v3672_v0 = vpop.f32.mrf.mxu0 }
0x112e   : > { %v8867_v17 = vadd.f32 %v3306_v63, %v8743_v53  ;;  %v8870_v47 = vadd.f32 %v3672_v0, %v8746_v22 }
0x112f   : > { %v3308_v45 = vpop.f32.mrf.mxu1  ;;  %v3674_v4 = vpop.f32.mrf.mxu0 }
0x1130   : > { %v3319_v14 = vmul.f32 %v8867_v17, %v8867_v17  ;;  %v3685_v31 = vmul.f32 %v8870_v47, %v8870_v47  ;;  %v8877_v10 = vadd.f32 %v3308_v45, %v8749_v50  ;;  %v8880_v58 = vadd.f32 %v3674_v4, %v8752_v3 }
0x1131   : > { %v3310_v24 = vpop.f32.mrf.mxu1  ;;  %v3676_v32 = vpop.f32.mrf.mxu0 }
0x1132   : > { %v3327_v35 = vmul.f32 %v3319_v14, %v8867_v17  ;;  %v3693_v40 = vmul.f32 %v3685_v31, %v8870_v47  ;;  %v3320_v8 = vmul.f32 %v8877_v10, %v8877_v10  ;;  %v3686_v52 = vmul.f32 %v8880_v58, %v8880_v58 }
0x1133   : > { %v8891_v5 = vadd.f32 %v3310_v24, %v8743_v53  ;;  %v8894_v11 = vadd.f32 %v3676_v32, %v8746_v22  ;;  %v3312_v30 = vpop.f32.mrf.mxu1  ;;  %v3678_v29 = vpop.f32.mrf.mxu0 }
0x1134   : > { %v3335_v46 = vmul.f32 0.044715, %v3327_v35  ;;  %v3701_v16 = vmul.f32 0.044715, %v3693_v40  ;;  %v3328_v28 = vmul.f32 %v3320_v8, %v8877_v10  ;;  %v3694_v9 = vmul.f32 %v3686_v52, %v8880_v58 }
0x1135   : > { %v3321_v48 = vmul.f32 %v8891_v5, %v8891_v5  ;;  %v3687_v53 = vmul.f32 %v8894_v11, %v8894_v11  ;;  %v8904_v51 = vadd.f32 %v3312_v30, %v8749_v50  ;;  %v8907_v22 = vadd.f32 %v3678_v29, %v8752_v3 }
0x1136   : > { %v3343_v56 = vadd.f32 %v3335_v46, %v8867_v17  ;;  %v3709_v54 = vadd.f32 %v3701_v16, %v8870_v47  ;;  %v3336_v59 = vmul.f32 0.044715, %v3328_v28  ;;  %v3702_v60 = vmul.f32 0.044715, %v3694_v9 }
0x1137   : > { %v3329_v44 = vmul.f32 %v3321_v48, %v8891_v5  ;;  %v3695_v18 = vmul.f32 %v3687_v53, %v8894_v11  ;;  %v3322_v19 = vmul.f32 %v8904_v51, %v8904_v51  ;;  %v3688_v50 = vmul.f32 %v8907_v22, %v8907_v22 }
0x1138   : > { %v3351_v33 = vmul.f32 0.7978846, %v3343_v56  ;;  %v3717_v3 = vmul.f32 0.7978846, %v3709_v54  ;;  %v3344_v61 = vadd.f32 %v3336_v59, %v8877_v10  ;;  %v3710_v55 = vadd.f32 %v3702_v60, %v8880_v58 }
0x1139   : > { %v3337_v7 = vmul.f32 0.044715, %v3329_v44  ;;  %v3703_v21 = vmul.f32 0.044715, %v3695_v18  ;;  %v3330_v15 = vmul.f32 %v3322_v19, %v8904_v51  ;;  %v3696_v63 = vmul.f32 %v3688_v50, %v8907_v22 }
0x113a   : > { %7183 = vtanh.f32 %v3351_v33  ;;  %v3352_v0 = vmul.f32 0.7978846, %v3344_v61  ;;  %v3718_v39 = vmul.f32 0.7978846, %v3710_v55 }
0x113b   : > { %7185 = vtanh.f32 %v3717_v3  ;;  %v3345_v45 = vadd.f32 %v3337_v7, %v8891_v5  ;;  %v3711_v4 = vadd.f32 %v3703_v21, %v8894_v11  ;;  %v3338_v14 = vmul.f32 0.044715, %v3330_v15 }
0x113c   : > { %7187 = vtanh.f32 %v3352_v0  ;;  %v3704_v31 = vmul.f32 0.044715, %v3696_v63 }
0x113d   : > { %7189 = vtanh.f32 %v3718_v39  ;;  %v3353_v36 = vmul.f32 0.7978846, %v3345_v45  ;;  %v3719_v24 = vmul.f32 0.7978846, %v3711_v4  ;;  %v3346_v32 = vadd.f32 %v3338_v14, %v8904_v51 }
0x113e   : > { %v3712_v37 = vadd.f32 %v3704_v31, %v8907_v22 }
0x113f   : > { %7191 = vtanh.f32 %v3353_v36  ;;  %v3354_v35 = vmul.f32 0.7978846, %v3346_v32  ;;  %v4810_v32 = vld [vmem:[%s7980_s28 + $0x118] sm:$0xff] }
0x1140   : > { %7193 = vtanh.f32 %v3719_v24  ;;  %v3720_v40 = vmul.f32 0.7978846, %v3712_v37  ;;  %v4811_v37 = vld [vmem:[%s7980_s28 + $0x138] sm:$0xff] }
0x1141   : > { %7195 = vtanh.f32 %v3354_v35  ;;  %v6303_v43 = vcombine.low %v4810_v32, %v4811_v37 }
0x1142   : > { %7197 = vtanh.f32 %v3720_v40  ;;  %v6304_v40 = vcombine.high %v4810_v32, %v4811_v37  ;;  %v7005_v37 = vld [vmem:[%s7982_s12 + $0x234] ss:$8 sps:$4 sm:$0xff]  }
0x1143   : > { %4749 = vmatprep.subr.bf16.mxu0 %v7005_v37 }
0x1147   : > { %v7184_v8 = vpop.eup %7183 }
0x1148   : > { %v7186_v52 = vpop.eup %7185  ;;  %v3367_v9 = vadd.f32 1.0, %v7184_v8  ;;  %v4808_v8 = vld [vmem:[%s7980_s28 + $0xd8] sm:$0xff] }
0x1149   : > { %v7188_v30 = vpop.eup %7187  ;;  %v3733_v48 = vadd.f32 1.0, %v7186_v52  ;;  %v4809_v52 = vld [vmem:[%s7980_s28 + $0xf8] sm:$0xff] }
0x114a   : > { %v7190_v29 = vpop.eup %7189  ;;  %v3368_v46 = vadd.f32 1.0, %v7188_v30  ;;  %v3375_v3 = vmul.f32 0.5, %v3367_v9  ;;  %v6302_v13 = vcombine.high %v4808_v8, %v4809_v52  ;;  %v4807_v30 = vld [vmem:[%s7980_s28 + $0xb8] sm:$0xff] }
0x114b   : > { %v3734_v28 = vadd.f32 1.0, %v7190_v29  ;;  %v3741_v55 = vmul.f32 0.5, %v3733_v48  ;;  %v6301_v29 = vcombine.low %v4808_v8, %v4809_v52  ;;  %v4803_v48 = vld [vmem:[%s7980_s28 + $0x38] sm:$0xff]  ;;  %v7008_v8 = vld [vmem:[%s7982_s12 + $0x224] ss:$8 sps:$4 sm:$0xff]  }
0x114c   : > { %v7192_v16 = vpop.eup %7191  ;;  %v3376_v44 = vmul.f32 0.5, %v3368_v46  ;;  %v3383_v4 = vmul.f32 %v3375_v3, %v8867_v17  ;;  %v4812_v17 = vld [vmem:[%s7980_s28 + $0x158] sm:$0xff]  ;;  %v7006_v52 = vld [vmem:[%s7982_s12 + $0x220] ss:$8 sps:$4 sm:$0xff]  }
0x114d   : > { %v7194_v12 = vpop.eup %7193  ;;  %v3369_v53 = vadd.f32 1.0, %v7192_v16  ;;  %v3742_v50 = vmul.f32 0.5, %v3734_v28  ;;  %v3749_v31 = vmul.f32 %v3741_v55, %v8870_v47  ;;  %v4804_v16 = vld [vmem:[%s7980_s28 + $0x58] sm:$0xff] }
0x114e   : > { %v7196_v56 = vpop.eup %7195  ;;  %v3735_v54 = vadd.f32 1.0, %v7194_v12  ;;  %v3384_v15 = vmul.f32 %v3376_v44, %v8877_v10  ;;  %v4805_v28 = vld [vmem:[%s7980_s28 + $0x78] sm:$0xff] }
0x114f   : > { %v7198_v59 = vpop.eup %7197  ;;  %v3370_v60 = vadd.f32 1.0, %v7196_v56  ;;  %v3377_v18 = vmul.f32 0.5, %v3369_v53  ;;  %v3750_v39 = vmul.f32 %v3742_v50, %v8880_v58  ;;  %v4814_v58 = vld [vmem:[%s7980_s28 + $0x198] sm:$0xff]  ;;  %v6297_v53 = vcombine.low %v4804_v16, %v4805_v28 }
0x1150   : > { %v3736_v19 = vadd.f32 1.0, %v7198_v59  ;;  %v3743_v33 = vmul.f32 0.5, %v3735_v54  ;;  %v4802_v12 = vld [vmem:[%s7980_s28 + $0x18] sm:$0xff] }
0x1151   : > { %v3378_v61 = vmul.f32 0.5, %v3370_v60  ;;  %v3385_v21 = vmul.f32 %v3377_v18, %v8891_v5  ;;  %v6296_v56 = vcombine.high %v4802_v12, %v4803_v48  ;;  %v4832_v54 = vld [vmem:[%s7980_s28 + $0x3d8] sm:$0xff]  ;;  %v6295_v60 = vcombine.low %v4802_v12, %v4803_v48  ;;  %v7032_v48 = vld [vmem:[%s7982_s12 + $0x2a4] ss:$8 sps:$4 sm:$0xff]  }
0x1152   : > { %v3744_v7 = vmul.f32 0.5, %v3736_v19  ;;  %v3751_v0 = vmul.f32 %v3743_v33, %v8894_v11  ;;  %v4815_v11 = vld [vmem:[%s7980_s28 + $0x1b8] sm:$0xff] }
0x1153   : > { %v3386_v63 = vmul.f32 %v3378_v61, %v8904_v51  ;;  %v3389_v36 = vpack.c.bf16 %v3385_v21, %v3383_v4  ;;  %v6308_v51 = vcombine.high %v4814_v58, %v4815_v11  ;;  %v6307_v47 = vcombine.low %v4814_v58, %v4815_v11  ;;  %v4833_v59 = vld [vmem:[%s7980_s28 + $0x3f8] sm:$0xff] }
0x1154   : > { %v3752_v45 = vmul.f32 %v3744_v7, %v8907_v22  ;;  %v3755_v10 = vpack.c.bf16 %v3751_v0, %v3749_v31  ;;  %v4813_v22 = vld [vmem:[%s7980_s28 + $0x178] sm:$0xff]  ;;  %v6326_v44 = vcombine.high %v4832_v54, %v4833_v59  ;;  %v6325_v50 = vcombine.low %v4832_v54, %v4833_v59  ;;  %v7038_v59 = vld [vmem:[%s7982_s12 + $0x284] ss:$8 sps:$4 sm:$0xff]  }
0x1155   : > { %v3390_v14 = vpack.c.bf16 %v3386_v63, %v3384_v15  ;;  %v6306_v24 = vcombine.high %v4812_v17, %v4813_v22  ;;  %v6305_v35 = vcombine.low %v4812_v17, %v4813_v22  ;;  %v4830_v18 = vld [vmem:[%s7980_s28 + $0x398] sm:$0xff] }
0x1156   : > { %v3756_v5 = vpack.c.bf16 %v3752_v45, %v3750_v39  ;;  %v4831_v19 = vld [vmem:[%s7980_s28 + $0x3b8] sm:$0xff] }
0x1157   : > { %4204 = vmatprep.mubr.bf16.mxu0 %v3390_v14  ;;  %v6324_v33 = vcombine.high %v4830_v18, %v4831_v19  ;;  %v4828_v3 = vld [vmem:[%s7980_s28 + $0x358] sm:$0xff]  ;;  %v6323_v55 = vcombine.low %v4830_v18, %v4831_v19 }
0x1158   : > { %3991 = vmatprep.mubr.bf16.mxu1 %v3756_v5  ;;  %4205 = vmatmul.mubr.bf16.gmra.mxu0 %v3389_v36  ;;  %v4829_v61 = vld [vmem:[%s7980_s28 + $0x378] sm:$0xff] }
0x1159   : > { %3992 = vmatmul.mubr.bf16.gmra.mxu1 %v3755_v10  ;;  %v6322_v7 = vcombine.high %v4828_v3, %v4829_v61  ;;  %v4826_v21 = vld [vmem:[%s7980_s28 + $0x318] sm:$0xff]  ;;  %v6321_v63 = vcombine.low %v4828_v3, %v4829_v61 }
0x115a   : > { %4452 = vmatprep.mubr.bf16.mxu1 %v8638_v20  ;;  %v4827_v15 = vld [vmem:[%s7980_s28 + $0x338] sm:$0xff] }
0x115b   : > { %v6320_v0 = vcombine.high %v4826_v21, %v4827_v15  ;;  %v4824_v39 = vld [vmem:[%s7980_s28 + $0x2d8] sm:$0xff]  ;;  %v6319_v4 = vcombine.low %v4826_v21, %v4827_v15 }
0x115c   : > { %v4825_v45 = vld [vmem:[%s7980_s28 + $0x2f8] sm:$0xff] }
0x115d   : > { %v6318_v14 = vcombine.high %v4824_v39, %v4825_v45  ;;  %v4822_v31 = vld [vmem:[%s7980_s28 + $0x298] sm:$0xff]  ;;  %v6317_v36 = vcombine.low %v4824_v39, %v4825_v45 }
0x115e   : > { %v4823_v5 = vld [vmem:[%s7980_s28 + $0x2b8] sm:$0xff] }
0x115f   : > { %v6316_v10 = vcombine.high %v4822_v31, %v4823_v5  ;;  %v4820_v58 = vld [vmem:[%s7980_s28 + $0x258] sm:$0xff] }
0x1160   : > { %v4821_v11 = vld [vmem:[%s7980_s28 + $0x278] sm:$0xff] }
0x1161   : > { %4453 = vmatmul.mubr.bf16.vlgmr.msra.gmra.mxu1 %v8640_v6  ;;  %v6314_v17 = vcombine.high %v4820_v58, %v4821_v11  ;;  %v4818_v22 = vld [vmem:[%s7980_s28 + $0x218] sm:$0xff] }
0x1162   : > { %5008 = vmatpush1.bf16.msra.mxu1 %v6309_v42  ;;  %4462 = vmatprep.mubr.bf16.mxu1 %v8732_v34  ;;  %v4806_v42 = vld [vmem:[%s7980_s28 + $0x98] sm:$0xff] }
0x1163   : > { %5009 = vmatprep.subr.bf16.mxu1 %v6308_v51  ;;  %v6300_v46 = vcombine.high %v4806_v42, %v4807_v30  ;;  %v6299_v9 = vcombine.low %v4806_v42, %v4807_v30  ;;  %v6315_v51 = vcombine.low %v4822_v31, %v4823_v5  ;;  %v7014_v42 = vld [vmem:[%s7982_s12 + $0x204] ss:$8 sps:$4 sm:$0xff]   ;;  %v7012_v30 = vld [vmem:[%s7982_s12 + $0x200] ss:$8 sps:$4 sm:$0xff]   ;;  %v7027_v12 = vld [vmem:[%s7982_s12 + $0x2b0] ss:$8 sps:$4 sm:$0xff]  }
0x1164   : > { %v7033_v54 = vld [vmem:[%s7982_s12 + $0x290] ss:$8 sps:$4 sm:$0xff]  }
0x1166   : > { %5010 = vmatpush1.bf16.msra.mxu1 %v6307_v47  ;;  %v4819_v47 = vld [vmem:[%s7980_s28 + $0x238] sm:$0xff] }
0x1167   : > { %5011 = vmatprep.subr.bf16.mxu1 %v6306_v24  ;;  %v6313_v24 = vcombine.low %v4820_v58, %v4821_v11  ;;  %v6312_v32 = vcombine.high %v4818_v22, %v4819_v47 }
0x1169   : > { %4463 = vmatmul.mubr.bf16.gmra.mxu1 %v8734_v1 }
0x116a   : > { %5012 = vmatpush1.bf16.msra.mxu1 %v6305_v35  ;;  %5039 = vmatprep.mubr.bf16.mxu1 %v8638_v20  ;;  %v6298_v20 = vcombine.high %v4804_v16, %v4805_v28  ;;  %v6311_v35 = vcombine.low %v4818_v22, %v4819_v47  ;;  %v7023_v16 = vld [vmem:[%s7982_s12 + $0x2d4] ss:$8 sps:$4 sm:$0xff]   ;;  %v7021_v28 = vld [vmem:[%s7982_s12 + $0x2d0] ss:$8 sps:$4 sm:$0xff]  }
0x116b   : > { %5013 = vmatprep.subr.bf16.mxu1 %v6304_v40  ;;  %v7003_v40 = vld [vmem:[%s7982_s12 + $0x230] ss:$8 sps:$4 sm:$0xff]  }
0x116c   : > { %4750 = vmatpush1.bf16.msra.mxu0 %v7003_v40 }
0x116d   : > { %4751 = vmatprep.subr.bf16.mxu0 %v7008_v8 }
0x116e   : > { %5014 = vmatpush1.bf16.msra.mxu1 %v6303_v43  ;;  %v7011_v43 = vld [vmem:[%s7982_s12 + $0x214] ss:$8 sps:$4 sm:$0xff]  }
0x116f   : > { %5015 = vmatprep.subr.bf16.mxu1 %v6302_v13  ;;  %v7009_v13 = vld [vmem:[%s7982_s12 + $0x210] ss:$8 sps:$4 sm:$0xff]  }
0x1170   : > { %4752 = vmatpush1.bf16.msra.mxu0 %v7006_v52 }
0x1171   : > { %4753 = vmatprep.subr.bf16.mxu0 %v7011_v43 }
0x1172   : > { %5016 = vmatpush1.bf16.msra.mxu1 %v6301_v29  ;;  %v7017_v29 = vld [vmem:[%s7982_s12 + $0x2f4] ss:$8 sps:$4 sm:$0xff]  }
0x1173   : > { %5017 = vmatprep.subr.bf16.mxu1 %v6300_v46  ;;  %v7018_v46 = vld [vmem:[%s7982_s12 + $0x2e0] ss:$8 sps:$4 sm:$0xff]  }
0x1174   : > { %4754 = vmatpush1.bf16.msra.mxu0 %v7009_v13 }
0x1175   : > { %4755 = vmatprep.subr.bf16.mxu0 %v7014_v42 }
0x1176   : > { %5018 = vmatpush1.bf16.msra.mxu1 %v6299_v9  ;;  %v7026_v9 = vld [vmem:[%s7982_s12 + $0x2c4] ss:$8 sps:$4 sm:$0xff]  }
0x1177   : > { %5019 = vmatprep.subr.bf16.mxu1 %v6298_v20  ;;  %v7029_v20 = vld [vmem:[%s7982_s12 + $0x2b4] ss:$8 sps:$4 sm:$0xff]  }
0x1178   : > { %4756 = vmatpush1.bf16.msra.mxu0 %v7012_v30 }
0x1179   : > { %4757 = vmatprep.subr.bf16.mxu0 %v7017_v29 }
0x117a   : > { %5020 = vmatpush1.bf16.msra.mxu1 %v6297_v53  ;;  %v7030_v53 = vld [vmem:[%s7982_s12 + $0x2a0] ss:$8 sps:$4 sm:$0xff]  }
0x117b   : > { %5021 = vmatprep.subr.bf16.mxu1 %v6296_v56  ;;  %v7035_v56 = vld [vmem:[%s7982_s12 + $0x294] ss:$8 sps:$4 sm:$0xff]  }
0x117e   : > { %5022 = vmatpush1.bf16.msra.mxu1 %v6295_v60  ;;  %v7036_v60 = vld [vmem:[%s7982_s12 + $0x280] ss:$8 sps:$4 sm:$0xff]  }
0x117f   : > { %5023 = vmatprep.subr.bf16.mxu1 %v6326_v44  ;;  %v7041_v44 = vld [vmem:[%s7982_s12 + $0x374] ss:$8 sps:$4 sm:$0xff]  }
0x1182   : > { %5024 = vmatpush2.bf16.msra.mxu1 %v6325_v50 }
0x1183   : > { %5025 = vmatprep.subr.bf16.mxu1 %v6324_v33 }
0x1186   : > { %5026 = vmatpush2.bf16.msra.mxu1 %v6323_v55  ;;  %v6229_v55 = vld [vmem:[%s7966_s29 + $0x12] ss:$8 sm:$0x3] }
0x1187   : > { %5027 = vmatprep.subr.bf16.mxu1 %v6322_v7  ;;  %v4253_v21 = vrot.slane %v6229_v55, %v8137_v26 }
0x118a   : > { %5028 = vmatpush2.bf16.msra.mxu1 %v6321_v63  ;;  %v4257_v63 = vrot.slane %v6229_v55, %v8135_v25 }
0x118b   : > { %5029 = vmatprep.subr.bf16.mxu1 %v6320_v0  ;;  %v8999_v18 = vpop.f32.mrf.mxu1 }
0x118d   : > { %v9001_v19 = vpop.f32.mrf.mxu1 }
0x118e   : > { %5030 = vmatpush2.bf16.msra.mxu1 %v6319_v4 }
0x118f   : > { %5031 = vmatprep.subr.bf16.mxu1 %v6318_v14  ;;  %v9003_v50 = vpop.f32.mrf.mxu1 }
0x1191   : > { %v9005_v33 = vpop.f32.mrf.mxu1 }
0x1192   : > { %5032 = vmatpush2.bf16.msra.mxu1 %v6317_v36 }
0x1193   : > { %5033 = vmatprep.subr.bf16.mxu1 %v6316_v10 }
0x1196   : > { %5034 = vmatpush2.bf16.msra.mxu1 %v6315_v51 }
0x1197   : > { %5035 = vmatprep.subr.bf16.mxu1 %v6314_v17 }
0x119a   : > { %5036 = vmatpush2.bf16.msra.mxu1 %v6313_v24 }
0x119b   : > { %5037 = vmatprep.subr.bf16.mxu1 %v6312_v32 }
0x119e   : > { %5038 = vmatpush2.bf16.msra.mxu1 %v6311_v35 }
0x11a1   : > { %5040 = vmatmul.mubr.bf16.vlgmr.msra.gmra.mxu1 %v8640_v6  ;;  %v7015_v6 = vld [vmem:[%s7982_s12 + $0x2f0] ss:$8 sps:$4 sm:$0xff]  }
0x11a2   : > { %5049 = vmatprep.mubr.bf16.mxu1 %v8732_v34  ;;  %4758 = vmatpush2.bf16.msra.mxu0 %v7015_v6  ;;  %v7020_v34 = vld [vmem:[%s7982_s12 + $0x2e4] ss:$8 sps:$4 sm:$0xff]  }
0x11a3   : > { %4759 = vmatprep.subr.bf16.mxu0 %v7020_v34 }
0x11a6   : > { %4760 = vmatpush2.bf16.msra.mxu0 %v7018_v46 }
0x11a7   : > { %4761 = vmatprep.subr.bf16.mxu0 %v7023_v16 }
0x11a9   : > { %5050 = vmatmul.mubr.bf16.gmra.mxu1 %v8734_v1  ;;  %v7024_v1 = vld [vmem:[%s7982_s12 + $0x2c0] ss:$8 sps:$4 sm:$0xff]  }
0x11aa   : > { %4762 = vmatpush2.bf16.msra.mxu0 %v7021_v28 }
0x11ab   : > { %4763 = vmatprep.subr.bf16.mxu0 %v7026_v9 }
0x11ae   : > { %4764 = vmatpush2.bf16.msra.mxu0 %v7024_v1 }
0x11af   : > { %4765 = vmatprep.subr.bf16.mxu0 %v7029_v20 }
0x11b2   : > { %4766 = vmatpush2.bf16.msra.mxu0 %v7027_v12 }
0x11b3   : > { %4767 = vmatprep.subr.bf16.mxu0 %v7032_v48 }
0x11b6   : > { %4768 = vmatpush2.bf16.msra.mxu0 %v7030_v53 }
0x11b7   : > { %4769 = vmatprep.subr.bf16.mxu0 %v7035_v56 }
0x11ba   : > { %4770 = vmatpush2.bf16.msra.mxu0 %v7033_v54 }
0x11bb   : > { %4771 = vmatprep.subr.bf16.mxu0 %v7038_v59 }
0x11be   : > { %4772 = vmatpush2.bf16.msra.mxu0 %v7036_v60 }
0x11bf   : > { %5328 = vmatprep.subr.bf16.mxu0 %v7041_v44 }
0x1219   : > { %v9007_v3 = vpop.f32.mrf.mxu1 }
0x121b   : > { %v9009_v61 = vpop.f32.mrf.mxu1 }
0x121d   : > { %v9012_v7 = vpop.f32.mrf.mxu1 }
0x121f   : > { %v9015_v15 = vpop.f32.mrf.mxu1 }
0x1221   : > { %v4454_v0 = vpop.f32.mrf.mxu1 }
0x1222   : > { %v9018_v39 = vadd.f32 %v4454_v0, %v4253_v21 }
0x1223   : > { %v4456_v45 = vpop.f32.mrf.mxu1 }
0x1224   : > { %v4473_v4 = vmul.f32 %v9018_v39, %v9018_v39  ;;  %v9022_v14 = vadd.f32 %v4456_v45, %v4257_v63 }
0x1225   : > { %v4458_v31 = vpop.f32.mrf.mxu1 }
0x1226   : > { %v4481_v5 = vmul.f32 %v4473_v4, %v9018_v39  ;;  %v4474_v36 = vmul.f32 %v9022_v14, %v9022_v14  ;;  %v9027_v10 = vadd.f32 %v4458_v31, %v4253_v21 }
0x1227   : > { %v4460_v58 = vpop.f32.mrf.mxu1 }
0x1228   : > { %v4489_v11 = vmul.f32 0.044715, %v4481_v5  ;;  %v4482_v51 = vmul.f32 %v4474_v36, %v9022_v14  ;;  %v4475_v17 = vmul.f32 %v9027_v10, %v9027_v10  ;;  %v9032_v22 = vadd.f32 %v4460_v58, %v4257_v63 }
0x1229   : > { %v4464_v47 = vpop.f32.mrf.mxu1 }
0x122a   : > { %v4497_v24 = vadd.f32 %v4489_v11, %v9018_v39  ;;  %v4490_v32 = vmul.f32 0.044715, %v4482_v51  ;;  %v4483_v37 = vmul.f32 %v4475_v17, %v9027_v10  ;;  %v4476_v35 = vmul.f32 %v9032_v22, %v9032_v22 }
0x122b   : > { %v9038_v40 = vadd.f32 %v4464_v47, %v4253_v21  ;;  %v4466_v8 = vpop.f32.mrf.mxu1 }
0x122c   : > { %v4505_v52 = vmul.f32 0.7978846, %v4497_v24  ;;  %v4498_v43 = vadd.f32 %v4490_v32, %v9022_v14  ;;  %v4491_v13 = vmul.f32 0.044715, %v4483_v37  ;;  %v4484_v42 = vmul.f32 %v4476_v35, %v9032_v22 }
0x122d   : > { %v4477_v30 = vmul.f32 %v9038_v40, %v9038_v40  ;;  %v9044_v29 = vadd.f32 %v4466_v8, %v4257_v63  ;;  %v4468_v6 = vpop.f32.mrf.mxu1 }
0x122e   : > { %v4506_v34 = vmul.f32 0.7978846, %v4498_v43  ;;  %v4499_v46 = vadd.f32 %v4491_v13, %v9027_v10  ;;  %v4492_v16 = vmul.f32 0.044715, %v4484_v42  ;;  %7199 = vtanh.f32 %v4505_v52 }
0x122f   : > { %v4485_v28 = vmul.f32 %v4477_v30, %v9038_v40  ;;  %v4478_v9 = vmul.f32 %v9044_v29, %v9044_v29  ;;  %v9050_v1 = vadd.f32 %v4468_v6, %v4253_v21  ;;  %v4470_v20 = vpop.f32.mrf.mxu1 }
0x1230   : > { %7201 = vtanh.f32 %v4506_v34  ;;  %v4507_v12 = vmul.f32 0.7978846, %v4499_v46  ;;  %v4500_v48 = vadd.f32 %v4492_v16, %v9032_v22  ;;  %v9053_v53 = vadd.f32 %v4470_v20, %v4257_v63 }
0x1231   : > { %v4493_v56 = vmul.f32 0.044715, %v4485_v28  ;;  %v4486_v54 = vmul.f32 %v4478_v9, %v9044_v29  ;;  %v4479_v59 = vmul.f32 %v9050_v1, %v9050_v1 }
0x1232   : > { %7203 = vtanh.f32 %v4507_v12  ;;  %v4508_v60 = vmul.f32 0.7978846, %v4500_v48  ;;  %v4480_v44 = vmul.f32 %v9053_v53, %v9053_v53 }
0x1233   : > { %v4501_v55 = vadd.f32 %v4493_v56, %v9038_v40  ;;  %v4494_v21 = vmul.f32 0.044715, %v4486_v54  ;;  %v4487_v0 = vmul.f32 %v4479_v59, %v9050_v1  ;;  %v7039_v59 = vld [vmem:[%s7982_s12 + $0x370] ss:$8 sps:$4 sm:$0xff]  }
0x1234   : > { %7205 = vtanh.f32 %v4508_v60  ;;  %v4488_v63 = vmul.f32 %v4480_v44, %v9053_v53 }
0x1235   : > { %v4509_v45 = vmul.f32 0.7978846, %v4501_v55  ;;  %v4502_v4 = vadd.f32 %v4494_v21, %v9044_v29  ;;  %v4495_v31 = vmul.f32 0.044715, %v4487_v0  ;;  %v7044_v55 = vld [vmem:[%s7982_s12 + $0x364] ss:$8 sps:$4 sm:$0xff]  }
0x1236   : > { %v4496_v5 = vmul.f32 0.044715, %v4488_v63 }
0x1237   : > { %7207 = vtanh.f32 %v4509_v45  ;;  %v4510_v36 = vmul.f32 0.7978846, %v4502_v4  ;;  %v4503_v58 = vadd.f32 %v4495_v31, %v9050_v1  ;;  %v7047_v45 = vld [vmem:[%s7982_s12 + $0x354] ss:$8 sps:$4 sm:$0xff]  }
0x1238   : > { %v4504_v11 = vadd.f32 %v4496_v5, %v9053_v53 }
0x1239   : > { %7209 = vtanh.f32 %v4510_v36  ;;  %v4511_v51 = vmul.f32 0.7978846, %v4503_v58 }
0x123a   : > { %v4512_v17 = vmul.f32 0.7978846, %v4504_v11  ;;  %v7045_v11 = vld [vmem:[%s7982_s12 + $0x350] ss:$8 sps:$4 sm:$0xff]  }
0x123b   : > { %7211 = vtanh.f32 %v4511_v51  ;;  %v7200_v47 = vpop.eup %7199 }
0x123c   : > { %7213 = vtanh.f32 %v4512_v17  ;;  %v4521_v35 = vadd.f32 1.0, %v7200_v47  ;;  %v7050_v17 = vld [vmem:[%s7982_s12 + $0x344] ss:$8 sps:$4 sm:$0xff]   ;;  %v6294_v47 = vld [vmem:[%s7966_s29 + $0x13] ss:$8 sm:$0x3] }
0x123d   : > { %v7202_v24 = vpop.eup %7201 }
0x123e   : > { %v4522_v32 = vadd.f32 1.0, %v7202_v24  ;;  %v4529_v30 = vmul.f32 0.5, %v4521_v35  ;;  %v7054_v24 = vld [vmem:[%s7982_s12 + $0x320] ss:$8 sps:$4 sm:$0xff]   ;;  %v4844_v35 = vrot.slane %v6294_v47, %v8135_v25 }
0x123f   : > { %v7204_v37 = vpop.eup %7203 }
0x1240   : > { %v4523_v8 = vadd.f32 1.0, %v7204_v37  ;;  %v4530_v42 = vmul.f32 0.5, %v4522_v32  ;;  %v4537_v20 = vmul.f32 %v4529_v30, %v9018_v39  ;;  %v7042_v39 = vld [vmem:[%s7982_s12 + $0x360] ss:$8 sps:$4 sm:$0xff]   ;;  %v7059_v32 = vld [vmem:[%s7982_s12 + $0x314] ss:$8 sps:$4 sm:$0xff]   ;;  %v4840_v37 = vrot.slane %v6294_v47, %v8137_v26 }
0x1241   : > { %v7206_v52 = vpop.eup %7205 }
0x1242   : > { %v4531_v43 = vmul.f32 0.5, %v4523_v8  ;;  %v4524_v13 = vadd.f32 1.0, %v7206_v52  ;;  %v4538_v28 = vmul.f32 %v4530_v42, %v9022_v14  ;;  %v7057_v8 = vld [vmem:[%s7982_s12 + $0x310] ss:$8 sps:$4 sm:$0xff]  }
0x1244   : > { %v7208_v6 = vpop.eup %7207  ;;  %v4532_v34 = vmul.f32 0.5, %v4524_v13  ;;  %v4539_v46 = vmul.f32 %v4531_v43, %v9027_v10  ;;  %v7062_v43 = vld [vmem:[%s7982_s12 + $0x304] ss:$8 sps:$4 sm:$0xff]  }
0x1245   : > { %v4525_v48 = vadd.f32 1.0, %v7208_v6 }
0x1246   : > { %v7210_v16 = vpop.eup %7209  ;;  %v4540_v9 = vmul.f32 %v4532_v34, %v9032_v22  ;;  %v4545_v44 = vpack.c.bf16 %v4539_v46, %v4537_v20  ;;  %v7060_v34 = vld [vmem:[%s7982_s12 + $0x300] ss:$8 sps:$4 sm:$0xff]  }
0x1247   : > { %v4526_v12 = vadd.f32 1.0, %v7210_v16  ;;  %v4533_v14 = vmul.f32 0.5, %v4525_v48  ;;  %v7065_v16 = vld [vmem:[%s7982_s12 + $0x3f4] ss:$8 sps:$4 sm:$0xff]  }
0x1248   : > { %v7212_v56 = vpop.eup %7211  ;;  %v4546_v54 = vpack.c.bf16 %v4540_v9, %v4538_v28 }
0x1249   : > { %v7214_v60 = vpop.eup %7213  ;;  %v4527_v21 = vadd.f32 1.0, %v7212_v56  ;;  %v4534_v0 = vmul.f32 0.5, %v4526_v12  ;;  %v4541_v36 = vmul.f32 %v4533_v14, %v9038_v40  ;;  %v7051_v40 = vld [vmem:[%s7982_s12 + $0x330] ss:$8 sps:$4 sm:$0xff]  }
0x124a   : > { %4773 = vmatprep.mubr.bf16.mxu0 %v4546_v54  ;;  %v4528_v10 = vadd.f32 1.0, %v7214_v60  ;;  %v7063_v60 = vld [vmem:[%s7982_s12 + $0x3f0] ss:$8 sps:$4 sm:$0xff]  }
0x124b   : > { %4774 = vmatmul.mubr.bf16.vlgmr.msra.gmra.mxu0 %v4545_v44  ;;  %v4535_v22 = vmul.f32 0.5, %v4527_v21  ;;  %v4542_v31 = vmul.f32 %v4534_v0, %v9044_v29  ;;  %v7048_v29 = vld [vmem:[%s7982_s12 + $0x340] ss:$8 sps:$4 sm:$0xff]  }
0x124c   : > { %5329 = vmatpush1.bf16.msra.mxu0 %v7039_v59  ;;  %v4536_v63 = vmul.f32 0.5, %v4528_v10 }
0x124d   : > { %5330 = vmatprep.subr.bf16.mxu0 %v7044_v55  ;;  %v4543_v4 = vmul.f32 %v4535_v22, %v9050_v1  ;;  %v7053_v1 = vld [vmem:[%s7982_s12 + $0x334] ss:$8 sps:$4 sm:$0xff]   ;;  %v7068_v55 = vld [vmem:[%s7982_s12 + $0x3e4] ss:$8 sps:$4 sm:$0xff]  }
0x124e   : > { %v4544_v5 = vmul.f32 %v4536_v63, %v9053_v53  ;;  %v7056_v53 = vld [vmem:[%s7982_s12 + $0x324] ss:$8 sps:$4 sm:$0xff]  }
0x124f   : > { %v4547_v51 = vpack.c.bf16 %v4543_v4, %v4541_v36 }
0x1250   : > { %5331 = vmatpush1.bf16.msra.mxu0 %v7042_v39  ;;  %v4548_v58 = vpack.c.bf16 %v4544_v5, %v4542_v31  ;;  %v7066_v5 = vld [vmem:[%s7982_s12 + $0x3e0] ss:$8 sps:$4 sm:$0xff]  }
0x1251   : > { %5332 = vmatprep.subr.bf16.mxu0 %v7047_v45 }
0x1252   : > { %4783 = vmatprep.mubr.bf16.mxu0 %v4548_v58 }
0x1253   : > { %4784 = vmatmul.mubr.bf16.gmra.mxu0 %v4547_v51  ;;  %v7071_v51 = vld [vmem:[%s7982_s12 + $0x3d4] ss:$8 sps:$4 sm:$0xff]  }
0x1254   : > { %5333 = vmatpush1.bf16.msra.mxu0 %v7045_v11 }
0x1255   : > { %5334 = vmatprep.subr.bf16.mxu0 %v7050_v17 }
0x1258   : > { %5335 = vmatpush1.bf16.msra.mxu0 %v7048_v29 }
0x1259   : > { %5336 = vmatprep.subr.bf16.mxu0 %v7053_v1 }
0x125c   : > { %5337 = vmatpush1.bf16.msra.mxu0 %v7051_v40 }
0x125d   : > { %5338 = vmatprep.subr.bf16.mxu0 %v7056_v53 }
0x1260   : > { %5339 = vmatpush1.bf16.msra.mxu0 %v7054_v24 }
0x1261   : > { %v5041_v52 = vpop.f32.mrf.mxu1  ;;  %5340 = vmatprep.subr.bf16.mxu0 %v7059_v32 }
0x1262   : > { %v9091_v13 = vadd.f32 %v5041_v52, %v4840_v37 }
0x1263   : > { %v5043_v42 = vpop.f32.mrf.mxu1 }
0x1264   : > { %v5060_v30 = vmul.f32 %v9091_v13, %v9091_v13  ;;  %v9095_v6 = vadd.f32 %v5043_v42, %v4844_v35  ;;  %5341 = vmatpush1.bf16.msra.mxu0 %v7057_v8 }
0x1265   : > { %v5045_v46 = vpop.f32.mrf.mxu1  ;;  %5342 = vmatprep.subr.bf16.mxu0 %v7062_v43  ;;  %v7069_v43 = vld [vmem:[%s7982_s12 + $0x3d0] ss:$8 sps:$4 sm:$0xff]  }
0x1266   : > { %v5068_v28 = vmul.f32 %v5060_v30, %v9091_v13  ;;  %v5061_v9 = vmul.f32 %v9095_v6, %v9095_v6  ;;  %v9102_v20 = vadd.f32 %v5045_v46, %v4840_v37 }
0x1267   : > { %v5047_v12 = vpop.f32.mrf.mxu1 }
0x1268   : > { %v5076_v48 = vmul.f32 0.044715, %v5068_v28  ;;  %v5069_v56 = vmul.f32 %v5061_v9, %v9095_v6  ;;  %v5062_v54 = vmul.f32 %v9102_v20, %v9102_v20  ;;  %v9107_v59 = vadd.f32 %v5047_v12, %v4844_v35  ;;  %5343 = vmatpush1.bf16.msra.mxu0 %v7060_v34 }
0x1269   : > { %v5051_v44 = vpop.f32.mrf.mxu1  ;;  %5344 = vmatprep.subr.bf16.mxu0 %v7065_v16 }
0x126a   : > { %v5084_v21 = vadd.f32 %v5076_v48, %v9091_v13  ;;  %v5077_v10 = vmul.f32 0.044715, %v5069_v56  ;;  %v5070_v0 = vmul.f32 %v5062_v54, %v9102_v20  ;;  %v5063_v14 = vmul.f32 %v9107_v59, %v9107_v59  ;;  %v7072_v48 = vld [vmem:[%s7982_s12 + $0x3c0] ss:$8 sps:$4 sm:$0xff]  }
0x126b   : > { %v9115_v22 = vadd.f32 %v5051_v44, %v4840_v37  ;;  %v5053_v39 = vpop.f32.mrf.mxu1  ;;  %v7077_v44 = vld [vmem:[%s7982_s12 + $0x3b4] ss:$8 sps:$4 sm:$0xff]  }
0x126c   : > { %v5092_v63 = vmul.f32 0.7978846, %v5084_v21  ;;  %v5085_v45 = vadd.f32 %v5077_v10, %v9095_v6  ;;  %v5078_v4 = vmul.f32 0.044715, %v5070_v0  ;;  %v5071_v31 = vmul.f32 %v5063_v14, %v9107_v59  ;;  %5345 = vmatpush2.bf16.msra.mxu0 %v7063_v60  ;;  %v7075_v14 = vld [vmem:[%s7982_s12 + $0x3b0] ss:$8 sps:$4 sm:$0xff]  }
0x126d   : > { %v5064_v36 = vmul.f32 %v9115_v22, %v9115_v22  ;;  %v9122_v58 = vadd.f32 %v5053_v39, %v4844_v35  ;;  %v5055_v11 = vpop.f32.mrf.mxu1  ;;  %5346 = vmatprep.subr.bf16.mxu0 %v7068_v55 }
0x126e   : > { %v5093_v17 = vmul.f32 0.7978846, %v5085_v45  ;;  %v5086_v29 = vadd.f32 %v5078_v4, %v9102_v20  ;;  %v5079_v1 = vmul.f32 0.044715, %v5071_v31  ;;  %7215 = vtanh.f32 %v5092_v63  ;;  %v7080_v63 = vld [vmem:[%s7982_s12 + $0x3a4] ss:$8 sps:$4 sm:$0xff]  }
0x126f   : > { %v5072_v40 = vmul.f32 %v5064_v36, %v9115_v22  ;;  %v5065_v53 = vmul.f32 %v9122_v58, %v9122_v58  ;;  %v9129_v47 = vadd.f32 %v5055_v11, %v4840_v37  ;;  %v5057_v24 = vpop.f32.mrf.mxu1  ;;  %v7074_v37 = vld [vmem:[%s7982_s12 + $0x3c4] ss:$8 sps:$4 sm:$0xff]   ;;  %v7078_v31 = vld [vmem:[%s7982_s12 + $0x3a0] ss:$8 sps:$4 sm:$0xff]   ;;  %v7083_v36 = vld [vmem:[%s7982_s12 + $0x394] ss:$8 sps:$4 sm:$0xff]  }
0x1270   : > { %7217 = vtanh.f32 %v5093_v17  ;;  %v5094_v32 = vmul.f32 0.7978846, %v5086_v29  ;;  %v5087_v8 = vadd.f32 %v5079_v1, %v9107_v59  ;;  %v9132_v52 = vadd.f32 %v5057_v24, %v4844_v35  ;;  %5347 = vmatpush2.bf16.msra.mxu0 %v7066_v5  ;;  %v7081_v1 = vld [vmem:[%s7982_s12 + $0x390] ss:$8 sps:$4 sm:$0xff]  }
0x1271   : > { %v5080_v42 = vmul.f32 0.044715, %v5072_v40  ;;  %v5073_v30 = vmul.f32 %v5065_v53, %v9122_v58  ;;  %v5066_v34 = vmul.f32 %v9129_v47, %v9129_v47  ;;  %5348 = vmatprep.subr.bf16.mxu0 %v7071_v51  ;;  %v7086_v53 = vld [vmem:[%s7982_s12 + $0x384] ss:$8 sps:$4 sm:$0xff]  }
0x1272   : > { %7219 = vtanh.f32 %v5094_v32  ;;  %v5095_v46 = vmul.f32 0.7978846, %v5087_v8  ;;  %v5067_v16 = vmul.f32 %v9132_v52, %v9132_v52 }
0x1273   : > { %v5088_v35 = vadd.f32 %v5080_v42, %v9115_v22  ;;  %v5081_v28 = vmul.f32 0.044715, %v5073_v30  ;;  %v5074_v9 = vmul.f32 %v5066_v34, %v9129_v47  ;;  %v7084_v30 = vld [vmem:[%s7982_s12 + $0x380] ss:$8 sps:$4 sm:$0xff]  }
0x1274   : > { %7221 = vtanh.f32 %v5095_v46  ;;  %v5075_v12 = vmul.f32 %v5067_v16, %v9132_v52  ;;  %5349 = vmatpush2.bf16.msra.mxu0 %v7069_v43 }
0x1275   : > { %v5096_v56 = vmul.f32 0.7978846, %v5088_v35  ;;  %v5089_v54 = vadd.f32 %v5081_v28, %v9122_v58  ;;  %v5082_v60 = vmul.f32 0.044715, %v5074_v9  ;;  %5350 = vmatprep.subr.bf16.mxu0 %v7074_v37 }
0x1276   : > { %v5083_v55 = vmul.f32 0.044715, %v5075_v12 }
0x1277   : > { %7223 = vtanh.f32 %v5096_v56  ;;  %v5097_v21 = vmul.f32 0.7978846, %v5089_v54  ;;  %v5090_v10 = vadd.f32 %v5082_v60, %v9129_v47 }
0x1278   : > { %v5091_v0 = vadd.f32 %v5083_v55, %v9132_v52  ;;  %5351 = vmatpush2.bf16.msra.mxu0 %v7072_v48 }
0x1279   : > { %7225 = vtanh.f32 %v5097_v21  ;;  %v5098_v39 = vmul.f32 0.7978846, %v5090_v10  ;;  %5352 = vmatprep.subr.bf16.mxu0 %v7077_v44 }
0x127a   : > { %v5099_v45 = vmul.f32 0.7978846, %v5091_v0 }
0x127b   : > { %7227 = vtanh.f32 %v5098_v39  ;;  %v7216_v4 = vpop.eup %7215 }
0x127c   : > { %7229 = vtanh.f32 %v5099_v45  ;;  %5353 = vmatpush2.bf16.msra.mxu0 %v7075_v14  ;;  %v5108_v17 = vadd.f32 1.0, %v7216_v4  ;;  %v4196_v45 = vpop.f32.mrf.mxu0 }
0x127d   : > { %v7218_v5 = vpop.eup %7217  ;;  %5354 = vmatprep.subr.bf16.mxu0 %v7080_v63 }
0x127e   : > { %v5109_v11 = vadd.f32 1.0, %v7218_v5  ;;  %v5116_v43 = vmul.f32 0.5, %v5108_v17  ;;  %v4198_v4 = vpop.f32.mrf.mxu0 }
0x127f   : > { %v7220_v51 = vpop.eup %7219 }
0x1280   : > { %v5110_v29 = vadd.f32 1.0, %v7220_v51  ;;  %5355 = vmatpush2.bf16.msra.mxu0 %v7078_v31  ;;  %v5117_v8 = vmul.f32 0.5, %v5109_v11  ;;  %v5124_v28 = vmul.f32 %v5116_v43, %v9091_v13  ;;  %v4200_v31 = vpop.f32.mrf.mxu0 }
0x1281   : > { %v7222_v40 = vpop.eup %7221  ;;  %5356 = vmatprep.subr.bf16.mxu0 %v7083_v36 }
0x1282   : > { %v5118_v24 = vmul.f32 0.5, %v5110_v29  ;;  %v5111_v32 = vadd.f32 1.0, %v7222_v40  ;;  %v5125_v16 = vmul.f32 %v5117_v8, %v9095_v6  ;;  %v4202_v5 = vpop.f32.mrf.mxu0  ;;  %v4199_v8 = vadd.f32 %v4198_v4, %v9001_v19 }
0x1284   : > { %v7224_v42 = vpop.eup %7223  ;;  %5357 = vmatpush2.bf16.msra.mxu0 %v7081_v1  ;;  %v5119_v34 = vmul.f32 0.5, %v5111_v32  ;;  %v5126_v37 = vmul.f32 %v5118_v24, %v9102_v20  ;;  %v4206_v36 = vpop.f32.mrf.mxu0  ;;  %v6359_v32 = vld [vmem:[%s7966_s29 + $0x14] ss:$8 sm:$0x3] }
0x1285   : > { %5358 = vmatprep.subr.bf16.mxu0 %v7086_v53  ;;  %v5112_v12 = vadd.f32 1.0, %v7224_v42  ;;  %v4197_v53 = vadd.f32 %v4196_v45, %v8999_v18  ;;  %v5407_v18 = vrot.slane %v6359_v32, %v8135_v25 }
0x1286   : > { %v7226_v46 = vpop.eup %7225  ;;  %v5127_v35 = vmul.f32 %v5119_v34, %v9107_v59  ;;  %v5132_v60 = vpack.c.bf16 %v5126_v37, %v5124_v28  ;;  %v4208_v11 = vpop.f32.mrf.mxu0 }
0x1287   : > { %v5113_v9 = vadd.f32 1.0, %v7226_v46  ;;  %v5120_v20 = vmul.f32 0.5, %v5112_v12  ;;  %v5403_v46 = vrot.slane %v6359_v32, %v8137_v26 }
0x1288   : > { %v7228_v48 = vpop.eup %7227  ;;  %5359 = vmatpush2.bf16.msra.mxu0 %v7084_v30  ;;  %v5133_v56 = vpack.c.bf16 %v5127_v35, %v5125_v16  ;;  %v4210_v51 = vpop.f32.mrf.mxu0  ;;  %v4201_v30 = vadd.f32 %v4200_v31, %v9003_v50  ;;  %v4203_v16 = vadd.f32 %v4202_v5, %v9005_v33 }
0x1289   : > { %v7230_v54 = vpop.eup %7229  ;;  %v5114_v44 = vadd.f32 1.0, %v7228_v48  ;;  %v5121_v21 = vmul.f32 0.5, %v5113_v9  ;;  %v5128_v14 = vmul.f32 %v5120_v20, %v9115_v22  ;;  %v4207_v48 = vadd.f32 %v4206_v36, %v9007_v3 }
0x128a   : > { %5360 = vmatprep.mubr.bf16.mxu0 %v5133_v56  ;;  %v5115_v55 = vadd.f32 1.0, %v7230_v54  ;;  %v4212_v17 = vpop.f32.mrf.mxu0  ;;  %v4211_v3 = vadd.f32 %v4210_v51, %v9012_v7 }
0x128b   : > { %5361 = vmatmul.mubr.bf16.vlgmr.msra.gmra.mxu0 %v5132_v60  ;;  %v5122_v10 = vmul.f32 0.5, %v5114_v44  ;;  %v5129_v59 = vmul.f32 %v5121_v21, %v9122_v58  ;;  %v4209_v44 = vadd.f32 %v4208_v11, %v9009_v61  ;;  %v4213_v61 = vadd.f32 %v4212_v17, %v9015_v15 }
0x128c   : > { %v5123_v0 = vmul.f32 0.5, %v5115_v55 }
0x128d   : > { %v5130_v6 = vmul.f32 %v5122_v10, %v9129_v47 }
0x128e   : > { %v5131_v13 = vmul.f32 %v5123_v0, %v9132_v52 }
0x128f   : > { %v5134_v63 = vpack.c.bf16 %v5130_v6, %v5128_v14 }
0x1290   : > { %v5135_v39 = vpack.c.bf16 %v5131_v13, %v5129_v59 }
0x1292   : > { %5370 = vmatprep.mubr.bf16.mxu0 %v5135_v39 }
0x1293   : > { %5371 = vmatmul.mubr.bf16.gmra.mxu0 %v5134_v63 }
0x130b   : > { %v4775_v47 = vpop.f32.mrf.mxu0 }
0x130c   : > { %v4794_v43 = vadd.f32 %v4775_v47, %v4197_v53 }
0x130d   : > { %v4777_v29 = vpop.f32.mrf.mxu0 }
0x130e   : > { %v4795_v34 = vadd.f32 %v4777_v29, %v4199_v8 }
0x130f   : > { %v4779_v58 = vpop.f32.mrf.mxu0 }
0x1310   : > { %v4796_v28 = vadd.f32 %v4779_v58, %v4201_v30 }
0x1311   : > { %v4781_v1 = vpop.f32.mrf.mxu0 }
0x1312   : > { %v4797_v56 = vadd.f32 %v4781_v1, %v4203_v16 }
0x1313   : > { %v4785_v52 = vpop.f32.mrf.mxu0 }
0x1314   : > { %v4798_v33 = vadd.f32 %v4785_v52, %v4207_v48 }
0x1315   : > { %v4787_v40 = vpop.f32.mrf.mxu0 }
0x1316   : > { %v4799_v0 = vadd.f32 %v4787_v40, %v4209_v44 }
0x1317   : > { %v4789_v22 = vpop.f32.mrf.mxu0 }
0x1318   : > { %v4800_v14 = vadd.f32 %v4789_v22, %v4211_v3 }
0x1319   : > { %v4791_v24 = vpop.f32.mrf.mxu0 }
0x131a   : > { %v4801_v4 = vadd.f32 %v4791_v24, %v4213_v61 }
0x134b   : > { %v5362_v42 = vpop.f32.mrf.mxu0 }
0x134c   : > { %v5381_v37 = vadd.f32 %v5362_v42, %v4794_v43 }
0x134d   : > { %v5364_v35 = vpop.f32.mrf.mxu0 }
0x134e   : > { %v5389_v9 = vadd.f32 %v5381_v37, %v8477_v23  ;;  %v5382_v12 = vadd.f32 %v5364_v35, %v4795_v34 }
0x134f   : > { %v5366_v19 = vpop.f32.mrf.mxu0 }
0x1350   : > { %v9173_v54 = vadd.f32 %v5403_v46, %v5389_v9  ;;  %v5390_v50 = vadd.f32 %v5382_v12, %v8480_v27  ;;  %v5383_v60 = vadd.f32 %v5366_v19, %v4796_v28 }
0x1351   : > { %v5368_v55 = vpop.f32.mrf.mxu0 }
0x1352   : > { %5418 = vst [vmem:[#allocation2 + $0x30] sm:$0xff] %v9173_v54  ;;  %v9178_v21 = vadd.f32 %v5407_v18, %v5390_v50  ;;  %v5391_v23 = vadd.f32 %v5383_v60, %v8485_v38  ;;  %v5384_v20 = vadd.f32 %v5368_v55, %v4797_v56 }
0x1353   : > { %v5372_v10 = vpop.f32.mrf.mxu0 }
0x1354   : > { %5419 = vst [vmem:[#allocation2] sm:$0xff] %v9178_v21  ;;  %v5412_v6 = vadd.f32 %v5403_v46, %v5391_v23  ;;  %v5392_v27 = vadd.f32 %v5384_v20, %v8488_v41  ;;  %v5385_v59 = vadd.f32 %v5372_v10, %v4798_v33 }
0x1355   : > { %v5374_v13 = vpop.f32.mrf.mxu0 }
0x1356   : > { %5420 = vst [vmem:[#allocation2 + $0x18] sm:$0xff] %v5412_v6  ;;  %v5413_v39 = vadd.f32 %v5407_v18, %v5392_v27  ;;  %v5393_v63 = vadd.f32 %v5385_v59, %v8531_v49  ;;  %v5386_v38 = vadd.f32 %v5374_v13, %v4799_v0 }
0x1357   : > { %v5376_v45 = vpop.f32.mrf.mxu0 }
0x1358   : > { %5421 = vst [vmem:[#allocation2 + $0x10] sm:$0xff] %v5413_v39  ;;  %v5414_v7 = vadd.f32 %v5403_v46, %v5393_v63  ;;  %v5394_v31 = vadd.f32 %v5386_v38, %v8534_v57  ;;  %v5387_v5 = vadd.f32 %v5376_v45, %v4800_v14 }
0x1359   : > { %v5378_v36 = vpop.f32.mrf.mxu0 }
0x135a   : > { %5422 = vst [vmem:[#allocation2 + $0x8] sm:$0xff] %v5414_v7  ;;  %v5415_v41 = vadd.f32 %v5407_v18, %v5394_v31  ;;  %v5395_v11 = vadd.f32 %v5387_v5, %v8545_v62  ;;  %v5388_v15 = vadd.f32 %v5378_v36, %v4801_v4 }
0x135c   : > { %5423 = vst [vmem:[#allocation2 + $0x20] sm:$0xff] %v5415_v41  ;;  %v5416_v51 = vadd.f32 %v5403_v46, %v5395_v11  ;;  %v5396_v17 = vadd.f32 %v5388_v15, %v8548_v2  ;;  %5429 = sbr.rel (%p6360_p12) target bundleno = 5480 (0x1568), region = 100 }
0x135e   : > { %5424 = vst [vmem:[#allocation2 + $0x28] sm:$0xff] %v5416_v51  ;;  %v5417_v49 = vadd.f32 %v5407_v18, %v5396_v17 }
0x1360   : > { %5425 = vst [vmem:[#allocation2 + $0x38] sm:$0xff] %v5417_v49 }
0x1361   : > { %v5434_v57 = vadd.f32 %v9178_v21, %v9173_v54  ;;  %v5437_v47 = vadd.f32 %v5415_v41, %v5414_v7  ;;  %v7239_v29 = vld [vmem:[#allocation16 + $0x74] ss:$8 sps:$4 sm:$0xff]   ;;  %v7241_v58 = vld [vmem:[#allocation16 + $0x70] ss:$8 sps:$4 sm:$0xff]   ;;  %v7242_v62 = vld [vmem:[#allocation16 + $0x64] ss:$8 sps:$4 sm:$0xff]  }
0x1362   : > { %5703 = vmatprep.subr.bf16.mxu0 %v7239_v29  ;;  %v7244_v1 = vld [vmem:[#allocation16 + $0x60] ss:$8 sps:$4 sm:$0xff]   ;;  %v7245_v2 = vld [vmem:[#allocation16 + $0x54] ss:$8 sps:$4 sm:$0xff]   ;;  %v7247_v52 = vld [vmem:[#allocation16 + $0x50] ss:$8 sps:$4 sm:$0xff]  }
0x1363   : > { %5435 = vadd.xlane.f32.xlu0 %v5434_v57  ;;  %5704 = vmatpush1.bf16.msra.mxu0 %v7241_v58  ;;  %v7248_v40 = vld [vmem:[#allocation16 + $0x44] ss:$8 sps:$4 sm:$0xff]   ;;  %v7250_v22 = vld [vmem:[#allocation16 + $0x40] ss:$8 sps:$4 sm:$0xff]   ;;  %v7251_v53 = vld [vmem:[#allocation16 + $0x34] ss:$8 sps:$4 sm:$0xff]  }
0x1364   : > { %5705 = vmatprep.subr.bf16.mxu0 %v7242_v62  ;;  %v7253_v24 = vld [vmem:[#allocation16 + $0x30] ss:$8 sps:$4 sm:$0xff]   ;;  %v7254_v32 = vld [vmem:[#allocation16 + $0x24] ss:$8 sps:$4 sm:$0xff]   ;;  %v7256_v8 = vld [vmem:[#allocation16 + $0x20] ss:$8 sps:$4 sm:$0xff]  }
0x1365   : > { %v7257_v43 = vld [vmem:[#allocation16 + $0x14] ss:$8 sps:$4 sm:$0xff]   ;;  %v7259_v42 = vld [vmem:[#allocation16 + $0x10] ss:$8 sps:$4 sm:$0xff]   ;;  %v7260_v30 = vld [vmem:[#allocation16 + $0x4] ss:$8 sps:$4 sm:$0xff]  }
0x1366   : > { %v7262_v34 = vld [vmem:[#allocation16] ss:$8 sps:$4 sm:$0xff]   ;;  %v7263_v37 = vld [vmem:[#allocation16 + $0xf4] ss:$8 sps:$4 sm:$0xff]   ;;  %v7265_v33 = vld [vmem:[#allocation16 + $0xf0] ss:$8 sps:$4 sm:$0xff]  }
0x1367   : > { %5438 = vadd.xlane.f32.xlu0 %v5437_v47  ;;  %5706 = vmatpush1.bf16.msra.mxu0 %v7244_v1  ;;  %v7266_v23 = vld [vmem:[#allocation16 + $0xe4] ss:$8 sps:$4 sm:$0xff]   ;;  %v7268_v20 = vld [vmem:[#allocation16 + $0xe0] ss:$8 sps:$4 sm:$0xff]   ;;  %v7275_v0 = vld [vmem:[#allocation16 + $0xb4] ss:$8 sps:$4 sm:$0xff]  }
0x1368   : > { %5707 = vmatprep.subr.bf16.mxu0 %v7245_v2  ;;  %v7272_v3 = vld [vmem:[#allocation16 + $0xc4] ss:$8 sps:$4 sm:$0xff]   ;;  %v7274_v10 = vld [vmem:[#allocation16 + $0xc0] ss:$8 sps:$4 sm:$0xff]   ;;  %v7277_v6 = vld [vmem:[#allocation16 + $0xb0] ss:$8 sps:$4 sm:$0xff]  }
0x1369   : > { %v7278_v27 = vld [vmem:[#allocation16 + $0xa4] ss:$8 sps:$4 sm:$0xff]   ;;  %v7280_v59 = vld [vmem:[#allocation16 + $0xa0] ss:$8 sps:$4 sm:$0xff]   ;;  %v7281_v61 = vld [vmem:[#allocation16 + $0x94] ss:$8 sps:$4 sm:$0xff]  }
0x136a   : > { %v7283_v13 = vld [vmem:[#allocation16 + $0x90] ss:$8 sps:$4 sm:$0xff]   ;;  %v7284_v14 = vld [vmem:[#allocation16 + $0x84] ss:$8 sps:$4 sm:$0xff]   ;;  %v7286_v39 = vld [vmem:[#allocation16 + $0x80] ss:$8 sps:$4 sm:$0xff]  }
0x136b   : > { %5708 = vmatpush1.bf16.msra.mxu0 %v7247_v52  ;;  %v5431_v5 = vld [vmem:[#allocation7 + $0x4] ss:$8 sm:$0x3] }
0x136c   : > { %5709 = vmatprep.subr.bf16.mxu0 %v7248_v40  ;;  %v5470_v15 = vrot.slane %v5431_v5, %v8137_v26  ;;  %v5474_v51 = vrot.slane %v5431_v5, %v8135_v25 }
0x136f   : > { %5710 = vmatpush1.bf16.msra.mxu0 %v7250_v22 }
0x1370   : > { %5711 = vmatprep.subr.bf16.mxu0 %v7251_v53 }
0x1373   : > { %5712 = vmatpush1.bf16.msra.mxu0 %v7253_v24 }
0x1374   : > { %5713 = vmatprep.subr.bf16.mxu0 %v7254_v32 }
0x1377   : > { %5714 = vmatpush1.bf16.msra.mxu0 %v7256_v8 }
0x1378   : > { %5715 = vmatprep.subr.bf16.mxu0 %v7257_v43  ;;  %v5531_v43 = vld [vmem:[#allocation7 + $0x6] ss:$8 sm:$0x3] }
0x137b   : > { %5716 = vmatpush1.bf16.msra.mxu0 %v7259_v42  ;;  %v5536_v42 = vrot.slane %v5531_v43, %v8137_v26 }
0x137c   : > { %5717 = vmatprep.subr.bf16.mxu0 %v7260_v30  ;;  %v5540_v30 = vrot.slane %v5531_v43, %v8135_v25 }
0x137f   : > { %5718 = vmatpush1.bf16.msra.mxu0 %v7262_v34 }
0x1380   : > { %5719 = vmatprep.subr.bf16.mxu0 %v7263_v37 }
0x1383   : > { %5720 = vmatpush2.bf16.msra.mxu0 %v7265_v33 }
0x1384   : > { %5721 = vmatprep.subr.bf16.mxu0 %v7266_v23 }
0x1387   : > { %5722 = vmatpush2.bf16.msra.mxu0 %v7268_v20 }
0x13ec   : > { %v5436_v46 = vpop.xlane.xlu0 %5435 }
0x13ed   : > { %v5440_v16 = vmul.f32 0.00390625, %v5436_v46 }
0x13ef   : > { %v5442_v35 = vsub.f32 %v9173_v54, %v5440_v16  ;;  %v5443_v28 = vsub.f32 %v9178_v21, %v5440_v16  ;;  %v7269_v54 = vld [vmem:[#allocation16 + $0xd4] ss:$8 sps:$4 sm:$0xff]   ;;  %v7271_v21 = vld [vmem:[#allocation16 + $0xd0] ss:$8 sps:$4 sm:$0xff]  }
0x13f0   : > { %v5439_v9 = vpop.xlane.xlu0 %5438  ;;  %5723 = vmatprep.subr.bf16.mxu0 %v7269_v54 }
0x13f1   : > { %v5441_v12 = vmul.f32 0.00390625, %v5439_v9  ;;  %v5446_v18 = vmul.f32 %v5442_v35, %v5442_v35  ;;  %v5447_v48 = vmul.f32 %v5443_v28, %v5443_v28  ;;  %5724 = vmatpush2.bf16.msra.mxu0 %v7271_v21 }
0x13f2   : > { %5725 = vmatprep.subr.bf16.mxu0 %v7272_v3 }
0x13f3   : > { %v5444_v19 = vsub.f32 %v5414_v7, %v5441_v12  ;;  %v5445_v56 = vsub.f32 %v5415_v41, %v5441_v12  ;;  %v5450_v50 = vadd.f32 %v5447_v48, %v5446_v18  ;;  %v5433_v41 = vld [vmem:[#allocation7 + $0x5] ss:$8 sm:$0x3] }
0x13f4   : > { %v5485_v57 = vrot.slane %v5433_v41, %v8137_v26  ;;  %v5489_v47 = vrot.slane %v5433_v41, %v8135_v25 }
0x13f5   : > { %5451 = vadd.xlane.f32.xlu1 %v5450_v50  ;;  %v5448_v60 = vmul.f32 %v5444_v19, %v5444_v19  ;;  %v5449_v44 = vmul.f32 %v5445_v56, %v5445_v56  ;;  %5726 = vmatpush2.bf16.msra.mxu0 %v7274_v10 }
0x13f6   : > { %5727 = vmatprep.subr.bf16.mxu0 %v7275_v0 }
0x13f7   : > { %v5453_v55 = vadd.f32 %v5449_v44, %v5448_v60 }
0x13f9   : > { %5454 = vadd.xlane.f32.xlu1 %v5453_v55  ;;  %5728 = vmatpush2.bf16.msra.mxu0 %v7277_v6 }
0x13fa   : > { %5729 = vmatprep.subr.bf16.mxu0 %v7278_v27 }
0x13fd   : > { %5730 = vmatpush2.bf16.msra.mxu0 %v7280_v59 }
0x13fe   : > { %5731 = vmatprep.subr.bf16.mxu0 %v7281_v61 }
0x1401   : > { %5732 = vmatpush2.bf16.msra.mxu0 %v7283_v13 }
0x1402   : > { %5733 = vmatprep.subr.bf16.mxu0 %v7284_v14 }
0x1405   : > { %5734 = vmatpush2.bf16.msra.mxu0 %v7286_v39 }
0x147e   : > { %v5452_v63 = vpop.xlane.xlu1 %5451 }
0x147f   : > { %v5456_v38 = vmul.f32 0.00390625, %v5452_v63 }
0x1481   : > { %v5458_v45 = vadd.f32 1e-05, %v5456_v38 }
0x1482   : > { %v5455_v4 = vpop.xlane.xlu1 %5454 }
0x1483   : > { %7287 = vrsqrt.f32 %v5458_v45  ;;  %v5457_v7 = vmul.f32 0.00390625, %v5455_v4 }
0x1485   : > { %v5459_v31 = vadd.f32 1e-05, %v5457_v7 }
0x1487   : > { %7289 = vrsqrt.f32 %v5459_v31 }
0x1490   : > { %v7288_v36 = vpop.eup %7287 }
0x1491   : > { %v5463_v11 = vmul.f32 %v7288_v36, %v5443_v28  ;;  %v5462_v17 = vmul.f32 %v7288_v36, %v5442_v35 }
0x1493   : > { %v5478_v58 = vmul.f32 %v5474_v51, %v5463_v11  ;;  %v5477_v1 = vmul.f32 %v5470_v15, %v5462_v17 }
0x1494   : > { %v7290_v49 = vpop.eup %7289 }
0x1495   : > { %v5465_v29 = vmul.f32 %v7290_v49, %v5445_v56  ;;  %v5464_v62 = vmul.f32 %v7290_v49, %v5444_v19  ;;  %v5493_v40 = vadd.f32 %v5489_v47, %v5478_v58  ;;  %v5492_v53 = vadd.f32 %v5485_v57, %v5477_v1 }
0x1497   : > { %v5480_v2 = vmul.f32 %v5474_v51, %v5465_v29  ;;  %v5479_v52 = vmul.f32 %v5470_v15, %v5464_v62 }
0x1499   : > { %v5495_v22 = vadd.f32 %v5489_v47, %v5480_v2  ;;  %v5494_v24 = vadd.f32 %v5485_v57, %v5479_v52 }
0x149b   : > { %v5497_v32 = vpack.c.bf16 %v5495_v22, %v5493_v40  ;;  %v5496_v8 = vpack.c.bf16 %v5494_v24, %v5492_v53 }
0x149d   : > { %5735 = vmatprep.mubr.bf16.mxu0 %v5497_v32 }
0x149e   : > { %5736 = vmatmul.mubr.bf16.vlgmr.msra.gmra.mxu0 %v5496_v8 }
0x155e   : > { %v5737_v34 = vpop.f32.mrf.mxu0 }
0x155f   : > { %v5738_v37 = vadd.f32 %v5737_v34, %v5536_v42 }
0x1560   : > { %v5739_v46 = vpop.f32.mrf.mxu0 }
0x1561   : > { %5746 = vst [vmem:[%s9234_s9] sm:$0xff] %v5738_v37  ;;  %v5740_v16 = vadd.f32 %v5739_v46, %v5540_v30 }
0x1562   : > { %v5741_v35 = vpop.f32.mrf.mxu0 }
0x1563   : > { %5747 = vst [vmem:[%s9234_s9 + $0x8] sm:$0xff] %v5740_v16  ;;  %v5742_v28 = vadd.f32 %v5741_v35, %v5536_v42 }
0x1564   : > { %v5743_v9 = vpop.f32.mrf.mxu0 }
0x1565   : > { %5748 = vst [vmem:[%s9234_s9 + $0x10] sm:$0xff] %v5742_v28  ;;  %v5744_v25 = vadd.f32 %v5743_v9, %v5540_v30 }
0x1567   : > { %5749 = vst [vmem:[%s9234_s9 + $0x18] sm:$0xff] %v5744_v25 }
0x1568 PF: > { %s9283_s12 = sld [smem:[#allocation24_spill]]  ;;  %s9286_s30 = smov %s7581_s10 }
0x1569   : > { %s9284_s25 = sld [smem:[#allocation23_spill]] }
0x156a   : > { %s9285_s11 = sld [smem:[#allocation25_spill]] }
0x156e   : > { %p27_p6 = scmp.ge.s32.totalorder %s9283_s12, 6  }
0x156f   : > { %s9287_s10 = smov %s9284_s25 }
0x1570   :  { %29 = sbr.rel (!%p27_p6) target bundleno = 14 (0xe), region = 183 }
0x1575   :  { %5761 = vsyncpa [#allocation4], 1 }
0x1576   :  { %5763 = vsyncpa [#allocation4 + $0x1], 1 }
0x1577   :  { %5764 = vsyncpa [#allocation6], 1 }
0x1578   :  { %5765 = vsyncpa [#allocation9], 1 }
0x1579   :  { %5767 = vsyncpa [#allocation9 + $0x1], 1 }
0x157a   :  { %5768 = vsyncpa [#allocation12], 1 }
0x157b   :  { %5770 = vsyncpa [#allocation12 + $0x1], 1 }
0x157c   :  { %5771 = vsyncpa [#allocation15], 1 }
0x157d   :  { %5773 = vsyncpa [#allocation15 + $0x1], 1 }

</bundles_post_ra>
